<compile_context>
chip_gen: v7x
topology: tpu7x:2x2x1
jax: 0.10.0
libtpu: 0.0.40
codegen_flags: <defaults>
</compile_context>

<pallas_src>
import functools

import jax
import jax.numpy as jnp
from jax import lax
from jax.experimental import pallas as pl
from jax.experimental.pallas import tpu as pltpu

EPS = 1e-5      # BatchNorm2d default eps
LANE = 128      # TPU lane width


def _round_up(x, m):
    return ((x + m - 1) // m) * m


@functools.lru_cache(maxsize=None)
def _vmem_limit():
    """Per-generation scoped-VMEM budget: ~64 MiB on 128 MiB parts (v5e/v6e),
    ~48 MiB on 64 MiB parts (v7x)."""
    default = 32 * 1024 * 1024
    try:
        info = pltpu.get_tpu_info()
        phys = int(getattr(info, "vmem_capacity_bytes", 0) or 0)
    except Exception:
        return default
    if phys <= 0:
        return default
    return int(min(64 * 1024 * 1024, (phys * 3) // 4))


def _geom(h, w):
    """Flat padded-image geometry shared by both phases / both ConvBlocks.

    wp        = W + 2 (padded row width)
    data_rows = H * wp      rows of the conv output block (2 junk cols / row)
    lead      = 8-aligned flat row where data pixel (0, 0) lives
    pad_rows  = total flat rows of the zero-padded activation layout
    The padded image itself (H+2 spatial rows) starts at flat row
    base = lead - (wp + 1); everything outside it is extra zeros (guard rows
    so every tap's contiguous pl.ds window stays in bounds).
    """
    wp = w + 2
    data_rows = h * wp
    lead = _round_up(wp + 1, 8)
    pad_rows = _round_up(lead + data_rows + wp + 1, 8)
    return wp, data_rows, lead, pad_rows


# ---------------------------------------------------------------------------
# Phase 1: conv as 9 contiguous shifted GEMMs + fused per-channel sum / sumsq
# ---------------------------------------------------------------------------
def _conv_gemm_kernel(x_ref, w_ref, out_ref, sums_ref, *, w, wp, rows, base):
    # x_ref    : (pad_rows, Cin_p)  bf16  flattened zero-padded image
    # w_ref    : (9, Cin_p, Cout_p) bf16  VMEM-resident across grid steps
    # out_ref  : (rows, Cout_p)     bf16  conv output (H*(W+2) rows, junk cols)
    # sums_ref : (2, Cout_p)        f32   per-image [sum, sum_of_squares]
    acc = None
    for k in range(9):                              # statically unrolled taps
        dh, dw = divmod(k, 3)
        patch = x_ref[pl.ds(base + dh * wp + dw, rows), :]   # contiguous view
        contrib = jnp.dot(patch, w_ref[k], preferred_element_type=jnp.float32)
        acc = contrib if acc is None else acc + contrib      # local accumulate

    # Mask the 2 junk (wraparound) columns per row out of the BN statistics.
    valid = (lax.broadcasted_iota(jnp.int32, (rows, 1), 0) % wp) < w
    s1 = jnp.sum(jnp.where(valid, acc, 0.0), axis=0, keepdims=True)
    s2 = jnp.sum(jnp.where(valid, acc * acc, 0.0), axis=0, keepdims=True)
    sums_ref[...] = jnp.concatenate([s1, s2], axis=0)

    out_ref[...] = acc.astype(out_ref.dtype)        # single store, bf16


def _conv_gemm_pallas(x_flat, w9, h, w):
    n, pad_rows_in, cin_p = x_flat.shape
    wp, rows, lead, pad_rows = _geom(h, w)
    assert pad_rows_in == pad_rows
    cout_p = w9.shape[-1]

    flops = 2 * n * rows * 9 * cin_p * cout_p
    bytes_accessed = (x_flat.size * 2 + w9.size * 2
                      + n * rows * cout_p * 2 + n * 2 * cout_p * 4)
    kernel = functools.partial(_conv_gemm_kernel, w=w, wp=wp, rows=rows,
                               base=lead - (wp + 1))
    return pl.pallas_call(
        kernel,
        out_shape=(jax.ShapeDtypeStruct((n, rows, cout_p), jnp.bfloat16),
                   jax.ShapeDtypeStruct((n, 2, cout_p), jnp.float32)),
        grid=(n,),
        in_specs=[
            pl.BlockSpec((None, pad_rows, cin_p), lambda i: (i, 0, 0)),
            pl.BlockSpec((9, cin_p, cout_p), lambda i: (0, 0, 0)),   # resident
        ],
        out_specs=(
            pl.BlockSpec((None, rows, cout_p), lambda i: (i, 0, 0)),
            pl.BlockSpec((None, 2, cout_p), lambda i: (i, 0, 0)),
        ),
        compiler_params=pltpu.CompilerParams(
            dimension_semantics=("parallel",),
            vmem_limit_bytes=_vmem_limit()),
        cost_estimate=pl.CostEstimate(flops=flops, transcendentals=0,
                                      bytes_accessed=bytes_accessed),
    )(x_flat, w9)


# ---------------------------------------------------------------------------
# Phase 2: folded BatchNorm scale/shift + ReLU (lane-dense elementwise pass).
# With pad_out=True it emits the next ConvBlock's zero-padded bf16 input
# layout directly (constant 8-aligned row shift) -> no jnp.pad pass in HBM.
# ---------------------------------------------------------------------------
def _bn_relu_kernel(x_ref, scale_ref, shift_ref, o_ref, *, w, wp, rows, lead,
                    pad_out):
    valid = (lax.broadcasted_iota(jnp.int32, (rows, 1), 0) % wp) < w
    y = x_ref[...].astype(jnp.float32) * scale_ref[...] + shift_ref[...]
    y = jnp.where(valid, jnp.maximum(y, 0.0), 0.0).astype(o_ref.dtype)
    if pad_out:
        cp = o_ref.shape[-1]
        tail = o_ref.shape[0] - lead - rows
        o_ref[pl.ds(0, lead), :] = jnp.zeros((lead, cp), o_ref.dtype)
        o_ref[pl.ds(lead, rows), :] = y                 # 8-aligned shifted store
        o_ref[pl.ds(lead + rows, tail), :] = jnp.zeros((tail, cp), o_ref.dtype)
    else:
        o_ref[...] = y


def _bn_relu_pallas(conv, scale, shift, h, w, *, pad_out, out_dtype):
    n, _, cp = conv.shape
    wp, rows, lead, pad_rows = _geom(h, w)
    out_rows = pad_rows if pad_out else rows
    out_bytes = n * out_rows * cp * jnp.dtype(out_dtype).itemsize
    in_bytes = conv.size * conv.dtype.itemsize + 2 * cp * 4
    kernel = functools.partial(_bn_relu_kernel, w=w, wp=wp, rows=rows,
                               lead=lead, pad_out=pad_out)
    return pl.pallas_call(
        kernel,
        out_shape=jax.ShapeDtypeStruct((n, out_rows, cp), out_dtype),
        grid=(n,),
        in_specs=[
            pl.BlockSpec((None, rows, cp), lambda i: (i, 0, 0)),
            pl.BlockSpec((1, cp), lambda i: (0, 0)),
            pl.BlockSpec((1, cp), lambda i: (0, 0)),
        ],
        out_specs=pl.BlockSpec((None, out_rows, cp), lambda i: (i, 0, 0)),
        compiler_params=pltpu.CompilerParams(
            dimension_semantics=("parallel",),
            vmem_limit_bytes=_vmem_limit()),
        cost_estimate=pl.CostEstimate(flops=3 * n * rows * cp, transcendentals=0,
                                      bytes_accessed=in_bytes + out_bytes),
    )(conv, scale.reshape(1, cp), shift.reshape(1, cp))


# ---------------------------------------------------------------------------
# ConvBlock forward on the flattened, channel-padded, zero-padded layout
# ---------------------------------------------------------------------------
def conv_block_forward(x_flat, w9, bias, gamma, beta, h, w, *, pad_out,
                       out_dtype):
    n = x_flat.shape[0]
    m = n * h * w                                   # real number of BN samples
    conv, partial_sums = _conv_gemm_pallas(x_flat, w9, h, w)

    # Cross-image BN reduction on the tiny (N, 2, Cp) partials, then fold
    # mean / rsqrt(var+eps) / gamma / beta into one scale + shift per channel.
    totals = jnp.sum(partial_sums, axis=0)                    # (2, Cp)
    mean = totals[0] / m
    var = jnp.maximum(totals[1] / m - mean * mean, 0.0)       # clamp f32 cancel
    scale = gamma * lax.rsqrt(var + EPS)
    # The conv bias shifts the activation and its batch mean equally, so it
    # cancels exactly under training-mode (batch-statistic) BatchNorm.
    # (Would NOT hold in eval mode with running stats.)
    shift = beta - mean * scale
    _ = bias                                                  # kept for fidelity
    # Padded channels have gamma = beta = 0 -> scale = shift = 0 -> output 0.

    return _bn_relu_pallas(conv, scale, shift, h, w,
                           pad_out=pad_out, out_dtype=out_dtype)


# ---------------------------------------------------------------------------
# Parameter prep (PyTorch (Cout,Cin,3,3) -> padded (9, Cin_p, Cout_p) bf16)
# ---------------------------------------------------------------------------
def _prep_params(params, cin_p, cout_p):
    w_torch, b, gamma, beta = params                  # w_torch: (Cout, Cin, 3, 3)
    cout, cin = w_torch.shape[0], w_torch.shape[1]
    wk = jnp.transpose(w_torch, (2, 3, 1, 0))         # (kh, kw, Cin, Cout)
    wk = jnp.pad(wk, ((0, 0), (0, 0), (0, cin_p - cin), (0, cout_p - cout)))
    w9 = wk.reshape(9, cin_p, cout_p).astype(jnp.bfloat16)
    padc = lambda v: jnp.pad(v.astype(jnp.float32), (0, cout_p - cout))
    return w9, padc(b), padc(gamma), padc(beta)


def bridge_forward(x_nchw, params1, params2):
    """Bridge.forward: two ConvBlocks.  Input/output NCHW like PyTorch."""
    n, cin, h, w = x_nchw.shape
    cout1 = params1[0].shape[0]
    cout2 = params2[0].shape[0]
    cp_in = _round_up(cin, LANE)
    cp_mid = _round_up(cout1, LANE)
    cp_out = _round_up(cout2, LANE)
    wp, rows, lead, pad_rows = _geom(h, w)

    # NCHW -> NHWC, spatial conv padding, channel lane padding, bf16, flatten,
    # then front/back flat padding so data pixel (0,0) sits at the 8-aligned
    # `lead` row.  ConvBlock 1's phase 2 emits this exact layout for block 2.
    x = jnp.transpose(x_nchw, (0, 2, 3, 1))
    x = jnp.pad(x, ((0, 0), (1, 1), (1, 1), (0, cp_in - cin))).astype(jnp.bfloat16)
    x = x.reshape(n, (h + 2) * wp, cp_in)
    front = lead - (wp + 1)
    back = pad_rows - (h + 2) * wp - front
    x = jnp.pad(x, ((0, 0), (front, back), (0, 0)))

    w1, b1, g1, be1 = _prep_params(params1, cp_in, cp_mid)
    w2, b2, g2, be2 = _prep_params(params2, cp_mid, cp_out)

    # Block 1: pre-padded bf16 output feeds block 2 directly (no HBM pad pass).
    y = conv_block_forward(x, w1, b1, g1, be1, h, w,
                           pad_out=True, out_dtype=jnp.bfloat16)
    # Block 2: plain row-major output (2 junk cols per row), f32.
    y = conv_block_forward(y, w2, b2, g2, be2, h, w,
                           pad_out=False, out_dtype=jnp.float32)

    y = y.reshape(n, h, wp, cp_out)[:, :, :w, :cout2]   # drop junk cols + chan pad
    return jnp.transpose(y, (0, 3, 1, 2))               # NHWC -> NCHW


# ---------------------------------------------------------------------------
# Deterministic parameter init (PyTorch Conv2d-style uniform; BN gamma=1, beta=0)
# ---------------------------------------------------------------------------
def init_conv_block_params(key, cin, cout):
    kw_, kb_ = jax.random.split(key)
    fan_in = cin * 3 * 3
    bound = 1.0 / jnp.sqrt(fan_in)
    wgt = jax.random.uniform(kw_, (cout, cin, 3, 3), jnp.float32, -bound, bound)
    b = jax.random.uniform(kb_, (cout,), jnp.float32, -bound, bound)
    gamma = jnp.ones((cout,), jnp.float32)
    beta = jnp.zeros((cout,), jnp.float32)
    return (wgt, b, gamma, beta)


# ---------------------------------------------------------------------------
# Pure-JAX (f32) reference for correctness check
# ---------------------------------------------------------------------------
def _ref_conv_block(x_nchw, params):
    wgt, b, gamma, beta = params
    y = lax.conv_general_dilated(
        x_nchw, wgt, window_strides=(1, 1), padding=((1, 1), (1, 1)),
        dimension_numbers=("NCHW", "OIHW", "NCHW"))
    y = y + b[None, :, None, None]
    mean = jnp.mean(y, axis=(0, 2, 3), keepdims=True)
    var = jnp.mean((y - mean) ** 2, axis=(0, 2, 3), keepdims=True)
    y = (y - mean) * lax.rsqrt(var + EPS)
    y = y * gamma[None, :, None, None] + beta[None, :, None, None]
    return jnp.maximum(y, 0.0)


def _ref_bridge(x_nchw, params1, params2):
    return _ref_conv_block(_ref_conv_block(x_nchw, params1), params2)


if __name__ == "__main__":
    key = jax.random.PRNGKey(0)
    kx, k1, k2 = jax.random.split(key, 3)

    N, Cin, H, W = 2, 4, 16, 16
    Cout = 8

    x = jax.random.normal(kx, (N, Cin, H, W), jnp.float32)   # NCHW input
    params1 = init_conv_block_params(k1, Cin, Cout)
    params2 = init_conv_block_params(k2, Cout, Cout)

    fwd = jax.jit(bridge_forward)
    out = jax.block_until_ready(fwd(x, params1, params2))

    ref = jax.block_until_ready(_ref_bridge(x, params1, params2))
    assert out.shape == (N, Cout, H, W)
    # bf16 MXU inputs / bf16 conv+inter-block intermediates (f32 accumulation
    # and BN statistics) vs a pure-f32 reference -> mixed-precision tolerance.
    assert jnp.allclose(out, ref, rtol=5e-2, atol=5e-2), "mismatch vs JAX reference"

    print("KERNEL_OK")
</pallas_src>

<mosaic_0001>
module attributes {stable_mosaic.version = 11 : i64} {
  func.func @_conv_gemm_kernel(%arg0: i32, %arg1: memref<1x336x128xbf16, #tpu.memory_space<vmem>>, %arg2: memref<9x128x128xbf16, #tpu.memory_space<vmem>>, %arg3: memref<1x288x128xbf16, #tpu.memory_space<vmem>>, %arg4: memref<1x2x128xf32, #tpu.memory_space<vmem>>) attributes {dimension_semantics = [#tpu.dimension_semantics<parallel>], iteration_bounds = array<i64: 2>, scalar_prefetch = 0 : i64, scratch_operands = 0 : i64, tpu.core_type = #tpu.core_type<tc>, window_params = [{transform_indices = @transform_0, window_bounds = array<i64: 1, 336, 128>}, {pipeline_mode = #tpu.pipeline_mode<synchronous>, transform_indices = @transform_1, window_bounds = array<i64: 9, 128, 128>}, {transform_indices = @transform_2, window_bounds = array<i64: 1, 288, 128>}, {transform_indices = @transform_3, window_bounds = array<i64: 1, 2, 128>}]} {
    %c0 = arith.constant 0 : index
    %c5 = arith.constant 5 : index
    %c0_0 = arith.constant 0 : index
    %0 = vector.load %arg1[%c0, %c5, %c0_0] : memref<1x336x128xbf16, #tpu.memory_space<vmem>>, vector<1x288x128xbf16>
    %1 = vector.shape_cast %0 : vector<1x288x128xbf16> to vector<288x128xbf16>
    %c0_1 = arith.constant 0 : index
    %c0_2 = arith.constant 0 : index
    %c0_3 = arith.constant 0 : index
    %2 = vector.load %arg2[%c0_1, %c0_2, %c0_3] : memref<9x128x128xbf16, #tpu.memory_space<vmem>>, vector<1x128x128xbf16>
    %3 = vector.shape_cast %2 : vector<1x128x128xbf16> to vector<128x128xbf16>
    %cst = arith.constant dense<0.000000e+00> : vector<288x128xf32>
    %4 = tpu.matmul %1, %3, %cst {dimension_numbers = #tpu.dot_dimension_numbers<[1], [0], [0], [1], [0, 0, 1, 1], [], []>} : vector<288x128xbf16>, vector<128x128xbf16>, vector<288x128xf32> -> vector<288x128xf32>
    %c0_4 = arith.constant 0 : index
    %c6 = arith.constant 6 : index
    %c0_5 = arith.constant 0 : index
    %5 = vector.load %arg1[%c0_4, %c6, %c0_5] : memref<1x336x128xbf16, #tpu.memory_space<vmem>>, vector<1x288x128xbf16>
    %6 = vector.shape_cast %5 : vector<1x288x128xbf16> to vector<288x128xbf16>
    %c1 = arith.constant 1 : index
    %c0_6 = arith.constant 0 : index
    %c0_7 = arith.constant 0 : index
    %7 = vector.load %arg2[%c1, %c0_6, %c0_7] : memref<9x128x128xbf16, #tpu.memory_space<vmem>>, vector<1x128x128xbf16>
    %8 = vector.shape_cast %7 : vector<1x128x128xbf16> to vector<128x128xbf16>
    %cst_8 = arith.constant dense<0.000000e+00> : vector<288x128xf32>
    %9 = tpu.matmul %6, %8, %cst_8 {dimension_numbers = #tpu.dot_dimension_numbers<[1], [0], [0], [1], [0, 0, 1, 1], [], []>} : vector<288x128xbf16>, vector<128x128xbf16>, vector<288x128xf32> -> vector<288x128xf32>
    %10 = arith.addf %4, %9 : vector<288x128xf32>
    %c0_9 = arith.constant 0 : index
    %c7 = arith.constant 7 : index
    %c0_10 = arith.constant 0 : index
    %11 = vector.load %arg1[%c0_9, %c7, %c0_10] : memref<1x336x128xbf16, #tpu.memory_space<vmem>>, vector<1x288x128xbf16>
    %12 = vector.shape_cast %11 : vector<1x288x128xbf16> to vector<288x128xbf16>
    %c2 = arith.constant 2 : index
    %c0_11 = arith.constant 0 : index
    %c0_12 = arith.constant 0 : index
    %13 = vector.load %arg2[%c2, %c0_11, %c0_12] : memref<9x128x128xbf16, #tpu.memory_space<vmem>>, vector<1x128x128xbf16>
    %14 = vector.shape_cast %13 : vector<1x128x128xbf16> to vector<128x128xbf16>
    %cst_13 = arith.constant dense<0.000000e+00> : vector<288x128xf32>
    %15 = tpu.matmul %12, %14, %cst_13 {dimension_numbers = #tpu.dot_dimension_numbers<[1], [0], [0], [1], [0, 0, 1, 1], [], []>} : vector<288x128xbf16>, vector<128x128xbf16>, vector<288x128xf32> -> vector<288x128xf32>
    %16 = arith.addf %10, %15 : vector<288x128xf32>
    %c0_14 = arith.constant 0 : index
    %c23 = arith.constant 23 : index
    %c0_15 = arith.constant 0 : index
    %17 = vector.load %arg1[%c0_14, %c23, %c0_15] : memref<1x336x128xbf16, #tpu.memory_space<vmem>>, vector<1x288x128xbf16>
    %18 = vector.shape_cast %17 : vector<1x288x128xbf16> to vector<288x128xbf16>
    %c3 = arith.constant 3 : index
    %c0_16 = arith.constant 0 : index
    %c0_17 = arith.constant 0 : index
    %19 = vector.load %arg2[%c3, %c0_16, %c0_17] : memref<9x128x128xbf16, #tpu.memory_space<vmem>>, vector<1x128x128xbf16>
    %20 = vector.shape_cast %19 : vector<1x128x128xbf16> to vector<128x128xbf16>
    %cst_18 = arith.constant dense<0.000000e+00> : vector<288x128xf32>
    %21 = tpu.matmul %18, %20, %cst_18 {dimension_numbers = #tpu.dot_dimension_numbers<[1], [0], [0], [1], [0, 0, 1, 1], [], []>} : vector<288x128xbf16>, vector<128x128xbf16>, vector<288x128xf32> -> vector<288x128xf32>
    %22 = arith.addf %16, %21 : vector<288x128xf32>
    %c0_19 = arith.constant 0 : index
    %c24 = arith.constant 24 : index
    %c0_20 = arith.constant 0 : index
    %23 = vector.load %arg1[%c0_19, %c24, %c0_20] : memref<1x336x128xbf16, #tpu.memory_space<vmem>>, vector<1x288x128xbf16>
    %24 = vector.shape_cast %23 : vector<1x288x128xbf16> to vector<288x128xbf16>
    %c4 = arith.constant 4 : index
    %c0_21 = arith.constant 0 : index
    %c0_22 = arith.constant 0 : index
    %25 = vector.load %arg2[%c4, %c0_21, %c0_22] : memref<9x128x128xbf16, #tpu.memory_space<vmem>>, vector<1x128x128xbf16>
    %26 = vector.shape_cast %25 : vector<1x128x128xbf16> to vector<128x128xbf16>
    %cst_23 = arith.constant dense<0.000000e+00> : vector<288x128xf32>
    %27 = tpu.matmul %24, %26, %cst_23 {dimension_numbers = #tpu.dot_dimension_numbers<[1], [0], [0], [1], [0, 0, 1, 1], [], []>} : vector<288x128xbf16>, vector<128x128xbf16>, vector<288x128xf32> -> vector<288x128xf32>
    %28 = arith.addf %22, %27 : vector<288x128xf32>
    %c0_24 = arith.constant 0 : index
    %c25 = arith.constant 25 : index
    %c0_25 = arith.constant 0 : index
    %29 = vector.load %arg1[%c0_24, %c25, %c0_25] : memref<1x336x128xbf16, #tpu.memory_space<vmem>>, vector<1x288x128xbf16>
    %30 = vector.shape_cast %29 : vector<1x288x128xbf16> to vector<288x128xbf16>
    %c5_26 = arith.constant 5 : index
    %c0_27 = arith.constant 0 : index
    %c0_28 = arith.constant 0 : index
    %31 = vector.load %arg2[%c5_26, %c0_27, %c0_28] : memref<9x128x128xbf16, #tpu.memory_space<vmem>>, vector<1x128x128xbf16>
    %32 = vector.shape_cast %31 : vector<1x128x128xbf16> to vector<128x128xbf16>
    %cst_29 = arith.constant dense<0.000000e+00> : vector<288x128xf32>
    %33 = tpu.matmul %30, %32, %cst_29 {dimension_numbers = #tpu.dot_dimension_numbers<[1], [0], [0], [1], [0, 0, 1, 1], [], []>} : vector<288x128xbf16>, vector<128x128xbf16>, vector<288x128xf32> -> vector<288x128xf32>
    %34 = arith.addf %28, %33 : vector<288x128xf32>
    %c0_30 = arith.constant 0 : index
    %c41 = arith.constant 41 : index
    %c0_31 = arith.constant 0 : index
    %35 = vector.load %arg1[%c0_30, %c41, %c0_31] : memref<1x336x128xbf16, #tpu.memory_space<vmem>>, vector<1x288x128xbf16>
    %36 = vector.shape_cast %35 : vector<1x288x128xbf16> to vector<288x128xbf16>
    %c6_32 = arith.constant 6 : index
    %c0_33 = arith.constant 0 : index
    %c0_34 = arith.constant 0 : index
    %37 = vector.load %arg2[%c6_32, %c0_33, %c0_34] : memref<9x128x128xbf16, #tpu.memory_space<vmem>>, vector<1x128x128xbf16>
    %38 = vector.shape_cast %37 : vector<1x128x128xbf16> to vector<128x128xbf16>
    %cst_35 = arith.constant dense<0.000000e+00> : vector<288x128xf32>
    %39 = tpu.matmul %36, %38, %cst_35 {dimension_numbers = #tpu.dot_dimension_numbers<[1], [0], [0], [1], [0, 0, 1, 1], [], []>} : vector<288x128xbf16>, vector<128x128xbf16>, vector<288x128xf32> -> vector<288x128xf32>
    %40 = arith.addf %34, %39 : vector<288x128xf32>
    %c0_36 = arith.constant 0 : index
    %c42 = arith.constant 42 : index
    %c0_37 = arith.constant 0 : index
    %41 = vector.load %arg1[%c0_36, %c42, %c0_37] : memref<1x336x128xbf16, #tpu.memory_space<vmem>>, vector<1x288x128xbf16>
    %42 = vector.shape_cast %41 : vector<1x288x128xbf16> to vector<288x128xbf16>
    %c7_38 = arith.constant 7 : index
    %c0_39 = arith.constant 0 : index
    %c0_40 = arith.constant 0 : index
    %43 = vector.load %arg2[%c7_38, %c0_39, %c0_40] : memref<9x128x128xbf16, #tpu.memory_space<vmem>>, vector<1x128x128xbf16>
    %44 = vector.shape_cast %43 : vector<1x128x128xbf16> to vector<128x128xbf16>
    %cst_41 = arith.constant dense<0.000000e+00> : vector<288x128xf32>
    %45 = tpu.matmul %42, %44, %cst_41 {dimension_numbers = #tpu.dot_dimension_numbers<[1], [0], [0], [1], [0, 0, 1, 1], [], []>} : vector<288x128xbf16>, vector<128x128xbf16>, vector<288x128xf32> -> vector<288x128xf32>
    %46 = arith.addf %40, %45 : vector<288x128xf32>
    %c0_42 = arith.constant 0 : index
    %c43 = arith.constant 43 : index
    %c0_43 = arith.constant 0 : index
    %47 = vector.load %arg1[%c0_42, %c43, %c0_43] : memref<1x336x128xbf16, #tpu.memory_space<vmem>>, vector<1x288x128xbf16>
    %48 = vector.shape_cast %47 : vector<1x288x128xbf16> to vector<288x128xbf16>
    %c8 = arith.constant 8 : index
    %c0_44 = arith.constant 0 : index
    %c0_45 = arith.constant 0 : index
    %49 = vector.load %arg2[%c8, %c0_44, %c0_45] : memref<9x128x128xbf16, #tpu.memory_space<vmem>>, vector<1x128x128xbf16>
    %50 = vector.shape_cast %49 : vector<1x128x128xbf16> to vector<128x128xbf16>
    %cst_46 = arith.constant dense<0.000000e+00> : vector<288x128xf32>
    %51 = tpu.matmul %48, %50, %cst_46 {dimension_numbers = #tpu.dot_dimension_numbers<[1], [0], [0], [1], [0, 0, 1, 1], [], []>} : vector<288x128xbf16>, vector<128x128xbf16>, vector<288x128xf32> -> vector<288x128xf32>
    %52 = arith.addf %46, %51 : vector<288x128xf32>
    %53 = tpu.iota {dimensions = array<i32: 0>} : vector<288x1xi32>
    %c18_i32 = arith.constant 18 : i32
    %c0_i32 = arith.constant 0 : i32
    %54 = arith.cmpi eq, %c18_i32, %c0_i32 : i32
    %c1_i32 = arith.constant 1 : i32
    %55 = arith.select %54, %c1_i32, %c18_i32 : i32
    %56 = vector.broadcast %55 : i32 to vector<288x1xi32>
    %57 = arith.remsi %53, %56 : vector<288x1xi32>
    %c0_i32_47 = arith.constant 0 : i32
    %58 = vector.broadcast %c0_i32_47 : i32 to vector<288x1xi32>
    %59 = arith.cmpi ne, %57, %58 : vector<288x1xi32>
    %c0_i32_48 = arith.constant 0 : i32
    %60 = vector.broadcast %c0_i32_48 : i32 to vector<288x1xi32>
    %61 = arith.cmpi slt, %57, %60 : vector<288x1xi32>
    %c0_i32_49 = arith.constant 0 : i32
    %62 = arith.cmpi slt, %55, %c0_i32_49 : i32
    %63 = vector.broadcast %62 : i1 to vector<288x1xi1>
    %64 = vector.broadcast %63 : vector<288x1xi1> to vector<288x1xi1>
    %65 = arith.xori %61, %64 : vector<288x1xi1>
    %66 = arith.andi %65, %59 : vector<288x1xi1>
    %67 = vector.broadcast %55 : i32 to vector<288x1xi32>
    %68 = arith.addi %57, %67 : vector<288x1xi32>
    %69 = arith.select %66, %68, %57 : vector<288x1xi1>, vector<288x1xi32>
    %c16_i32 = arith.constant 16 : i32
    %70 = vector.broadcast %c16_i32 : i32 to vector<288x1xi32>
    %71 = arith.cmpi slt, %69, %70 : vector<288x1xi32>
    %cst_50 = arith.constant 0.000000e+00 : f32
    %72 = vector.shape_cast %71 : vector<288x1xi1> to vector<288x1xi1>
    %73 = vector.broadcast %72 : vector<288x1xi1> to vector<288x128xi1>
    %74 = vector.broadcast %cst_50 : f32 to vector<288x128xf32>
    %75 = arith.select %73, %52, %74 : vector<288x128xi1>, vector<288x128xf32>
    %cst_51 = arith.constant dense<0.000000e+00> : vector<128xf32>
    %76 = vector.multi_reduction <add>, %75, %cst_51 [0] : vector<288x128xf32> to vector<128xf32>
    %77 = vector.shape_cast %76 : vector<128xf32> to vector<1x128xf32>
    %78 = arith.mulf %52, %52 : vector<288x128xf32>
    %cst_52 = arith.constant 0.000000e+00 : f32
    %79 = vector.shape_cast %71 : vector<288x1xi1> to vector<288x1xi1>
    %80 = vector.broadcast %79 : vector<288x1xi1> to vector<288x128xi1>
    %81 = vector.broadcast %cst_52 : f32 to vector<288x128xf32>
    %82 = arith.select %80, %78, %81 : vector<288x128xi1>, vector<288x128xf32>
    %cst_53 = arith.constant dense<0.000000e+00> : vector<128xf32>
    %83 = vector.multi_reduction <add>, %82, %cst_53 [0] : vector<288x128xf32> to vector<128xf32>
    %84 = vector.shape_cast %83 : vector<128xf32> to vector<1x128xf32>
    %85 = tpu.concatenate %77, %84 in 0 : vector<1x128xf32>, vector<1x128xf32> -> vector<2x128xf32>
    %c0_54 = arith.constant 0 : index
    %c0_55 = arith.constant 0 : index
    %c0_56 = arith.constant 0 : index
    %86 = vector.load %arg4[%c0_54, %c0_55, %c0_56] : memref<1x2x128xf32, #tpu.memory_space<vmem>>, vector<1x2x128xf32>
    %87 = vector.shape_cast %86 : vector<1x2x128xf32> to vector<2x128xf32>
    %88 = vector.shape_cast %85 : vector<2x128xf32> to vector<1x2x128xf32>
    tpu.vector_store %arg4[%c0_54, %c0_55, %c0_56], %88 {strides = array<i32>} : memref<1x2x128xf32, #tpu.memory_space<vmem>>, vector<1x2x128xf32>,
    %89 = arith.truncf %52 : vector<288x128xf32> to vector<288x128xbf16>
    %c0_57 = arith.constant 0 : index
    %c0_58 = arith.constant 0 : index
    %c0_59 = arith.constant 0 : index
    %90 = vector.load %arg3[%c0_57, %c0_58, %c0_59] : memref<1x288x128xbf16, #tpu.memory_space<vmem>>, vector<1x288x128xbf16>
    %91 = vector.shape_cast %90 : vector<1x288x128xbf16> to vector<288x128xbf16>
    %92 = vector.shape_cast %89 : vector<288x128xbf16> to vector<1x288x128xbf16>
    tpu.vector_store %arg3[%c0_57, %c0_58, %c0_59], %92 {strides = array<i32>} : memref<1x288x128xbf16, #tpu.memory_space<vmem>>, vector<1x288x128xbf16>,
    return
  }
  func.func @transform_0(%arg0: i32) -> (i32, i32, i32) {
    %c0_i32 = arith.constant 0 : i32
    %c0_i32_0 = arith.constant 0 : i32
    %c0_i32_1 = arith.constant 0 : i32
    return %arg0, %c0_i32, %c0_i32_0 : i32, i32, i32
  }
  func.func @transform_1(%arg0: i32) -> (i32, i32, i32) {
    %c0_i32 = arith.constant 0 : i32
    %c0_i32_0 = arith.constant 0 : i32
    %c0_i32_1 = arith.constant 0 : i32
    %c0_i32_2 = arith.constant 0 : i32
    return %c0_i32, %c0_i32_0, %c0_i32_1 : i32, i32, i32
  }
  func.func @transform_2(%arg0: i32) -> (i32, i32, i32) {
    %c0_i32 = arith.constant 0 : i32
    %c0_i32_0 = arith.constant 0 : i32
    %c0_i32_1 = arith.constant 0 : i32
    return %arg0, %c0_i32, %c0_i32_0 : i32, i32, i32
  }
  func.func @transform_3(%arg0: i32) -> (i32, i32, i32) {
    %c0_i32 = arith.constant 0 : i32
    %c0_i32_0 = arith.constant 0 : i32
    %c0_i32_1 = arith.constant 0 : i32
    return %arg0, %c0_i32, %c0_i32_0 : i32, i32, i32
  }
}

module attributes {stable_mosaic.version = 11 : i64} {
  func.func @_bn_relu_kernel(%arg0: i32, %arg1: memref<1x288x128xbf16, #tpu.memory_space<vmem>>, %arg2: memref<1x128xf32, #tpu.memory_space<vmem>>, %arg3: memref<1x128xf32, #tpu.memory_space<vmem>>, %arg4: memref<1x336x128xbf16, #tpu.memory_space<vmem>>) attributes {dimension_semantics = [#tpu.dimension_semantics<parallel>], iteration_bounds = array<i64: 2>, scalar_prefetch = 0 : i64, scratch_operands = 0 : i64, tpu.core_type = #tpu.core_type<tc>, window_params = [{transform_indices = @transform_0, window_bounds = array<i64: 1, 288, 128>}, {pipeline_mode = #tpu.pipeline_mode<synchronous>, transform_indices = @transform_1, window_bounds = array<i64: 1, 128>}, {pipeline_mode = #tpu.pipeline_mode<synchronous>, transform_indices = @transform_2, window_bounds = array<i64: 1, 128>}, {transform_indices = @transform_3, window_bounds = array<i64: 1, 336, 128>}]} {
    %0 = tpu.iota {dimensions = array<i32: 0>} : vector<288x1xi32>
    %c18_i32 = arith.constant 18 : i32
    %c0_i32 = arith.constant 0 : i32
    %1 = arith.cmpi eq, %c18_i32, %c0_i32 : i32
    %c1_i32 = arith.constant 1 : i32
    %2 = arith.select %1, %c1_i32, %c18_i32 : i32
    %3 = vector.broadcast %2 : i32 to vector<288x1xi32>
    %4 = arith.remsi %0, %3 : vector<288x1xi32>
    %c0_i32_0 = arith.constant 0 : i32
    %5 = vector.broadcast %c0_i32_0 : i32 to vector<288x1xi32>
    %6 = arith.cmpi ne, %4, %5 : vector<288x1xi32>
    %c0_i32_1 = arith.constant 0 : i32
    %7 = vector.broadcast %c0_i32_1 : i32 to vector<288x1xi32>
    %8 = arith.cmpi slt, %4, %7 : vector<288x1xi32>
    %c0_i32_2 = arith.constant 0 : i32
    %9 = arith.cmpi slt, %2, %c0_i32_2 : i32
    %10 = vector.broadcast %9 : i1 to vector<288x1xi1>
    %11 = vector.broadcast %10 : vector<288x1xi1> to vector<288x1xi1>
    %12 = arith.xori %8, %11 : vector<288x1xi1>
    %13 = arith.andi %12, %6 : vector<288x1xi1>
    %14 = vector.broadcast %2 : i32 to vector<288x1xi32>
    %15 = arith.addi %4, %14 : vector<288x1xi32>
    %16 = arith.select %13, %15, %4 : vector<288x1xi1>, vector<288x1xi32>
    %c16_i32 = arith.constant 16 : i32
    %17 = vector.broadcast %c16_i32 : i32 to vector<288x1xi32>
    %18 = arith.cmpi slt, %16, %17 : vector<288x1xi32>
    %c0 = arith.constant 0 : index
    %c0_3 = arith.constant 0 : index
    %c0_4 = arith.constant 0 : index
    %19 = vector.load %arg1[%c0, %c0_3, %c0_4] : memref<1x288x128xbf16, #tpu.memory_space<vmem>>, vector<1x288x128xbf16>
    %20 = vector.shape_cast %19 : vector<1x288x128xbf16> to vector<288x128xbf16>
    %21 = arith.extf %20 : vector<288x128xbf16> to vector<288x128xf32>
    %c0_5 = arith.constant 0 : index
    %c0_6 = arith.constant 0 : index
    %22 = vector.load %arg2[%c0_5, %c0_6] : memref<1x128xf32, #tpu.memory_space<vmem>>, vector<1x128xf32>
    %23 = vector.broadcast %22 : vector<1x128xf32> to vector<288x128xf32>
    %24 = arith.mulf %21, %23 : vector<288x128xf32>
    %c0_7 = arith.constant 0 : index
    %c0_8 = arith.constant 0 : index
    %25 = vector.load %arg3[%c0_7, %c0_8] : memref<1x128xf32, #tpu.memory_space<vmem>>, vector<1x128xf32>
    %26 = vector.broadcast %25 : vector<1x128xf32> to vector<288x128xf32>
    %27 = arith.addf %24, %26 : vector<288x128xf32>
    %cst = arith.constant 0.000000e+00 : f32
    %28 = vector.broadcast %cst : f32 to vector<288x128xf32>
    %29 = arith.maximumf %27, %28 : vector<288x128xf32>
    %cst_9 = arith.constant 0.000000e+00 : f32
    %30 = vector.shape_cast %18 : vector<288x1xi1> to vector<288x1xi1>
    %31 = vector.broadcast %30 : vector<288x1xi1> to vector<288x128xi1>
    %32 = vector.broadcast %cst_9 : f32 to vector<288x128xf32>
    %33 = arith.select %31, %29, %32 : vector<288x128xi1>, vector<288x128xf32>
    %34 = arith.truncf %33 : vector<288x128xf32> to vector<288x128xbf16>
    %cst_10 = arith.constant 0.000000e+00 : bf16
    %35 = vector.broadcast %cst_10 : bf16 to vector<24x128xbf16>
    %c0_11 = arith.constant 0 : index
    %c0_12 = arith.constant 0 : index
    %c0_13 = arith.constant 0 : index
    %36 = vector.load %arg4[%c0_11, %c0_12, %c0_13] : memref<1x336x128xbf16, #tpu.memory_space<vmem>>, vector<1x24x128xbf16>
    %37 = vector.shape_cast %36 : vector<1x24x128xbf16> to vector<24x128xbf16>
    %38 = vector.shape_cast %35 : vector<24x128xbf16> to vector<1x24x128xbf16>
    tpu.vector_store %arg4[%c0_11, %c0_12, %c0_13], %38 {strides = array<i32>} : memref<1x336x128xbf16, #tpu.memory_space<vmem>>, vector<1x24x128xbf16>,
    %c0_14 = arith.constant 0 : index
    %c24 = arith.constant 24 : index
    %c0_15 = arith.constant 0 : index
    %39 = vector.load %arg4[%c0_14, %c24, %c0_15] : memref<1x336x128xbf16, #tpu.memory_space<vmem>>, vector<1x288x128xbf16>
    %40 = vector.shape_cast %39 : vector<1x288x128xbf16> to vector<288x128xbf16>
    %41 = vector.shape_cast %34 : vector<288x128xbf16> to vector<1x288x128xbf16>
    tpu.vector_store %arg4[%c0_14, %c24, %c0_15], %41 {strides = array<i32>} : memref<1x336x128xbf16, #tpu.memory_space<vmem>>, vector<1x288x128xbf16>,
    %cst_16 = arith.constant 0.000000e+00 : bf16
    %42 = vector.broadcast %cst_16 : bf16 to vector<24x128xbf16>
    %c0_17 = arith.constant 0 : index
    %c312 = arith.constant 312 : index
    %c0_18 = arith.constant 0 : index
    %43 = vector.load %arg4[%c0_17, %c312, %c0_18] : memref<1x336x128xbf16, #tpu.memory_space<vmem>>, vector<1x24x128xbf16>
    %44 = vector.shape_cast %43 : vector<1x24x128xbf16> to vector<24x128xbf16>
    %45 = vector.shape_cast %42 : vector<24x128xbf16> to vector<1x24x128xbf16>
    tpu.vector_store %arg4[%c0_17, %c312, %c0_18], %45 {strides = array<i32>} : memref<1x336x128xbf16, #tpu.memory_space<vmem>>, vector<1x24x128xbf16>,
    return
  }
  func.func @transform_0(%arg0: i32) -> (i32, i32, i32) {
    %c0_i32 = arith.constant 0 : i32
    %c0_i32_0 = arith.constant 0 : i32
    %c0_i32_1 = arith.constant 0 : i32
    return %arg0, %c0_i32, %c0_i32_0 : i32, i32, i32
  }
  func.func @transform_1(%arg0: i32) -> (i32, i32) {
    %c0_i32 = arith.constant 0 : i32
    %c0_i32_0 = arith.constant 0 : i32
    %c0_i32_1 = arith.constant 0 : i32
    return %c0_i32, %c0_i32_0 : i32, i32
  }
  func.func @transform_2(%arg0: i32) -> (i32, i32) {
    %c0_i32 = arith.constant 0 : i32
    %c0_i32_0 = arith.constant 0 : i32
    %c0_i32_1 = arith.constant 0 : i32
    return %c0_i32, %c0_i32_0 : i32, i32
  }
  func.func @transform_3(%arg0: i32) -> (i32, i32, i32) {
    %c0_i32 = arith.constant 0 : i32
    %c0_i32_0 = arith.constant 0 : i32
    %c0_i32_1 = arith.constant 0 : i32
    return %arg0, %c0_i32, %c0_i32_0 : i32, i32, i32
  }
}

module attributes {stable_mosaic.version = 11 : i64} {
  func.func @_bn_relu_kernel(%arg0: i32, %arg1: memref<1x288x128xbf16, #tpu.memory_space<vmem>>, %arg2: memref<1x128xf32, #tpu.memory_space<vmem>>, %arg3: memref<1x128xf32, #tpu.memory_space<vmem>>, %arg4: memref<1x288x128xf32, #tpu.memory_space<vmem>>) attributes {dimension_semantics = [#tpu.dimension_semantics<parallel>], iteration_bounds = array<i64: 2>, scalar_prefetch = 0 : i64, scratch_operands = 0 : i64, tpu.core_type = #tpu.core_type<tc>, window_params = [{transform_indices = @transform_0, window_bounds = array<i64: 1, 288, 128>}, {pipeline_mode = #tpu.pipeline_mode<synchronous>, transform_indices = @transform_1, window_bounds = array<i64: 1, 128>}, {pipeline_mode = #tpu.pipeline_mode<synchronous>, transform_indices = @transform_2, window_bounds = array<i64: 1, 128>}, {transform_indices = @transform_3, window_bounds = array<i64: 1, 288, 128>}]} {
    %0 = tpu.iota {dimensions = array<i32: 0>} : vector<288x1xi32>
    %c18_i32 = arith.constant 18 : i32
    %c0_i32 = arith.constant 0 : i32
    %1 = arith.cmpi eq, %c18_i32, %c0_i32 : i32
    %c1_i32 = arith.constant 1 : i32
    %2 = arith.select %1, %c1_i32, %c18_i32 : i32
    %3 = vector.broadcast %2 : i32 to vector<288x1xi32>
    %4 = arith.remsi %0, %3 : vector<288x1xi32>
    %c0_i32_0 = arith.constant 0 : i32
    %5 = vector.broadcast %c0_i32_0 : i32 to vector<288x1xi32>
    %6 = arith.cmpi ne, %4, %5 : vector<288x1xi32>
    %c0_i32_1 = arith.constant 0 : i32
    %7 = vector.broadcast %c0_i32_1 : i32 to vector<288x1xi32>
    %8 = arith.cmpi slt, %4, %7 : vector<288x1xi32>
    %c0_i32_2 = arith.constant 0 : i32
    %9 = arith.cmpi slt, %2, %c0_i32_2 : i32
    %10 = vector.broadcast %9 : i1 to vector<288x1xi1>
    %11 = vector.broadcast %10 : vector<288x1xi1> to vector<288x1xi1>
    %12 = arith.xori %8, %11 : vector<288x1xi1>
    %13 = arith.andi %12, %6 : vector<288x1xi1>
    %14 = vector.broadcast %2 : i32 to vector<288x1xi32>
    %15 = arith.addi %4, %14 : vector<288x1xi32>
    %16 = arith.select %13, %15, %4 : vector<288x1xi1>, vector<288x1xi32>
    %c16_i32 = arith.constant 16 : i32
    %17 = vector.broadcast %c16_i32 : i32 to vector<288x1xi32>
    %18 = arith.cmpi slt, %16, %17 : vector<288x1xi32>
    %c0 = arith.constant 0 : index
    %c0_3 = arith.constant 0 : index
    %c0_4 = arith.constant 0 : index
    %19 = vector.load %arg1[%c0, %c0_3, %c0_4] : memref<1x288x128xbf16, #tpu.memory_space<vmem>>, vector<1x288x128xbf16>
    %20 = vector.shape_cast %19 : vector<1x288x128xbf16> to vector<288x128xbf16>
    %21 = arith.extf %20 : vector<288x128xbf16> to vector<288x128xf32>
    %c0_5 = arith.constant 0 : index
    %c0_6 = arith.constant 0 : index
    %22 = vector.load %arg2[%c0_5, %c0_6] : memref<1x128xf32, #tpu.memory_space<vmem>>, vector<1x128xf32>
    %23 = vector.broadcast %22 : vector<1x128xf32> to vector<288x128xf32>
    %24 = arith.mulf %21, %23 : vector<288x128xf32>
    %c0_7 = arith.constant 0 : index
    %c0_8 = arith.constant 0 : index
    %25 = vector.load %arg3[%c0_7, %c0_8] : memref<1x128xf32, #tpu.memory_space<vmem>>, vector<1x128xf32>
    %26 = vector.broadcast %25 : vector<1x128xf32> to vector<288x128xf32>
    %27 = arith.addf %24, %26 : vector<288x128xf32>
    %cst = arith.constant 0.000000e+00 : f32
    %28 = vector.broadcast %cst : f32 to vector<288x128xf32>
    %29 = arith.maximumf %27, %28 : vector<288x128xf32>
    %cst_9 = arith.constant 0.000000e+00 : f32
    %30 = vector.shape_cast %18 : vector<288x1xi1> to vector<288x1xi1>
    %31 = vector.broadcast %30 : vector<288x1xi1> to vector<288x128xi1>
    %32 = vector.broadcast %cst_9 : f32 to vector<288x128xf32>
    %33 = arith.select %31, %29, %32 : vector<288x128xi1>, vector<288x128xf32>
    %c0_10 = arith.constant 0 : index
    %c0_11 = arith.constant 0 : index
    %c0_12 = arith.constant 0 : index
    %34 = vector.load %arg4[%c0_10, %c0_11, %c0_12] : memref<1x288x128xf32, #tpu.memory_space<vmem>>, vector<1x288x128xf32>
    %35 = vector.shape_cast %34 : vector<1x288x128xf32> to vector<288x128xf32>
    %36 = vector.shape_cast %33 : vector<288x128xf32> to vector<1x288x128xf32>
    tpu.vector_store %arg4[%c0_10, %c0_11, %c0_12], %36 {strides = array<i32>} : memref<1x288x128xf32, #tpu.memory_space<vmem>>, vector<1x288x128xf32>,
    return
  }
  func.func @transform_0(%arg0: i32) -> (i32, i32, i32) {
    %c0_i32 = arith.constant 0 : i32
    %c0_i32_0 = arith.constant 0 : i32
    %c0_i32_1 = arith.constant 0 : i32
    return %arg0, %c0_i32, %c0_i32_0 : i32, i32, i32
  }
  func.func @transform_1(%arg0: i32) -> (i32, i32) {
    %c0_i32 = arith.constant 0 : i32
    %c0_i32_0 = arith.constant 0 : i32
    %c0_i32_1 = arith.constant 0 : i32
    return %c0_i32, %c0_i32_0 : i32, i32
  }
  func.func @transform_2(%arg0: i32) -> (i32, i32) {
    %c0_i32 = arith.constant 0 : i32
    %c0_i32_0 = arith.constant 0 : i32
    %c0_i32_1 = arith.constant 0 : i32
    return %c0_i32, %c0_i32_0 : i32, i32
  }
  func.func @transform_3(%arg0: i32) -> (i32, i32, i32) {
    %c0_i32 = arith.constant 0 : i32
    %c0_i32_0 = arith.constant 0 : i32
    %c0_i32_1 = arith.constant 0 : i32
    return %arg0, %c0_i32, %c0_i32_0 : i32, i32, i32
  }
}

</mosaic_0001>

<bundles_post_ra>
// kernel: bridge_forward.5
= control target key start
LH: loop header
LB: loop body
LE: loop exit
PB: predicated region body
PF: predicated region fallthrough
CT: control target
= control target key end

     0   :  { %s1752_s12 = smov 0   ;;  %s2171_s0 = inlined_call_operand.vmem [shape: bf16[2,288,128], index: 0, kind: input, shape index: {}]   ;;  %s2172_s1 = inlined_call_operand.vmem [shape: f32[1,128], index: 1, kind: input, shape index: {}]   ;;  %s2173_s2 = inlined_call_operand.vmem [shape: f32[1,128], index: 2, kind: input, shape index: {}]   ;;  %s2174_s3 = inlined_call_operand.vmem [shape: bf16[2,336,128], index: 3, kind: output, shape index: {}]  }
   0x1 LB: > { %s1364_s13 = sadd.s32 4294967295, %s1729_s12   ;;  %p1368_p0 = scmp.ge.s32.totalorder %s1729_s12, 1  ;;  %s1729_s12 = sphi %s1752_s12, %s13_s12  }
   0x2   : > { %p137_p1 = scmp.lt.s32.totalorder %s1729_s12, 3 }
   0x4   : > { %p138_p2 = pnand %p1368_p0, %p137_p1 }
   0x5   : > { %p161_p3 = scmp.lt.s32.totalorder (!%p138_p2), %s1364_s13, 1  ;;  %v172_v0 = vlaneseq (!%p138_p2)  ;;  %v1731_v14 = vmov (!%p138_p2), 0   ;;  %v1805_v15 = vld [vmem:[%s2172_s1] ss:$0 sm:$0xff] (!%p138_p2) }
   0x6   : > { %141 = sbr.rel (%p138_p2) target bundleno = 165 (0xa5), region = 32  ;;  %v1828_v31 = vld [vmem:[%s2173_s2] ss:$0 sm:$0xff] (!%p138_p2) }
   0x7   : > { %v1760_v1 = vshrl.u32 (!%p138_p2), %v172_v0, 7 }
   0x9   : > { %v1763_v2 = vmul.u32.u64.low (!%p138_p2), 3817748708, %v1760_v1  ;;  %v1764_v3 = vmul.u32.u64.high 3817748708, %v1760_v1, %v1763_v2  ;;  %v174_v4 = vadd.s32 (!%p138_p2), 8, %v1760_v1  ;;  %v175_v5 = vadd.s32 (!%p138_p2), 16, %v1760_v1 }
   0xa   : > { %v1769_v6 = vadd.s32 (!%p138_p2), 24, %v1760_v1  ;;  %v1772_v7 = vadd.s32 (!%p138_p2), 32, %v1760_v1  ;;  %v1775_v8 = vadd.s32 (!%p138_p2), 40, %v1760_v1  ;;  %v1778_v9 = vadd.s32 (!%p138_p2), 48, %v1760_v1 }
   0xb   : > { %v1785_v10 = vmul.u32.u64.low (!%p138_p2), 3817748708, %v174_v4  ;;  %v1786_v11 = vmul.u32.u64.high 3817748708, %v174_v4, %v1785_v10  ;;  %v1788_v12 = vmul.u32.u64.low (!%p138_p2), 3817748708, %v175_v5  ;;  %v1789_v13 = vmul.u32.u64.high 3817748708, %v175_v5, %v1788_v12 }
   0xc   : > { %v1808_v16 = vmul.u32.u64.low (!%p138_p2), 3817748708, %v1769_v6  ;;  %v1809_v17 = vmul.u32.u64.high 3817748708, %v1769_v6, %v1808_v16  ;;  %v1812_v18 = vmul.u32.u64.low (!%p138_p2), 3817748708, %v1772_v7  ;;  %v1813_v19 = vmul.u32.u64.high 3817748708, %v1772_v7, %v1812_v18 }
   0xd   : > { %s2184_s13 = smov (!%p161_p3, %s1364_s13), 1  ;;  %v215_v20 = vshrl.u32 %v1764_v3, 4  ;;  %v1822_v24 = vmul.u32.u64.low 3817748708, %v1775_v8  ;;  %v1823_v25 = vmul.u32.u64.high 3817748708, %v1775_v8, %v1822_v24  ;;  %v226_v32 = vshrl.u32 %v1786_v11, 4 }
   0xe   : > { %s1639_s14 = smul.u32 168, %s2184_s13  ;;  %v237_v33 = vshrl.u32 %v1789_v13, 4  ;;  %v248_v38 = vshrl.u32 %v1809_v17, 4  ;;  %v259_v42 = vshrl.u32 %v1813_v19, 4  ;;  %v180_v24 = vadd.s32 56, %v1760_v1 }
   0xf   : > { %s1638_s15 = smul.u32 144, %s2184_s13  ;;  %v216_v30 = vmul.u32 18, %v215_v20  ;;  %v227_v40 = vmul.u32 18, %v226_v32  ;;  %v270_v12 = vshrl.u32 %v1823_v25, 4  ;;  %v181_v25 = vadd.s32 64, %v1760_v1 }
  0x10   : > { %s1783_s18 = scalar_lea.vmem %s2174_s3, %s1639_s14  ;;  %v238_v41 = vmul.u32 18, %v237_v33  ;;  %v249_v46 = vmul.u32 18, %v248_v38 }
  0x11   : > { %1141 = vst [vmem:[%s1783_s18] sm:$0xf] %v1731_v14  ;;  %1142 = vst [vmem:[%s1783_s18 + $0x4] sm:$0xf] %v1731_v14  ;;  %s1800_s21 = scalar_lea.vmem %s2171_s0, %s1638_s15  ;;  %v217_v39 = vsub.s32 %v1760_v1, %v216_v30  ;;  %v228_v48 = vsub.s32 %v174_v4, %v227_v40  ;;  %v260_v59 = vmul.u32 18, %v259_v42  ;;  %v271_v20 = vmul.u32 18, %v270_v12 }
  0x12   : > { %1143 = vst [vmem:[%s1783_s18 + $0x8] sm:$0xf] %v1731_v14  ;;  %1306 = vst [vmem:[%s1783_s18 + $0x9c] sm:$0xf] %v1731_v14  ;;  %v1448_v21 = vld [vmem:[%s1800_s21] sm:$0xff]   ;;  %v1604_v22 = vld [vmem:[%s1800_s21 + $0x8] sm:$0xff]   ;;  %v239_v50 = vsub.s32 %v175_v5, %v238_v41  ;;  %v250_v58 = vsub.s32 %v1769_v6, %v249_v46 }
  0x13   : > { %1307 = vst [vmem:[%s1783_s18 + $0xa0] sm:$0xf] %v1731_v14  ;;  %1308 = vst [vmem:[%s1783_s18 + $0xa4] sm:$0xf] %v1731_v14  ;;  %v1819_v23 = vld [vmem:[%s1800_s21 + $0x10] sm:$0xff]   ;;  %v1449_v26 = vunpack.c.l.bf16 %v1448_v21  ;;  %v1450_v27 = vunpack.c.h.bf16 %v1448_v21  ;;  %v1453_v28 = vunpack.c.l.bf16 %v1604_v22  ;;  %v1454_v29 = vunpack.c.h.bf16 %v1604_v22  ;;  %v1606_v13 = vld [vmem:[%s1800_s21 + $0x18] sm:$0xff]  }
  0x14   : > { %v1457_v34 = vunpack.c.l.bf16 %v1819_v23  ;;  %vm605_vm0 = vcmp.ne.s32.totalorder %v217_v39, 0  ;;  %vm641_vm1 = vcmp.lt.s32.totalorder %v217_v39, 0  ;;  %v713_v47 = vadd.s32 18, %v217_v39 }
  0x15   : > { %v900_v35 = vmul.f32 %v1449_v26, %v1805_v15  ;;  %v901_v36 = vmul.f32 %v1450_v27, %v1805_v15  ;;  %v902_v37 = vmul.f32 %v1453_v28, %v1805_v15  ;;  %vm677_vm2 = vmand %vm641_vm1, %vm605_vm0  ;;  %vm606_vm3 = vcmp.ne.s32.totalorder %v228_v48, 0  ;;  %v1607_v26 = vld [vmem:[%s1800_s21 + $0x20] sm:$0xff]  }
  0x16   : > { %v749_v53 = vsel %vm677_vm2, %v713_v47, %v217_v39  ;;  %vm642_vm4 = vcmp.lt.s32.totalorder %v228_v48, 0  ;;  %v714_v54 = vadd.s32 18, %v228_v48  ;;  %vm607_vm6 = vcmp.ne.s32.totalorder %v239_v50, 0 }
  0x17   : > { %v943_v43 = vadd.f32 %v1828_v31, %v900_v35  ;;  %v944_v44 = vadd.f32 %v1828_v31, %v901_v36  ;;  %v945_v45 = vadd.f32 %v1828_v31, %v902_v37  ;;  %vm785_vm5 = vcmp.lt.s32.totalorder %v749_v53, 16  ;;  %vm678_vm8 = vmand %vm642_vm4, %vm606_vm3 }
  0x18   : > { %vm643_vm7 = vcmp.lt.s32.totalorder %v239_v50, 0  ;;  %v715_v55 = vadd.s32 18, %v239_v50  ;;  %v750_v57 = vsel %vm678_vm8, %v714_v54, %v228_v48  ;;  %v903_v62 = vmul.f32 %v1454_v29, %v1805_v15 }
  0x19   : > { %v979_v49 = vmax.f32 %v943_v43, 0.0  ;;  %v980_v51 = vmax.f32 %v944_v44, 0.0  ;;  %v981_v52 = vmax.f32 %v945_v45, 0.0  ;;  %vm679_vm9 = vmand %vm643_vm7, %vm607_vm6  ;;  %vm786_vm10 = vcmp.lt.s32.totalorder %v750_v57, 16 }
  0x1a   : > { %v751_v61 = vsel %vm679_vm9, %v715_v55, %v239_v50  ;;  %v261_v0 = vsub.s32 %v1772_v7, %v260_v59  ;;  %vm608_vm12 = vcmp.ne.s32.totalorder %v250_v58, 0  ;;  %vm644_vm13 = vcmp.lt.s32.totalorder %v250_v58, 0 }
  0x1b   : > { %v1087_v56 = vsel %vm785_vm5, %v979_v49, 0.0  ;;  %vm787_vm11 = vcmp.lt.s32.totalorder %v751_v61, 16  ;;  %v1088_v63 = vsel %vm786_vm10, %v980_v51, 0.0  ;;  %v716_v3 = vadd.s32 18, %v250_v58  ;;  %vm680_vm0 = vmand %vm644_vm13, %vm608_vm12  ;;  %v1608_v51 = vld [vmem:[%s1800_s21 + $0x28] sm:$0xff]  }
  0x1c   : > { %v1411_v60 = vpack.c.bf16 %v1087_v56, %v1087_v56  ;;  %v1089_v2 = vsel %vm787_vm11, %v981_v52, 0.0  ;;  %v904_v4 = vmul.f32 %v1457_v34, %v1805_v15  ;;  %vm609_vm14 = vcmp.ne.s32.totalorder %v261_v0, 0 }
  0x1d   : > { %v1522_v5 = vpack.c.bf16 %v1089_v2, %v1088_v63  ;;  %vm645_vm15 = vcmp.lt.s32.totalorder %v261_v0, 0  ;;  %v717_v6 = vadd.s32 18, %v261_v0  ;;  %v752_v10 = vsel %vm680_vm0, %v716_v3, %v250_v58 }
  0x1e   : > { %1270 = vst [vmem:[%s1783_s18 + $0xc] sm:$0xf] %v1411_v60  ;;  %vm681_vm1 = vmand %vm645_vm15, %vm609_vm14  ;;  %v946_v11 = vadd.f32 %v1828_v31, %v903_v62  ;;  %v947_v7 = vadd.f32 %v1828_v31, %v904_v4  ;;  %vm788_vm2 = vcmp.lt.s32.totalorder %v752_v10, 16  ;;  %v1458_v21 = vunpack.c.h.bf16 %v1819_v23 }
  0x1f   : > { %1621 = vst [vmem:[%s1783_s18 + $0x10] sm:$0xff] %v1522_v5   ;;  %v753_v14 = vsel %vm681_vm1, %v717_v6, %v261_v0  ;;  %v1853_v16 = vmul.u32.u64.low 3817748708, %v1778_v9  ;;  %v1854_v17 = vmul.u32.u64.high 3817748708, %v1778_v9, %v1853_v16  ;;  %v1461_v22 = vunpack.c.l.bf16 %v1606_v13 }
  0x20   : > { %vm789_vm3 = vcmp.lt.s32.totalorder %v753_v14, 16  ;;  %v982_v18 = vmax.f32 %v946_v11, 0.0  ;;  %v983_v19 = vmax.f32 %v947_v7, 0.0  ;;  %v272_v29 = vsub.s32 %v1775_v8, %v271_v20 }
  0x21   : > { %v1462_v30 = vunpack.c.h.bf16 %v1606_v13  ;;  %v281_v33 = vshrl.u32 %v1854_v17, 4  ;;  %v905_v34 = vmul.f32 %v1458_v21, %v1805_v15  ;;  %v906_v35 = vmul.f32 %v1461_v22, %v1805_v15 }
  0x22   : > { %v1090_v27 = vsel %vm788_vm2, %v982_v18, 0.0  ;;  %v1091_v28 = vsel %vm789_vm3, %v983_v19, 0.0  ;;  %vm610_vm4 = vcmp.ne.s32.totalorder %v272_v29, 0  ;;  %vm646_vm5 = vcmp.lt.s32.totalorder %v272_v29, 0 }
  0x23   : > { %v1527_v32 = vpack.c.bf16 %v1091_v28, %v1090_v27  ;;  %v718_v23 = vadd.s32 18, %v272_v29  ;;  %v1465_v36 = vunpack.c.l.bf16 %v1607_v26  ;;  %v282_v37 = vmul.u32 18, %v281_v33  ;;  %vm682_vm6 = vmand %vm646_vm5, %vm610_vm4 }
  0x24   : > { %v948_v38 = vadd.f32 %v1828_v31, %v905_v34  ;;  %v949_v8 = vadd.f32 %v1828_v31, %v906_v35  ;;  %v907_v39 = vmul.f32 %v1462_v30, %v1805_v15  ;;  %v182_v56 = vadd.s32 72, %v1760_v1 }
  0x25   : > { %1622 = vst [vmem:[%s1783_s18 + $0x18] sm:$0xff] %v1527_v32   ;;  %v754_v40 = vsel %vm682_vm6, %v718_v23, %v272_v29  ;;  %v1868_v41 = vmul.u32.u64.low 3817748708, %v180_v24  ;;  %v1869_v42 = vmul.u32.u64.high 3817748708, %v180_v24, %v1868_v41  ;;  %v908_v43 = vmul.f32 %v1465_v36, %v1805_v15 }
  0x26   : > { %v283_v44 = vsub.s32 %v1778_v9, %v282_v37  ;;  %vm790_vm7 = vcmp.lt.s32.totalorder %v754_v40, 16  ;;  %v984_v45 = vmax.f32 %v948_v38, 0.0  ;;  %v985_v46 = vmax.f32 %v949_v8, 0.0 }
  0x27   : > { %v1873_v47 = vmul.u32.u64.low 3817748708, %v181_v25  ;;  %v1874_v48 = vmul.u32.u64.high 3817748708, %v181_v25, %v1873_v47  ;;  %v950_v49 = vadd.f32 %v1828_v31, %v907_v39  ;;  %v951_v50 = vadd.f32 %v1828_v31, %v908_v43 }
  0x28   : > { %vm611_vm8 = vcmp.ne.s32.totalorder %v283_v44, 0  ;;  %vm647_vm9 = vcmp.lt.s32.totalorder %v283_v44, 0  ;;  %v719_v52 = vadd.s32 18, %v283_v44  ;;  %v1092_v53 = vsel %vm790_vm7, %v984_v45, 0.0 }
  0x29   : > { %vm683_vm10 = vmand %vm647_vm9, %vm611_vm8  ;;  %v292_v54 = vshrl.u32 %v1869_v42, 4  ;;  %v986_v55 = vmax.f32 %v950_v49, 0.0  ;;  %v987_v9 = vmax.f32 %v951_v50, 0.0  ;;  %v183_v58 = vadd.s32 80, %v1760_v1 }
  0x2a   : > { %v755_v57 = vsel %vm683_vm10, %v719_v52, %v283_v44  ;;  %v1466_v59 = vunpack.c.h.bf16 %v1607_v26  ;;  %v1469_v60 = vunpack.c.l.bf16 %v1608_v51  ;;  %v303_v62 = vshrl.u32 %v1874_v48, 4  ;;  %v1902_v26 = vld [vmem:[%s1800_s21 + $0x30] sm:$0xff]  }
  0x2b   : > { %vm791_vm11 = vcmp.lt.s32.totalorder %v755_v57, 16  ;;  %v293_v61 = vmul.u32 18, %v292_v54  ;;  %v1884_v63 = vadd.s32 88, %v1760_v1  ;;  %v1896_v14 = vadd.s32 96, %v1760_v1 }
  0x2c   : > { %v1093_v0 = vsel %vm791_vm11, %v985_v46, 0.0  ;;  %v1886_v2 = vmul.u32.u64.low 3817748708, %v182_v56  ;;  %v1887_v3 = vmul.u32.u64.high 3817748708, %v182_v56, %v1886_v2  ;;  %v909_v4 = vmul.f32 %v1466_v59, %v1805_v15 }
  0x2d   : > { %v1532_v5 = vpack.c.bf16 %v1093_v0, %v1092_v53  ;;  %v294_v6 = vsub.s32 %v180_v24, %v293_v61  ;;  %v304_v10 = vmul.u32 18, %v303_v62  ;;  %v910_v11 = vmul.f32 %v1469_v60, %v1805_v15  ;;  %v1610_v61 = vld [vmem:[%s1800_s21 + $0x38] sm:$0xff]  }
  0x2e   : > { %v1891_v7 = vmul.u32.u64.low 3817748708, %v183_v58  ;;  %v1892_v12 = vmul.u32.u64.high 3817748708, %v183_v58, %v1891_v7  ;;  %v952_v13 = vadd.f32 %v1828_v31, %v909_v4  ;;  %v314_v18 = vshrl.u32 %v1887_v3, 4 }
  0x2f   : > { %1623 = vst [vmem:[%s1783_s18 + $0x20] sm:$0xff] %v1532_v5   ;;  %v305_v16 = vsub.s32 %v181_v25, %v304_v10  ;;  %vm612_vm12 = vcmp.ne.s32.totalorder %v294_v6, 0  ;;  %vm648_vm13 = vcmp.lt.s32.totalorder %v294_v6, 0  ;;  %v720_v17 = vadd.s32 18, %v294_v6 }
  0x30   : > { %vm684_vm14 = vmand %vm648_vm13, %vm612_vm12  ;;  %v953_v19 = vadd.f32 %v1828_v31, %v910_v11  ;;  %v988_v20 = vmax.f32 %v952_v13, 0.0  ;;  %v1470_v21 = vunpack.c.h.bf16 %v1608_v51  ;;  %v315_v27 = vmul.u32 18, %v314_v18  ;;  %v1952_v18 = vld [vmem:[%s1800_s21 + $0x40] sm:$0xff]  }
  0x31   : > { %vm613_vm15 = vcmp.ne.s32.totalorder %v305_v16, 0  ;;  %vm649_vm0 = vcmp.lt.s32.totalorder %v305_v16, 0  ;;  %v721_v22 = vadd.s32 18, %v305_v16  ;;  %v756_v24 = vsel %vm684_vm14, %v720_v17, %v294_v6 }
  0x32   : > { %vm685_vm1 = vmand %vm649_vm0, %vm613_vm15  ;;  %vm792_vm2 = vcmp.lt.s32.totalorder %v756_v24, 16  ;;  %v325_v25 = vshrl.u32 %v1892_v12, 4  ;;  %v989_v28 = vmax.f32 %v953_v19, 0.0  ;;  %v316_v34 = vsub.s32 %v182_v56, %v315_v27 }
  0x33   : > { %v757_v29 = vsel %vm685_vm1, %v721_v22, %v305_v16  ;;  %v1094_v30 = vsel %vm792_vm2, %v986_v55, 0.0  ;;  %v1906_v32 = vmul.u32.u64.low 3817748708, %v1884_v63  ;;  %v1907_v33 = vmul.u32.u64.high 3817748708, %v1884_v63, %v1906_v32 }
  0x34   : > { %vm793_vm3 = vcmp.lt.s32.totalorder %v757_v29, 16  ;;  %v326_v35 = vmul.u32 18, %v325_v25  ;;  %v1473_v23 = vunpack.c.l.bf16 %v1902_v26  ;;  %v911_v8 = vmul.f32 %v1470_v21, %v1805_v15 }
  0x35   : > { %v1095_v36 = vsel %vm793_vm3, %v987_v9, 0.0  ;;  %v1911_v37 = vmul.u32.u64.low 3817748708, %v1896_v14  ;;  %v1912_v38 = vmul.u32.u64.high 3817748708, %v1896_v14, %v1911_v37  ;;  %vm614_vm4 = vcmp.ne.s32.totalorder %v316_v34, 0 }
  0x36   : > { %v1537_v39 = vpack.c.bf16 %v1095_v36, %v1094_v30  ;;  %v327_v40 = vsub.s32 %v183_v58, %v326_v35  ;;  %vm650_vm5 = vcmp.lt.s32.totalorder %v316_v34, 0  ;;  %v722_v42 = vadd.s32 18, %v316_v34 }
  0x37   : > { %vm1915_vm6 = vmand %vm650_vm5, %vm614_vm4  ;;  %v336_v43 = vshrl.u32 %v1907_v33, 4  ;;  %v912_v44 = vmul.f32 %v1473_v23, %v1805_v15  ;;  %v954_v45 = vadd.f32 %v1828_v31, %v911_v8  ;;  %v186_v47 = vadd.s32 104, %v1760_v1 }
  0x38   : > { %1624 = vst [vmem:[%s1783_s18 + $0x28] sm:$0xff] %v1537_v39   ;;  %vm615_vm7 = vcmp.ne.s32.totalorder %v327_v40, 0  ;;  %vm651_vm8 = vcmp.lt.s32.totalorder %v327_v40, 0  ;;  %v723_v46 = vadd.s32 18, %v327_v40  ;;  %v758_v48 = vsel %vm1915_vm6, %v722_v42, %v316_v34 }
  0x39   : > { %vm687_vm9 = vmand %vm651_vm8, %vm615_vm7  ;;  %v337_v49 = vmul.u32 18, %v336_v43  ;;  %v347_v50 = vshrl.u32 %v1912_v38, 4  ;;  %v955_v51 = vadd.f32 %v1828_v31, %v912_v44  ;;  %vm794_vm10 = vcmp.lt.s32.totalorder %v758_v48, 16 }
  0x3a   : > { %v759_v52 = vsel %vm687_vm9, %v723_v46, %v327_v40  ;;  %v990_v53 = vmax.f32 %v954_v45, 0.0  ;;  %v187_v54 = vadd.s32 112, %v1760_v1  ;;  %v1096_v55 = vsel %vm794_vm10, %v988_v20, 0.0 }
  0x3b   : > { %vm795_vm11 = vcmp.lt.s32.totalorder %v759_v52, 16  ;;  %v338_v9 = vsub.s32 %v1884_v63, %v337_v49  ;;  %v348_v56 = vmul.u32 18, %v347_v50  ;;  %v991_v58 = vmax.f32 %v955_v51, 0.0  ;;  %v1612_v52 = vld [vmem:[%s1800_s21 + $0x48] sm:$0xff]  }
  0x3c   : > { %v1097_v57 = vsel %vm795_vm11, %v989_v28, 0.0  ;;  %v1930_v59 = vmul.u32.u64.low 3817748708, %v186_v47  ;;  %v1931_v60 = vmul.u32.u64.high 3817748708, %v186_v47, %v1930_v59  ;;  %v1474_v63 = vunpack.c.h.bf16 %v1902_v26 }
  0x3d   : > { %v1542_v62 = vpack.c.bf16 %v1097_v57, %v1096_v55  ;;  %v349_v0 = vsub.s32 %v1896_v14, %v348_v56  ;;  %vm616_vm12 = vcmp.ne.s32.totalorder %v338_v9, 0  ;;  %vm652_vm13 = vcmp.lt.s32.totalorder %v338_v9, 0 }
  0x3e   : > { %vm1935_vm14 = vmand %vm652_vm13, %vm616_vm12  ;;  %v724_v3 = vadd.s32 18, %v338_v9  ;;  %v1939_v4 = vmul.u32.u64.low 3817748708, %v187_v54  ;;  %v1940_v5 = vmul.u32.u64.high 3817748708, %v187_v54, %v1939_v4  ;;  %v1477_v10 = vunpack.c.l.bf16 %v1610_v61 }
  0x3f   : > { %1625 = vst [vmem:[%s1783_s18 + $0x30] sm:$0xff] %v1542_v62   ;;  %vm617_vm15 = vcmp.ne.s32.totalorder %v349_v0, 0  ;;  %vm653_vm0 = vcmp.lt.s32.totalorder %v349_v0, 0  ;;  %v725_v6 = vadd.s32 18, %v349_v0  ;;  %v358_v7 = vshrl.u32 %v1931_v60, 4 }
  0x40   : > { %vm689_vm1 = vmand %vm653_vm0, %vm617_vm15  ;;  %v760_v11 = vsel %vm1935_vm14, %v724_v3, %v338_v9  ;;  %v913_v12 = vmul.f32 %v1474_v63, %v1805_v15  ;;  %v188_v13 = vadd.s32 120, %v1760_v1  ;;  %v914_v16 = vmul.f32 %v1477_v10, %v1805_v15 }
  0x41   : > { %v761_v14 = vsel %vm689_vm1, %v725_v6, %v349_v0  ;;  %vm796_vm2 = vcmp.lt.s32.totalorder %v760_v11, 16  ;;  %v189_v17 = vadd.s32 128, %v1760_v1  ;;  %v359_v20 = vmul.u32 18, %v358_v7 }
  0x42   : > { %vm797_vm3 = vcmp.lt.s32.totalorder %v761_v14, 16  ;;  %v1098_v19 = vsel %vm796_vm2, %v990_v53, 0.0  ;;  %v369_v21 = vshrl.u32 %v1940_v5, 4  ;;  %v956_v24 = vadd.f32 %v1828_v31, %v913_v12 }
  0x43   : > { %v1099_v22 = vsel %vm797_vm3, %v991_v58, 0.0  ;;  %v957_v26 = vadd.f32 %v1828_v31, %v914_v16  ;;  %v1478_v27 = vunpack.c.h.bf16 %v1610_v61  ;;  %v360_v28 = vsub.s32 %v186_v47, %v359_v20 }
  0x44   : > { %v1547_v25 = vpack.c.bf16 %v1099_v22, %v1098_v19  ;;  %v370_v29 = vmul.u32 18, %v369_v21  ;;  %v1481_v30 = vunpack.c.l.bf16 %v1952_v18  ;;  %v992_v32 = vmax.f32 %v956_v24, 0.0  ;;  %v1613_v22 = vld [vmem:[%s1800_s21 + $0x50] sm:$0xff]  }
  0x45   : > { %v993_v33 = vmax.f32 %v957_v26, 0.0  ;;  %v1958_v34 = vmul.u32.u64.low 3817748708, %v188_v13  ;;  %v1959_v35 = vmul.u32.u64.high 3817748708, %v188_v13, %v1958_v34  ;;  %vm618_vm4 = vcmp.ne.s32.totalorder %v360_v28, 0 }
  0x46   : > { %1626 = vst [vmem:[%s1783_s18 + $0x38] sm:$0xff] %v1547_v25   ;;  %v371_v23 = vsub.s32 %v187_v54, %v370_v29  ;;  %vm654_vm5 = vcmp.lt.s32.totalorder %v360_v28, 0  ;;  %v726_v36 = vadd.s32 18, %v360_v28  ;;  %v915_v8 = vmul.f32 %v1478_v27, %v1805_v15 }
  0x47   : > { %vm690_vm6 = vmand %vm654_vm5, %vm618_vm4  ;;  %v1962_v37 = vmul.u32.u64.low 3817748708, %v189_v17  ;;  %v1963_v38 = vmul.u32.u64.high 3817748708, %v189_v17, %v1962_v37  ;;  %v916_v39 = vmul.f32 %v1481_v30, %v1805_v15  ;;  %v380_v42 = vshrl.u32 %v1959_v35, 4 }
  0x48   : > { %vm619_vm7 = vcmp.ne.s32.totalorder %v371_v23, 0  ;;  %vm655_vm8 = vcmp.lt.s32.totalorder %v371_v23, 0  ;;  %v727_v40 = vadd.s32 18, %v371_v23  ;;  %v762_v41 = vsel %vm690_vm6, %v726_v36, %v360_v28 }
  0x49   : > { %vm691_vm9 = vmand %vm655_vm8, %vm619_vm7  ;;  %vm798_vm10 = vcmp.lt.s32.totalorder %v762_v41, 16  ;;  %v958_v43 = vadd.f32 %v1828_v31, %v915_v8  ;;  %v959_v44 = vadd.f32 %v1828_v31, %v916_v39  ;;  %v190_v47 = vadd.s32 136, %v1760_v1 }
  0x4a   : > { %v763_v45 = vsel %vm691_vm9, %v727_v40, %v371_v23  ;;  %v1100_v46 = vsel %vm798_vm10, %v992_v32, 0.0  ;;  %v191_v48 = vadd.s32 144, %v1760_v1  ;;  %v381_v49 = vmul.u32 18, %v380_v42 }
  0x4b   : > { %vm799_vm11 = vcmp.lt.s32.totalorder %v763_v45, 16  ;;  %v391_v50 = vshrl.u32 %v1963_v38, 4  ;;  %v994_v51 = vmax.f32 %v958_v43, 0.0  ;;  %v995_v54 = vmax.f32 %v959_v44, 0.0  ;;  %v1614_v43 = vld [vmem:[%s1800_s21 + $0x58] sm:$0xff]  }
  0x4c   : > { %v1101_v53 = vsel %vm799_vm11, %v993_v33, 0.0  ;;  %v1974_v55 = vmul.u32.u64.low 3817748708, %v190_v47  ;;  %v1975_v9 = vmul.u32.u64.high 3817748708, %v190_v47, %v1974_v55  ;;  %v382_v57 = vsub.s32 %v188_v13, %v381_v49 }
  0x4d   : > { %v1552_v56 = vpack.c.bf16 %v1101_v53, %v1100_v46  ;;  %v392_v58 = vmul.u32 18, %v391_v50  ;;  %v1482_v59 = vunpack.c.h.bf16 %v1952_v18  ;;  %v1485_v62 = vunpack.c.l.bf16 %v1612_v52 }
  0x4e   : > { %v1978_v60 = vmul.u32.u64.low 3817748708, %v191_v48  ;;  %v1979_v61 = vmul.u32.u64.high 3817748708, %v191_v48, %v1978_v60  ;;  %v1982_v0 = vadd.s32 152, %v1760_v1  ;;  %vm620_vm12 = vcmp.ne.s32.totalorder %v382_v57, 0 }
  0x4f   : > { %1627 = vst [vmem:[%s1783_s18 + $0x40] sm:$0xff] %v1552_v56   ;;  %v393_v2 = vsub.s32 %v189_v17, %v392_v58  ;;  %vm656_vm13 = vcmp.lt.s32.totalorder %v382_v57, 0  ;;  %v728_v3 = vadd.s32 18, %v382_v57  ;;  %v402_v4 = vshrl.u32 %v1975_v9, 4 }
  0x50   : > { %vm692_vm14 = vmand %vm656_vm13, %vm620_vm12  ;;  %v917_v5 = vmul.f32 %v1482_v59, %v1805_v15  ;;  %v918_v63 = vmul.f32 %v1485_v62, %v1805_v15  ;;  %v1989_v6 = vadd.s32 160, %v1760_v1  ;;  %v413_v12 = vshrl.u32 %v1979_v61, 4 }
  0x51   : > { %vm621_vm15 = vcmp.ne.s32.totalorder %v393_v2, 0  ;;  %vm657_vm0 = vcmp.lt.s32.totalorder %v393_v2, 0  ;;  %v729_v10 = vadd.s32 18, %v393_v2  ;;  %v764_v11 = vsel %vm692_vm14, %v728_v3, %v382_v57 }
  0x52   : > { %vm693_vm1 = vmand %vm657_vm0, %vm621_vm15  ;;  %vm800_vm2 = vcmp.lt.s32.totalorder %v764_v11, 16  ;;  %v403_v7 = vmul.u32 18, %v402_v4  ;;  %v960_v13 = vadd.f32 %v1828_v31, %v917_v5  ;;  %v961_v17 = vadd.f32 %v1828_v31, %v918_v63 }
  0x53   : > { %v765_v14 = vsel %vm693_vm1, %v729_v10, %v393_v2  ;;  %v1102_v16 = vsel %vm800_vm2, %v994_v51, 0.0  ;;  %v1486_v18 = vunpack.c.h.bf16 %v1612_v52  ;;  %v414_v20 = vmul.u32 18, %v413_v12  ;;  %v1615_v12 = vld [vmem:[%s1800_s21 + $0x60] sm:$0xff]  }
  0x54   : > { %vm801_vm3 = vcmp.lt.s32.totalorder %v765_v14, 16  ;;  %v404_v19 = vsub.s32 %v190_v47, %v403_v7  ;;  %v996_v21 = vmax.f32 %v960_v13, 0.0  ;;  %v997_v26 = vmax.f32 %v961_v17, 0.0 }
  0x55   : > { %v1103_v24 = vsel %vm801_vm3, %v995_v54, 0.0  ;;  %v1996_v27 = vmul.u32.u64.low 3817748708, %v1982_v0  ;;  %v1997_v25 = vmul.u32.u64.high 3817748708, %v1982_v0, %v1996_v27  ;;  %v415_v29 = vsub.s32 %v191_v48, %v414_v20 }
  0x56   : > { %v1557_v28 = vpack.c.bf16 %v1103_v24, %v1102_v16  ;;  %vm622_vm4 = vcmp.ne.s32.totalorder %v404_v19, 0  ;;  %vm658_vm5 = vcmp.lt.s32.totalorder %v404_v19, 0  ;;  %v730_v32 = vadd.s32 18, %v404_v19 }
  0x57   : > { %vm1999_vm6 = vmand %vm658_vm5, %vm622_vm4  ;;  %v2004_v33 = vmul.u32.u64.low 3817748708, %v1989_v6  ;;  %v2005_v34 = vmul.u32.u64.high 3817748708, %v1989_v6, %v2004_v33  ;;  %v1489_v35 = vunpack.c.l.bf16 %v1613_v22  ;;  %vm623_vm7 = vcmp.ne.s32.totalorder %v415_v29, 0 }
  0x58   : > { %1628 = vst [vmem:[%s1783_s18 + $0x48] sm:$0xff] %v1557_v28   ;;  %vm659_vm8 = vcmp.lt.s32.totalorder %v415_v29, 0  ;;  %v731_v23 = vadd.s32 18, %v415_v29  ;;  %v919_v36 = vmul.f32 %v1486_v18, %v1805_v15  ;;  %v766_v37 = vsel %vm1999_vm6, %v730_v32, %v404_v19 }
  0x59   : > { %vm695_vm9 = vmand %vm659_vm8, %vm623_vm7  ;;  %v424_v38 = vshrl.u32 %v1997_v25, 4  ;;  %v920_v8 = vmul.f32 %v1489_v35, %v1805_v15  ;;  %v194_v39 = vadd.s32 168, %v1760_v1  ;;  %vm802_vm10 = vcmp.lt.s32.totalorder %v766_v37, 16 }
  0x5a   : > { %v767_v40 = vsel %vm695_vm9, %v731_v23, %v415_v29  ;;  %v962_v41 = vadd.f32 %v1828_v31, %v919_v36  ;;  %v195_v42 = vadd.s32 176, %v1760_v1  ;;  %v1104_v44 = vsel %vm802_vm10, %v996_v21, 0.0 }
  0x5b   : > { %vm803_vm11 = vcmp.lt.s32.totalorder %v767_v40, 16  ;;  %v425_v45 = vmul.u32 18, %v424_v38  ;;  %v435_v46 = vshrl.u32 %v2005_v34, 4  ;;  %v963_v48 = vadd.f32 %v1828_v31, %v920_v8  ;;  %v1616_v40 = vld [vmem:[%s1800_s21 + $0x68] sm:$0xff]  }
  0x5c   : > { %v1105_v47 = vsel %vm803_vm11, %v997_v26, 0.0  ;;  %v998_v49 = vmax.f32 %v962_v41, 0.0  ;;  %v1490_v50 = vunpack.c.h.bf16 %v1613_v22  ;;  %v1493_v54 = vunpack.c.l.bf16 %v1614_v43 }
  0x5d   : > { %v1562_v51 = vpack.c.bf16 %v1105_v47, %v1104_v44  ;;  %v426_v52 = vsub.s32 %v1982_v0, %v425_v45  ;;  %v436_v53 = vmul.u32 18, %v435_v46  ;;  %v999_v55 = vmax.f32 %v963_v48, 0.0 }
  0x5e   : > { %v2020_v9 = vmul.u32.u64.low 3817748708, %v194_v39  ;;  %v2021_v56 = vmul.u32.u64.high 3817748708, %v194_v39, %v2020_v9  ;;  %v921_v57 = vmul.f32 %v1490_v50, %v1805_v15  ;;  %v922_v62 = vmul.f32 %v1493_v54, %v1805_v15 }
  0x5f   : > { %1629 = vst [vmem:[%s1783_s18 + $0x50] sm:$0xff] %v1562_v51   ;;  %v437_v58 = vsub.s32 %v1989_v6, %v436_v53  ;;  %vm624_vm12 = vcmp.ne.s32.totalorder %v426_v52, 0  ;;  %vm660_vm13 = vcmp.lt.s32.totalorder %v426_v52, 0  ;;  %v732_v59 = vadd.s32 18, %v426_v52 }
  0x60   : > { %vm696_vm14 = vmand %vm660_vm13, %vm624_vm12  ;;  %v2026_v60 = vmul.u32.u64.low 3817748708, %v195_v42  ;;  %v2027_v61 = vmul.u32.u64.high 3817748708, %v195_v42, %v2026_v60  ;;  %v964_v0 = vadd.f32 %v1828_v31, %v921_v57  ;;  %v446_v4 = vshrl.u32 %v2021_v56, 4 }
  0x61   : > { %vm625_vm15 = vcmp.ne.s32.totalorder %v437_v58, 0  ;;  %vm661_vm0 = vcmp.lt.s32.totalorder %v437_v58, 0  ;;  %v733_v2 = vadd.s32 18, %v437_v58  ;;  %v768_v3 = vsel %vm696_vm14, %v732_v59, %v426_v52 }
  0x62   : > { %vm697_vm1 = vmand %vm661_vm0, %vm625_vm15  ;;  %vm804_vm2 = vcmp.lt.s32.totalorder %v768_v3, 16  ;;  %v965_v5 = vadd.f32 %v1828_v31, %v922_v62  ;;  %v1000_v63 = vmax.f32 %v964_v0, 0.0  ;;  %v196_v11 = vadd.s32 184, %v1760_v1 }
  0x63   : > { %v769_v6 = vsel %vm697_vm1, %v733_v2, %v437_v58  ;;  %v1106_v10 = vsel %vm804_vm2, %v998_v49, 0.0  ;;  %v197_v7 = vadd.s32 192, %v1760_v1  ;;  %v447_v13 = vmul.u32 18, %v446_v4 }
  0x64   : > { %vm805_vm3 = vcmp.lt.s32.totalorder %v769_v6, 16  ;;  %v457_v14 = vshrl.u32 %v2027_v61, 4  ;;  %v1001_v16 = vmax.f32 %v965_v5, 0.0  ;;  %v1494_v20 = vunpack.c.h.bf16 %v1614_v43  ;;  %v1617_v5 = vld [vmem:[%s1800_s21 + $0x70] sm:$0xff]  }
  0x65   : > { %v1107_v17 = vsel %vm805_vm3, %v999_v55, 0.0  ;;  %v2037_v18 = vmul.u32.u64.low 3817748708, %v196_v11  ;;  %v2038_v19 = vmul.u32.u64.high 3817748708, %v196_v11, %v2037_v18  ;;  %v448_v22 = vsub.s32 %v194_v39, %v447_v13 }
  0x66   : > { %v1567_v21 = vpack.c.bf16 %v1107_v17, %v1106_v10  ;;  %v458_v24 = vmul.u32 18, %v457_v14  ;;  %v1497_v26 = vunpack.c.l.bf16 %v1615_v12  ;;  %v923_v28 = vmul.f32 %v1494_v20, %v1805_v15 }
  0x67   : > { %v2040_v27 = vmul.u32.u64.low 3817748708, %v197_v7  ;;  %v2041_v25 = vmul.u32.u64.high 3817748708, %v197_v7, %v2040_v27  ;;  %v2045_v29 = vadd.s32 200, %v1760_v1  ;;  %vm626_vm4 = vcmp.ne.s32.totalorder %v448_v22, 0 }
  0x68   : > { %1630 = vst [vmem:[%s1783_s18 + $0x58] sm:$0xff] %v1567_v21   ;;  %v459_v30 = vsub.s32 %v195_v42, %v458_v24  ;;  %vm662_vm5 = vcmp.lt.s32.totalorder %v448_v22, 0  ;;  %v734_v32 = vadd.s32 18, %v448_v22  ;;  %v468_v33 = vshrl.u32 %v2038_v19, 4 }
  0x69   : > { %vm698_vm6 = vmand %vm662_vm5, %vm626_vm4  ;;  %v924_v34 = vmul.f32 %v1497_v26, %v1805_v15  ;;  %v966_v35 = vadd.f32 %v1828_v31, %v923_v28  ;;  %v199_v23 = vadd.s32 208, %v1760_v1  ;;  %v479_v8 = vshrl.u32 %v2041_v25, 4 }
  0x6a   : > { %vm627_vm7 = vcmp.ne.s32.totalorder %v459_v30, 0  ;;  %vm663_vm8 = vcmp.lt.s32.totalorder %v459_v30, 0  ;;  %v735_v36 = vadd.s32 18, %v459_v30  ;;  %v770_v37 = vsel %vm698_vm6, %v734_v32, %v448_v22 }
  0x6b   : > { %vm699_vm9 = vmand %vm663_vm8, %vm627_vm7  ;;  %vm806_vm10 = vcmp.lt.s32.totalorder %v770_v37, 16  ;;  %v469_v38 = vmul.u32 18, %v468_v33  ;;  %v967_v39 = vadd.f32 %v1828_v31, %v924_v34  ;;  %v1002_v43 = vmax.f32 %v966_v35, 0.0 }
  0x6c   : > { %v771_v41 = vsel %vm699_vm9, %v735_v36, %v459_v30  ;;  %v1108_v42 = vsel %vm806_vm10, %v1000_v63, 0.0  ;;  %v1498_v44 = vunpack.c.h.bf16 %v1615_v12  ;;  %v480_v46 = vmul.u32 18, %v479_v8 }
  0x6d   : > { %vm807_vm11 = vcmp.lt.s32.totalorder %v771_v41, 16  ;;  %v470_v45 = vsub.s32 %v196_v11, %v469_v38  ;;  %v1003_v47 = vmax.f32 %v967_v39, 0.0  ;;  %v1501_v51 = vunpack.c.l.bf16 %v1616_v40  ;;  %v2097_v38 = vld [vmem:[%s1800_s21 + $0x78] sm:$0xff]  }
  0x6e   : > { %v1109_v48 = vsel %vm807_vm11, %v1001_v16, 0.0  ;;  %v2056_v49 = vmul.u32.u64.low 3817748708, %v2045_v29  ;;  %v2057_v50 = vmul.u32.u64.high 3817748708, %v2045_v29, %v2056_v49  ;;  %v481_v53 = vsub.s32 %v197_v7, %v480_v46 }
  0x6f   : > { %v1572_v52 = vpack.c.bf16 %v1109_v48, %v1108_v42  ;;  %vm628_vm12 = vcmp.ne.s32.totalorder %v470_v45, 0  ;;  %vm664_vm13 = vcmp.lt.s32.totalorder %v470_v45, 0  ;;  %v736_v55 = vadd.s32 18, %v470_v45 }
  0x70   : > { %vm2059_vm14 = vmand %vm664_vm13, %vm628_vm12  ;;  %v2063_v9 = vmul.u32.u64.low 3817748708, %v199_v23  ;;  %v2064_v56 = vmul.u32.u64.high 3817748708, %v199_v23, %v2063_v9  ;;  %v925_v57 = vmul.f32 %v1498_v44, %v1805_v15  ;;  %vm629_vm15 = vcmp.ne.s32.totalorder %v481_v53, 0 }
  0x71   : > { %1631 = vst [vmem:[%s1783_s18 + $0x60] sm:$0xff] %v1572_v52   ;;  %vm665_vm0 = vcmp.lt.s32.totalorder %v481_v53, 0  ;;  %v737_v58 = vadd.s32 18, %v481_v53  ;;  %v926_v59 = vmul.f32 %v1501_v51, %v1805_v15  ;;  %v772_v60 = vsel %vm2059_vm14, %v736_v55, %v470_v45 }
  0x72   : > { %vm701_vm1 = vmand %vm665_vm0, %vm629_vm15  ;;  %v490_v61 = vshrl.u32 %v2057_v50, 4  ;;  %v968_v62 = vadd.f32 %v1828_v31, %v925_v57  ;;  %v200_v0 = vadd.s32 216, %v1760_v1  ;;  %vm808_vm2 = vcmp.lt.s32.totalorder %v772_v60, 16  ;;  %v2110_v50 = vld [vmem:[%s2172_s1] ss:$0 sm:$0xff] }
  0x73   : > { %v773_v2 = vsel %vm701_vm1, %v737_v58, %v481_v53  ;;  %v969_v3 = vadd.f32 %v1828_v31, %v926_v59  ;;  %v201_v4 = vadd.s32 224, %v1760_v1  ;;  %v1110_v63 = vsel %vm808_vm2, %v1002_v43, 0.0 }
  0x74   : > { %vm809_vm3 = vcmp.lt.s32.totalorder %v773_v2, 16  ;;  %v491_v6 = vmul.u32 18, %v490_v61  ;;  %v501_v10 = vshrl.u32 %v2064_v56, 4  ;;  %v1004_v7 = vmax.f32 %v968_v62, 0.0  ;;  %v2120_v56 = vld [vmem:[%s2173_s2] ss:$0 sm:$0xff] }
  0x75   : > { %v1111_v11 = vsel %vm809_vm3, %v1003_v47, 0.0  ;;  %v1005_v12 = vmax.f32 %v969_v3, 0.0  ;;  %v1502_v13 = vunpack.c.h.bf16 %v1616_v40  ;;  %v1505_v18 = vunpack.c.l.bf16 %v1617_v5 }
  0x76   : > { %v1577_v14 = vpack.c.bf16 %v1111_v11, %v1110_v63  ;;  %v492_v16 = vsub.s32 %v2045_v29, %v491_v6  ;;  %v502_v17 = vmul.u32 18, %v501_v10  ;;  %v202_v28 = vadd.s32 232, %v1760_v1  ;;  %v1619_v11 = vld [vmem:[%s1800_s21 + $0x80] sm:$0xff]  }
  0x77   : > { %v2079_v19 = vmul.u32.u64.low 3817748708, %v200_v0  ;;  %v2080_v20 = vmul.u32.u64.high 3817748708, %v200_v0, %v2079_v19  ;;  %v2082_v21 = vmul.u32.u64.low 3817748708, %v201_v4  ;;  %v2083_v22 = vmul.u32.u64.high 3817748708, %v201_v4, %v2082_v21 }
  0x78   : > { %1632 = vst [vmem:[%s1783_s18 + $0x68] sm:$0xff] %v1577_v14   ;;  %v503_v24 = vsub.s32 %v199_v23, %v502_v17  ;;  %vm630_vm4 = vcmp.ne.s32.totalorder %v492_v16, 0  ;;  %vm666_vm5 = vcmp.lt.s32.totalorder %v492_v16, 0  ;;  %v738_v26 = vadd.s32 18, %v492_v16 }
  0x79   : > { %vm702_vm6 = vmand %vm666_vm5, %vm630_vm4  ;;  %v927_v27 = vmul.f32 %v1502_v13, %v1805_v15  ;;  %v928_v25 = vmul.f32 %v1505_v18, %v1805_v15  ;;  %v2090_v29 = vadd.s32 240, %v1760_v1  ;;  %v512_v33 = vshrl.u32 %v2080_v20, 4 }
  0x7a   : > { %vm631_vm7 = vcmp.ne.s32.totalorder %v503_v24, 0  ;;  %vm667_vm8 = vcmp.lt.s32.totalorder %v503_v24, 0  ;;  %v739_v30 = vadd.s32 18, %v503_v24  ;;  %v774_v32 = vsel %vm702_vm6, %v738_v26, %v492_v16 }
  0x7b   : > { %vm703_vm9 = vmand %vm667_vm8, %vm631_vm7  ;;  %vm810_vm10 = vcmp.lt.s32.totalorder %v774_v32, 16  ;;  %v523_v34 = vshrl.u32 %v2083_v22, 4  ;;  %v970_v35 = vadd.f32 %v1828_v31, %v927_v27  ;;  %v971_v36 = vadd.f32 %v1828_v31, %v928_v25 }
  0x7c   : > { %v775_v23 = vsel %vm703_vm9, %v739_v30, %v503_v24  ;;  %v1112_v15 = vsel %vm810_vm10, %v1004_v7, 0.0  ;;  %v1506_v37 = vunpack.c.h.bf16 %v1617_v5  ;;  %v513_v8 = vmul.u32 18, %v512_v33 }
  0x7d   : > { %vm811_vm11 = vcmp.lt.s32.totalorder %v775_v23, 16  ;;  %v524_v39 = vmul.u32 18, %v523_v34  ;;  %v1006_v40 = vmax.f32 %v970_v35, 0.0  ;;  %v1007_v42 = vmax.f32 %v971_v36, 0.0 }
  0x7e   : > { %v1113_v41 = vsel %vm811_vm11, %v1005_v12, 0.0  ;;  %v2099_v43 = vmul.u32.u64.low 3817748708, %v202_v28  ;;  %v2100_v44 = vmul.u32.u64.high 3817748708, %v202_v28, %v2099_v43  ;;  %v514_v46 = vsub.s32 %v200_v0, %v513_v8 }
  0x7f   : > { %v1582_v45 = vpack.c.bf16 %v1113_v41, %v1112_v15  ;;  %v525_v47 = vsub.s32 %v201_v4, %v524_v39  ;;  %v1509_v48 = vunpack.c.l.bf16 %v2097_v38  ;;  %v929_v51 = vmul.f32 %v2110_v50, %v1506_v37  ;;  %v1620_v39 = vld [vmem:[%s1800_s21 + $0x88] sm:$0xff]  }
  0x80   : > { %v2104_v31 = vmul.u32.u64.low 3817748708, %v2090_v29  ;;  %v2105_v49 = vmul.u32.u64.high 3817748708, %v2090_v29, %v2104_v31  ;;  %v204_v52 = vadd.s32 248, %v1760_v1  ;;  %vm632_vm12 = vcmp.ne.s32.totalorder %v514_v46, 0 }
  0x81   : > { %1633 = vst [vmem:[%s1783_s18 + $0x70] sm:$0xff] %v1582_v45   ;;  %vm633_vm13 = vcmp.ne.s32.totalorder %v525_v47, 0  ;;  %vm668_vm14 = vcmp.lt.s32.totalorder %v514_v46, 0  ;;  %vm669_vm15 = vcmp.lt.s32.totalorder %v525_v47, 0  ;;  %v740_v53 = vadd.s32 18, %v514_v46 }
  0x82   : > { %vm704_vm0 = vmand %vm668_vm14, %vm632_vm12  ;;  %v741_v54 = vadd.s32 18, %v525_v47  ;;  %v534_v55 = vshrl.u32 %v2100_v44, 4  ;;  %v930_v9 = vmul.f32 %v2110_v50, %v1509_v48  ;;  %v972_v57 = vadd.f32 %v2120_v56, %v929_v51 }
  0x83   : > { %vm705_vm1 = vmand %vm669_vm15, %vm633_vm13  ;;  %v205_v58 = vadd.s32 256, %v1760_v1  ;;  %v2124_v59 = vmul.u32.u64.low 3817748708, %v204_v52  ;;  %v2125_v60 = vmul.u32.u64.high 3817748708, %v204_v52, %v2124_v59  ;;  %v776_v61 = vsel %vm704_vm0, %v740_v53, %v514_v46 }
  0x84   : > { %v777_v62 = vsel %vm705_vm1, %v741_v54, %v525_v47  ;;  %v535_v0 = vmul.u32 18, %v534_v55  ;;  %v545_v2 = vshrl.u32 %v2105_v49, 4  ;;  %vm812_vm2 = vcmp.lt.s32.totalorder %v776_v61, 16 }
  0x85   : > { %vm813_vm3 = vcmp.lt.s32.totalorder %v777_v62, 16  ;;  %v973_v3 = vadd.f32 %v2120_v56, %v930_v9  ;;  %v1008_v4 = vmax.f32 %v972_v57, 0.0  ;;  %v1114_v5 = vsel %vm812_vm2, %v1006_v40, 0.0 }
  0x86   : > { %v1115_v63 = vsel %vm813_vm3, %v1007_v42, 0.0  ;;  %v536_v6 = vsub.s32 %v202_v28, %v535_v0  ;;  %v546_v10 = vmul.u32 18, %v545_v2  ;;  %v556_v13 = vshrl.u32 %v2125_v60, 4 }
  0x87   : > { %v1587_v7 = vpack.c.bf16 %v1115_v63, %v1114_v5  ;;  %v1009_v12 = vmax.f32 %v973_v3, 0.0  ;;  %v1510_v14 = vunpack.c.h.bf16 %v2097_v38  ;;  %v1513_v21 = vunpack.c.l.bf16 %v1619_v11 }
  0x88   : > { %v547_v16 = vsub.s32 %v2090_v29, %v546_v10  ;;  %vm634_vm4 = vcmp.ne.s32.totalorder %v536_v6, 0  ;;  %vm670_vm5 = vcmp.lt.s32.totalorder %v536_v6, 0  ;;  %v742_v17 = vadd.s32 18, %v536_v6 }
  0x89   : > { %1634 = vst [vmem:[%s1783_s18 + $0x78] sm:$0xff] %v1587_v7   ;;  %vm706_vm6 = vmand %vm670_vm5, %vm634_vm4  ;;  %v557_v18 = vmul.u32 18, %v556_v13  ;;  %v2134_v19 = vmul.u32.u64.low 3817748708, %v205_v58  ;;  %v2135_v20 = vmul.u32.u64.high 3817748708, %v205_v58, %v2134_v19  ;;  %v931_v27 = vmul.f32 %v2110_v50, %v1510_v14 }
  0x8a   : > { %vm635_vm7 = vcmp.ne.s32.totalorder %v547_v16, 0  ;;  %vm671_vm8 = vcmp.lt.s32.totalorder %v547_v16, 0  ;;  %v743_v22 = vadd.s32 18, %v547_v16  ;;  %v778_v24 = vsel %vm706_vm6, %v742_v17, %v536_v6 }
  0x8b   : > { %vm707_vm9 = vmand %vm671_vm8, %vm635_vm7  ;;  %vm814_vm10 = vcmp.lt.s32.totalorder %v778_v24, 16  ;;  %v558_v26 = vsub.s32 %v204_v52, %v557_v18  ;;  %v932_v25 = vmul.f32 %v2110_v50, %v1513_v21  ;;  %v206_v30 = vadd.s32 264, %v1760_v1 }
  0x8c   : > { %v779_v28 = vsel %vm707_vm9, %v743_v22, %v547_v16  ;;  %v1116_v29 = vsel %vm814_vm10, %v1008_v4, 0.0  ;;  %v207_v32 = vadd.s32 272, %v1760_v1  ;;  %v567_v33 = vshrl.u32 %v2135_v20, 4 }
  0x8d   : > { %vm815_vm11 = vcmp.lt.s32.totalorder %v779_v28, 16  ;;  %vm636_vm12 = vcmp.ne.s32.totalorder %v558_v26, 0  ;;  %vm672_vm13 = vcmp.lt.s32.totalorder %v558_v26, 0  ;;  %v744_v35 = vadd.s32 18, %v558_v26 }
  0x8e   : > { %v1117_v34 = vsel %vm815_vm11, %v1009_v12, 0.0  ;;  %vm708_vm14 = vmand %vm672_vm13, %vm636_vm12  ;;  %v974_v23 = vadd.f32 %v2120_v56, %v931_v27  ;;  %v975_v15 = vadd.f32 %v2120_v56, %v932_v25  ;;  %v568_v37 = vmul.u32 18, %v567_v33 }
  0x8f   : > { %v1592_v36 = vpack.c.bf16 %v1117_v34, %v1116_v29  ;;  %v2144_v38 = vmul.u32.u64.low 3817748708, %v206_v30  ;;  %v2145_v8 = vmul.u32.u64.high 3817748708, %v206_v30, %v2144_v38  ;;  %v780_v40 = vsel %vm708_vm14, %v744_v35, %v558_v26 }
  0x90   : > { %v1010_v41 = vmax.f32 %v974_v23, 0.0  ;;  %v1011_v42 = vmax.f32 %v975_v15, 0.0  ;;  %v1514_v43 = vunpack.c.h.bf16 %v1619_v11  ;;  %v569_v44 = vsub.s32 %v205_v58, %v568_v37 }
  0x91   : > { %1635 = vst [vmem:[%s1783_s18 + $0x80] sm:$0xff] %v1592_v36   ;;  %vm816_vm15 = vcmp.lt.s32.totalorder %v780_v40, 16  ;;  %v2149_v45 = vmul.u32.u64.low 3817748708, %v207_v32  ;;  %v2150_v46 = vmul.u32.u64.high 3817748708, %v207_v32, %v2149_v45  ;;  %v1517_v48 = vunpack.c.l.bf16 %v1620_v39 }
  0x92   : > { %v1118_v47 = vsel %vm816_vm15, %v1010_v41, 0.0  ;;  %v933_v31 = vmul.f32 %v2110_v50, %v1514_v43  ;;  %v208_v49 = vadd.s32 280, %v1760_v1  ;;  %vm637_vm0 = vcmp.ne.s32.totalorder %v569_v44, 0 }
  0x93   : > { %vm673_vm1 = vcmp.lt.s32.totalorder %v569_v44, 0  ;;  %v745_v51 = vadd.s32 18, %v569_v44  ;;  %v578_v52 = vshrl.u32 %v2145_v8, 4  ;;  %v934_v53 = vmul.f32 %v2110_v50, %v1517_v48 }
  0x94   : > { %vm709_vm2 = vmand %vm673_vm1, %vm637_vm0  ;;  %v976_v54 = vadd.f32 %v2120_v56, %v933_v31  ;;  %v2157_v55 = vmul.u32.u64.low 3817748708, %v208_v49  ;;  %v2158_v9 = vmul.u32.u64.high 3817748708, %v208_v49, %v2157_v55  ;;  %v589_v59 = vshrl.u32 %v2150_v46, 4 }
  0x95   : > { %v781_v57 = vsel %vm709_vm2, %v745_v51, %v569_v44  ;;  %v579_v58 = vmul.u32 18, %v578_v52  ;;  %v1518_v60 = vunpack.c.h.bf16 %v1620_v39  ;;  %v977_v1 = vadd.f32 %v2120_v56, %v934_v53 }
  0x96   : > { %vm817_vm3 = vcmp.lt.s32.totalorder %v781_v57, 16  ;;  %v590_v0 = vmul.u32 18, %v589_v59  ;;  %v1012_v4 = vmax.f32 %v976_v54, 0.0  ;;  %v600_v5 = vshrl.u32 %v2158_v9, 4 }
  0x97   : > { %v1119_v61 = vsel %vm817_vm3, %v1011_v42, 0.0  ;;  %v580_v62 = vsub.s32 %v206_v30, %v579_v58  ;;  %v935_v2 = vmul.f32 %v2110_v50, %v1518_v60  ;;  %v1013_v10 = vmax.f32 %v977_v1, 0.0 }
  0x98   : > { %v1597_v3 = vpack.c.bf16 %v1119_v61, %v1118_v47  ;;  %v591_v63 = vsub.s32 %v207_v32, %v590_v0  ;;  %v601_v11 = vmul.u32 18, %v600_v5 }
  0x99   : > { %vm638_vm4 = vcmp.ne.s32.totalorder %v580_v62, 0  ;;  %vm674_vm5 = vcmp.lt.s32.totalorder %v580_v62, 0  ;;  %v746_v6 = vadd.s32 18, %v580_v62  ;;  %v978_v7 = vadd.f32 %v2120_v56, %v935_v2 }
  0x9a   : > { %1636 = vst [vmem:[%s1783_s18 + $0x88] sm:$0xff] %v1597_v3   ;;  %vm710_vm6 = vmand %vm674_vm5, %vm638_vm4  ;;  %vm639_vm7 = vcmp.ne.s32.totalorder %v591_v63, 0  ;;  %vm675_vm8 = vcmp.lt.s32.totalorder %v591_v63, 0  ;;  %v747_v12 = vadd.s32 18, %v591_v63  ;;  %v602_v50 = vsub.s32 %v208_v49, %v601_v11 }
  0x9b   : > { %v782_v13 = vsel %vm710_vm6, %v746_v6, %v580_v62  ;;  %vm711_vm9 = vmand %vm675_vm8, %vm639_vm7  ;;  %v1014_v17 = vmax.f32 %v978_v7, 0.0 }
  0x9c   : > { %vm818_vm10 = vcmp.lt.s32.totalorder %v782_v13, 16  ;;  %v783_v14 = vsel %vm711_vm9, %v747_v12, %v591_v63  ;;  %vm640_vm12 = vcmp.ne.s32.totalorder %v602_v50, 0  ;;  %vm676_vm13 = vcmp.lt.s32.totalorder %v602_v50, 0 }
  0x9d   : > { %v1120_v16 = vsel %vm818_vm10, %v1012_v4, 0.0  ;;  %vm819_vm11 = vcmp.lt.s32.totalorder %v783_v14, 16  ;;  %v748_v18 = vadd.s32 18, %v602_v50  ;;  %vm712_vm14 = vmand %vm676_vm13, %vm640_vm12 }
  0x9e   : > { %v1121_v19 = vsel %vm819_vm11, %v1013_v10, 0.0 }
  0x9f   : > { %v1602_v20 = vpack.c.bf16 %v1121_v19, %v1120_v16  ;;  %v784_v56 = vsel %vm712_vm14, %v748_v18, %v602_v50 }
  0xa0   : > { %vm820_vm15 = vcmp.lt.s32.totalorder %v784_v56, 16 }
  0xa1   : > { %1637 = vst [vmem:[%s1783_s18 + $0x90] sm:$0xff] %v1602_v20   ;;  %v1122_v21 = vsel %vm820_vm15, %v1014_v17, 0.0 }
  0xa2   : > { %v1446_v22 = vpack.c.bf16 %v1122_v21, %v1122_v21 }
  0xa4   : > { %1305 = vst [vmem:[%s1783_s18 + $0x98] sm:$0xf] %v1446_v22 }
  0xa5 PF: > { %s13_s12 = sadd.s32 1, %s1729_s12  }
  0xa6   : > { %p10_p4 = scmp.ge.s32.totalorder %s13_s12, 4  }
  0xa8   :  { %12 = sbr.rel (!%p10_p4) target bundleno = 1 (0x1), region = 62 }

// kernel: bridge_forward.7
= control target key start
LH: loop header
LB: loop body
LE: loop exit
PB: predicated region body
PF: predicated region fallthrough
CT: control target
= control target key end

     0   :  { %s1425_s12 = smov 0   ;;  %s1795_s0 = inlined_call_operand.vmem [shape: bf16[2,288,128], index: 0, kind: input, shape index: {}]   ;;  %s1796_s1 = inlined_call_operand.vmem [shape: f32[1,128], index: 1, kind: input, shape index: {}]   ;;  %s1797_s2 = inlined_call_operand.vmem [shape: f32[1,128], index: 2, kind: input, shape index: {}]   ;;  %s1798_s3 = inlined_call_operand.vmem [shape: f32[2,288,128], index: 3, kind: output, shape index: {}]  }
   0x1 LB: > { %s1213_s13 = sadd.s32 4294967295, %s1403_s12   ;;  %p1217_p0 = scmp.ge.s32.totalorder %s1403_s12, 1  ;;  %s1403_s12 = sphi %s1425_s12, %s13_s12  }
   0x2   : > { %p137_p1 = scmp.lt.s32.totalorder %s1403_s12, 3 }
   0x4   : > { %p138_p2 = pnand %p1217_p0, %p137_p1 }
   0x5   : > { %p161_p3 = scmp.lt.s32.totalorder (!%p138_p2), %s1213_s13, 1  ;;  %v171_v0 = vlaneseq (!%p138_p2)  ;;  %v1462_v10 = vld [vmem:[%s1796_s1] ss:$0 sm:$0xff] (!%p138_p2) }
   0x6   : > { %141 = sbr.rel (%p138_p2) target bundleno = 160 (0xa0), region = 32  ;;  %v1486_v26 = vld [vmem:[%s1797_s2] ss:$0 sm:$0xff] (!%p138_p2) }
   0x7   : > { %v1435_v1 = vshrl.u32 (!%p138_p2), %v171_v0, 7 }
   0x9   : > { %v1439_v2 = vmul.u32.u64.low (!%p138_p2), 3817748708, %v1435_v1  ;;  %v1440_v3 = vmul.u32.u64.high 3817748708, %v1435_v1, %v1439_v2  ;;  %v173_v4 = vadd.s32 (!%p138_p2), 8, %v1435_v1  ;;  %v174_v5 = vadd.s32 (!%p138_p2), 16, %v1435_v1 }
   0xa   : > { %v175_v6 = vadd.s32 (!%p138_p2), 24, %v1435_v1  ;;  %v1446_v7 = vadd.s32 (!%p138_p2), 32, %v1435_v1  ;;  %v1449_v8 = vadd.s32 (!%p138_p2), 40, %v1435_v1  ;;  %v1452_v9 = vadd.s32 (!%p138_p2), 48, %v1435_v1 }
   0xb   : > { %v1464_v11 = vmul.u32.u64.low (!%p138_p2), 3817748708, %v173_v4  ;;  %v1465_v12 = vmul.u32.u64.high 3817748708, %v173_v4, %v1464_v11  ;;  %v1467_v13 = vmul.u32.u64.low (!%p138_p2), 3817748708, %v174_v5  ;;  %v1468_v14 = vmul.u32.u64.high 3817748708, %v174_v5, %v1467_v13 }
   0xc   : > { %v1472_v17 = vmul.u32.u64.low (!%p138_p2), 3817748708, %v175_v6  ;;  %v1473_v18 = vmul.u32.u64.high 3817748708, %v175_v6, %v1472_v17  ;;  %v1476_v19 = vmul.u32.u64.low (!%p138_p2), 3817748708, %v1446_v7  ;;  %v1477_v20 = vmul.u32.u64.high 3817748708, %v1446_v7, %v1476_v19 }
   0xd   : > { %s1800_s13 = smov (!%p161_p3, %s1213_s13), 1  ;;  %v214_v21 = vshrl.u32 %v1440_v3, 4  ;;  %v1490_v29 = vmul.u32.u64.low 3817748708, %v1449_v8  ;;  %v1491_v30 = vmul.u32.u64.high 3817748708, %v1449_v8, %v1490_v29  ;;  %v225_v33 = vshrl.u32 %v1465_v12, 4 }
   0xe   : > { %s1313_s14 = smul.u32 144, %s1800_s13  ;;  %v236_v35 = vshrl.u32 %v1468_v14, 4  ;;  %v247_v37 = vshrl.u32 %v1473_v18, 4  ;;  %v258_v56 = vshrl.u32 %v1477_v20, 4 }
   0xf   : > { %v215_v31 = vmul.u32 18, %v214_v21  ;;  %s1314_s22 = smul.u32 288, %s1800_s13  ;;  %v226_v41 = vmul.u32 18, %v225_v33 }
  0x10   : > { %s1457_s17 = scalar_lea.vmem %s1795_s0, %s1313_s14  ;;  %v237_v43 = vmul.u32 18, %v236_v35  ;;  %v248_v45 = vmul.u32 18, %v247_v37 }
  0x11   : > { %v1225_v15 = vld [vmem:[%s1457_s17] sm:$0xff]   ;;  %v1296_v16 = vld [vmem:[%s1457_s17 + $0x8] sm:$0xff]   ;;  %v1481_v25 = vld [vmem:[%s1457_s17 + $0x10] sm:$0xff]   ;;  %v216_v39 = vsub.s32 %v1435_v1, %v215_v31  ;;  %v227_v49 = vsub.s32 %v173_v4, %v226_v41  ;;  %s1509_s25 = scalar_lea.vmem %s1798_s3, %s1314_s22  ;;  %v259_v63 = vmul.u32 18, %v258_v56 }
  0x12   : > { %v1226_v22 = vunpack.c.l.bf16 %v1225_v15  ;;  %v1227_v23 = vunpack.c.h.bf16 %v1225_v15  ;;  %v1230_v24 = vunpack.c.l.bf16 %v1296_v16  ;;  %v1231_v27 = vunpack.c.h.bf16 %v1296_v16  ;;  %v1298_v2 = vld [vmem:[%s1457_s17 + $0x18] sm:$0xff]   ;;  %v1299_v31 = vld [vmem:[%s1457_s17 + $0x20] sm:$0xff]  }
  0x13   : > { %v1234_v28 = vunpack.c.l.bf16 %v1481_v25  ;;  %vm604_vm0 = vcmp.ne.s32.totalorder %v216_v39, 0  ;;  %vm640_vm1 = vcmp.lt.s32.totalorder %v216_v39, 0  ;;  %v712_v47 = vadd.s32 18, %v216_v39 }
  0x14   : > { %v899_v32 = vmul.f32 %v1226_v22, %v1462_v10  ;;  %v900_v34 = vmul.f32 %v1227_v23, %v1462_v10  ;;  %v901_v36 = vmul.f32 %v1230_v24, %v1462_v10  ;;  %v902_v38 = vmul.f32 %v1231_v27, %v1462_v10  ;;  %vm676_vm2 = vmand %vm640_vm1, %vm604_vm0 }
  0x15   : > { %v238_v51 = vsub.s32 %v174_v5, %v237_v43  ;;  %v748_v53 = vsel %vm676_vm2, %v712_v47, %v216_v39  ;;  %v249_v54 = vsub.s32 %v175_v6, %v248_v45  ;;  %vm605_vm4 = vcmp.ne.s32.totalorder %v227_v49, 0 }
  0x16   : > { %v942_v40 = vadd.f32 %v1486_v26, %v899_v32  ;;  %v943_v42 = vadd.f32 %v1486_v26, %v900_v34  ;;  %v944_v44 = vadd.f32 %v1486_v26, %v901_v36  ;;  %v945_v46 = vadd.f32 %v1486_v26, %v902_v38 }
  0x17   : > { %vm784_vm3 = vcmp.lt.s32.totalorder %v748_v53, 16  ;;  %vm641_vm5 = vcmp.lt.s32.totalorder %v227_v49, 0  ;;  %v713_v57 = vadd.s32 18, %v227_v49  ;;  %vm606_vm7 = vcmp.ne.s32.totalorder %v238_v51, 0 }
  0x18   : > { %v978_v48 = vmax.f32 %v942_v40, 0.0  ;;  %v979_v50 = vmax.f32 %v943_v42, 0.0  ;;  %v980_v52 = vmax.f32 %v944_v44, 0.0  ;;  %v981_v55 = vmax.f32 %v945_v46, 0.0  ;;  %vm677_vm6 = vmand %vm641_vm5, %vm605_vm4 }
  0x19   : > { %vm642_vm8 = vcmp.lt.s32.totalorder %v238_v51, 0  ;;  %v714_v59 = vadd.s32 18, %v238_v51  ;;  %v749_v60 = vsel %vm677_vm6, %v713_v57, %v227_v49  ;;  %vm607_vm10 = vcmp.ne.s32.totalorder %v249_v54, 0 }
  0x1a   : > { %v1086_v58 = vsel %vm784_vm3, %v978_v48, 0.0  ;;  %vm678_vm9 = vmand %vm642_vm8, %vm606_vm7  ;;  %vm643_vm11 = vcmp.lt.s32.totalorder %v249_v54, 0  ;;  %v715_v61 = vadd.s32 18, %v249_v54  ;;  %vm785_vm12 = vcmp.lt.s32.totalorder %v749_v60, 16 }
  0x1b   : > { %1122 = vst [vmem:[%s1509_s25] sm:$0xff] %v1086_v58  ;;  %v750_v62 = vsel %vm678_vm9, %v714_v59, %v238_v51  ;;  %vm679_vm13 = vmand %vm643_vm11, %vm607_vm10  ;;  %v903_v0 = vmul.f32 %v1234_v28, %v1462_v10  ;;  %v1087_v3 = vsel %vm785_vm12, %v979_v50, 0.0  ;;  %v269_v5 = vshrl.u32 %v1491_v30, 4 }
  0x1c   : > { %vm786_vm14 = vcmp.lt.s32.totalorder %v750_v62, 16  ;;  %v751_v4 = vsel %vm679_vm13, %v715_v61, %v249_v54  ;;  %1123 = vst [vmem:[%s1509_s25 + $0x8] sm:$0xff] %v1087_v3  ;;  %v260_v11 = vsub.s32 %v1446_v7, %v259_v63  ;;  %v1235_v15 = vunpack.c.h.bf16 %v1481_v25 }
  0x1d   : > { %v1088_v6 = vsel %vm786_vm14, %v980_v52, 0.0  ;;  %vm787_vm15 = vcmp.lt.s32.totalorder %v751_v4, 16  ;;  %v946_v12 = vadd.f32 %v1486_v26, %v903_v0  ;;  %v270_v14 = vmul.u32 18, %v269_v5 }
  0x1e   : > { %1124 = vst [vmem:[%s1509_s25 + $0x10] sm:$0xff] %v1088_v6  ;;  %v1089_v13 = vsel %vm787_vm15, %v981_v55, 0.0  ;;  %v1238_v16 = vunpack.c.l.bf16 %v1298_v2  ;;  %vm608_vm0 = vcmp.ne.s32.totalorder %v260_v11, 0  ;;  %vm644_vm1 = vcmp.lt.s32.totalorder %v260_v11, 0  ;;  %v1300_v55 = vld [vmem:[%s1457_s17 + $0x28] sm:$0xff]  }
  0x1f   : > { %1125 = vst [vmem:[%s1509_s25 + $0x18] sm:$0xff] %v1089_v13  ;;  %v716_v17 = vadd.s32 18, %v260_v11  ;;  %v982_v18 = vmax.f32 %v946_v12, 0.0  ;;  %vm680_vm2 = vmand %vm644_vm1, %vm608_vm0  ;;  %v271_v19 = vsub.s32 %v1449_v8, %v270_v14  ;;  %v904_v20 = vmul.f32 %v1235_v15, %v1462_v10 }
  0x20   : > { %v1525_v7 = vmul.u32.u64.low 3817748708, %v1452_v9  ;;  %v1526_v21 = vmul.u32.u64.high 3817748708, %v1452_v9, %v1525_v7  ;;  %v905_v23 = vmul.f32 %v1238_v16, %v1462_v10  ;;  %v179_v24 = vadd.s32 56, %v1435_v1 }
  0x21   : > { %v752_v22 = vsel %vm680_vm2, %v716_v17, %v260_v11  ;;  %v1239_v25 = vunpack.c.h.bf16 %v1298_v2  ;;  %vm609_vm4 = vcmp.ne.s32.totalorder %v271_v19, 0  ;;  %vm645_vm5 = vcmp.lt.s32.totalorder %v271_v19, 0 }
  0x22   : > { %vm788_vm3 = vcmp.lt.s32.totalorder %v752_v22, 16  ;;  %v717_v27 = vadd.s32 18, %v271_v19  ;;  %vm681_vm6 = vmand %vm645_vm5, %vm609_vm4  ;;  %v947_v8 = vadd.f32 %v1486_v26, %v904_v20  ;;  %v948_v29 = vadd.f32 %v1486_v26, %v905_v23 }
  0x23   : > { %v1090_v28 = vsel %vm788_vm3, %v982_v18, 0.0  ;;  %v906_v30 = vmul.f32 %v1239_v25, %v1462_v10  ;;  %v280_v33 = vshrl.u32 %v1526_v21, 4  ;;  %v180_v40 = vadd.s32 64, %v1435_v1 }
  0x24   : > { %1126 = vst [vmem:[%s1509_s25 + $0x20] sm:$0xff] %v1090_v28  ;;  %v753_v32 = vsel %vm681_vm6, %v717_v27, %v271_v19  ;;  %v1536_v34 = vmul.u32.u64.low 3817748708, %v179_v24  ;;  %v1537_v35 = vmul.u32.u64.high 3817748708, %v179_v24, %v1536_v34  ;;  %v983_v36 = vmax.f32 %v947_v8, 0.0 }
  0x25   : > { %vm789_vm7 = vcmp.lt.s32.totalorder %v753_v32, 16  ;;  %v984_v37 = vmax.f32 %v948_v29, 0.0  ;;  %v949_v38 = vadd.f32 %v1486_v26, %v906_v30  ;;  %v281_v39 = vmul.u32 18, %v280_v33  ;;  %v1301_v33 = vld [vmem:[%s1457_s17 + $0x30] sm:$0xff]  }
  0x26   : > { %v1242_v41 = vunpack.c.l.bf16 %v1299_v31  ;;  %v181_v42 = vadd.s32 72, %v1435_v1  ;;  %v1091_v43 = vsel %vm789_vm7, %v983_v36, 0.0  ;;  %v1243_v45 = vunpack.c.h.bf16 %v1299_v31 }
  0x27   : > { %v985_v44 = vmax.f32 %v949_v38, 0.0  ;;  %v182_v46 = vadd.s32 80, %v1435_v1  ;;  %1127 = vst [vmem:[%s1509_s25 + $0x28] sm:$0xff] %v1091_v43  ;;  %v282_v47 = vsub.s32 %v1452_v9, %v281_v39  ;;  %v291_v48 = vshrl.u32 %v1537_v35, 4 }
  0x28   : > { %v1546_v49 = vmul.u32.u64.low 3817748708, %v180_v40  ;;  %v1547_v50 = vmul.u32.u64.high 3817748708, %v180_v40, %v1546_v49  ;;  %v907_v51 = vmul.f32 %v1242_v41, %v1462_v10  ;;  %v908_v54 = vmul.f32 %v1243_v45, %v1462_v10 }
  0x29   : > { %v1550_v52 = vmul.u32.u64.low 3817748708, %v181_v42  ;;  %v1551_v53 = vmul.u32.u64.high 3817748708, %v181_v42, %v1550_v52  ;;  %vm610_vm8 = vcmp.ne.s32.totalorder %v282_v47, 0  ;;  %vm646_vm9 = vcmp.lt.s32.totalorder %v282_v47, 0 }
  0x2a   : > { %v718_v56 = vadd.s32 18, %v282_v47  ;;  %v292_v57 = vmul.u32 18, %v291_v48  ;;  %vm682_vm10 = vmand %vm646_vm9, %vm610_vm8  ;;  %v950_v9 = vadd.f32 %v1486_v26, %v907_v51  ;;  %v951_v58 = vadd.f32 %v1486_v26, %v908_v54 }
  0x2b   : > { %v1557_v59 = vmul.u32.u64.low 3817748708, %v182_v46  ;;  %v1558_v60 = vmul.u32.u64.high 3817748708, %v182_v46, %v1557_v59  ;;  %v302_v63 = vshrl.u32 %v1547_v50, 4  ;;  %v1246_v0 = vunpack.c.l.bf16 %v1300_v55 }
  0x2c   : > { %v754_v61 = vsel %vm682_vm10, %v718_v56, %v282_v47  ;;  %v293_v62 = vsub.s32 %v179_v24, %v292_v57  ;;  %v986_v2 = vmax.f32 %v950_v9, 0.0  ;;  %v313_v3 = vshrl.u32 %v1551_v53, 4 }
  0x2d   : > { %vm790_vm11 = vcmp.lt.s32.totalorder %v754_v61, 16  ;;  %v987_v4 = vmax.f32 %v951_v58, 0.0  ;;  %v303_v11 = vmul.u32 18, %v302_v63  ;;  %v324_v13 = vshrl.u32 %v1558_v60, 4 }
  0x2e   : > { %v1092_v5 = vsel %vm790_vm11, %v984_v37, 0.0  ;;  %vm611_vm12 = vcmp.ne.s32.totalorder %v293_v62, 0  ;;  %vm647_vm13 = vcmp.lt.s32.totalorder %v293_v62, 0  ;;  %v719_v6 = vadd.s32 18, %v293_v62 }
  0x2f   : > { %1128 = vst [vmem:[%s1509_s25 + $0x30] sm:$0xff] %v1092_v5  ;;  %vm683_vm14 = vmand %vm647_vm13, %vm611_vm12  ;;  %v314_v12 = vmul.u32 18, %v313_v3  ;;  %v909_v14 = vmul.f32 %v1246_v0, %v1462_v10  ;;  %v183_v16 = vadd.s32 88, %v1435_v1  ;;  %v1247_v17 = vunpack.c.h.bf16 %v1300_v55 }
  0x30   : > { %v755_v15 = vsel %vm683_vm14, %v719_v6, %v293_v62  ;;  %v184_v18 = vadd.s32 96, %v1435_v1  ;;  %v304_v19 = vsub.s32 %v180_v40, %v303_v11  ;;  %v325_v7 = vmul.u32 18, %v324_v13 }
  0x31   : > { %vm791_vm15 = vcmp.lt.s32.totalorder %v755_v15, 16  ;;  %v315_v20 = vsub.s32 %v181_v42, %v314_v12  ;;  %v952_v22 = vadd.f32 %v1486_v26, %v909_v14  ;;  %v910_v30 = vmul.f32 %v1247_v17, %v1462_v10 }
  0x32   : > { %v1093_v21 = vsel %vm791_vm15, %v985_v44, 0.0  ;;  %v1568_v23 = vmul.u32.u64.low 3817748708, %v183_v16  ;;  %v1569_v24 = vmul.u32.u64.high 3817748708, %v183_v16, %v1568_v23  ;;  %vm612_vm0 = vcmp.ne.s32.totalorder %v304_v19, 0 }
  0x33   : > { %1129 = vst [vmem:[%s1509_s25 + $0x38] sm:$0xff] %v1093_v21  ;;  %vm648_vm1 = vcmp.lt.s32.totalorder %v304_v19, 0  ;;  %v720_v25 = vadd.s32 18, %v304_v19  ;;  %vm613_vm2 = vcmp.ne.s32.totalorder %v315_v20, 0  ;;  %vm649_vm4 = vcmp.lt.s32.totalorder %v315_v20, 0 }
  0x34   : > { %vm684_vm3 = vmand %vm648_vm1, %vm612_vm0  ;;  %v721_v27 = vadd.s32 18, %v315_v20  ;;  %v326_v28 = vsub.s32 %v182_v46, %v325_v7  ;;  %v988_v8 = vmax.f32 %v952_v22, 0.0  ;;  %v335_v37 = vshrl.u32 %v1569_v24, 4  ;;  %v1302_v46 = vld [vmem:[%s1457_s17 + $0x38] sm:$0xff]  }
  0x35   : > { %v756_v29 = vsel %vm684_vm3, %v720_v25, %v304_v19  ;;  %vm685_vm5 = vmand %vm649_vm4, %vm613_vm2  ;;  %v1573_v31 = vmul.u32.u64.low 3817748708, %v184_v18  ;;  %v1574_v32 = vmul.u32.u64.high 3817748708, %v184_v18, %v1573_v31  ;;  %v953_v39 = vadd.f32 %v1486_v26, %v910_v30 }
  0x36   : > { %vm792_vm6 = vcmp.lt.s32.totalorder %v756_v29, 16  ;;  %v757_v34 = vsel %vm685_vm5, %v721_v27, %v315_v20  ;;  %vm614_vm7 = vcmp.ne.s32.totalorder %v326_v28, 0  ;;  %vm650_vm8 = vcmp.lt.s32.totalorder %v326_v28, 0 }
  0x37   : > { %v1094_v35 = vsel %vm792_vm6, %v986_v2, 0.0  ;;  %vm793_vm9 = vcmp.lt.s32.totalorder %v757_v34, 16  ;;  %vm686_vm10 = vmand %vm650_vm8, %vm614_vm7  ;;  %v722_v36 = vadd.s32 18, %v326_v28  ;;  %v1250_v40 = vunpack.c.l.bf16 %v1301_v33 }
  0x38   : > { %1130 = vst [vmem:[%s1509_s25 + $0x40] sm:$0xff] %v1094_v35  ;;  %v1095_v38 = vsel %vm793_vm9, %v987_v4, 0.0  ;;  %v185_v41 = vadd.s32 104, %v1435_v1  ;;  %v336_v43 = vmul.u32 18, %v335_v37  ;;  %v346_v44 = vshrl.u32 %v1574_v32, 4 }
  0x39   : > { %1131 = vst [vmem:[%s1509_s25 + $0x48] sm:$0xff] %v1095_v38  ;;  %v758_v42 = vsel %vm686_vm10, %v722_v36, %v326_v28  ;;  %v1251_v45 = vunpack.c.h.bf16 %v1301_v33  ;;  %v989_v47 = vmax.f32 %v953_v39, 0.0  ;;  %v911_v48 = vmul.f32 %v1250_v40, %v1462_v10  ;;  %v1304_v39 = vld [vmem:[%s1457_s17 + $0x48] sm:$0xff]  }
  0x3a   : > { %vm794_vm11 = vcmp.lt.s32.totalorder %v758_v42, 16  ;;  %v186_v49 = vadd.s32 112, %v1435_v1  ;;  %v337_v51 = vsub.s32 %v183_v16, %v336_v43  ;;  %v347_v52 = vmul.u32 18, %v346_v44  ;;  %v1303_v16 = vld [vmem:[%s1457_s17 + $0x40] sm:$0xff]  }
  0x3b   : > { %v1096_v50 = vsel %vm794_vm11, %v988_v8, 0.0  ;;  %v912_v53 = vmul.f32 %v1251_v45, %v1462_v10  ;;  %v954_v54 = vadd.f32 %v1486_v26, %v911_v48  ;;  %v1254_v57 = vunpack.c.l.bf16 %v1302_v46 }
  0x3c   : > { %1132 = vst [vmem:[%s1509_s25 + $0x50] sm:$0xff] %v1096_v50  ;;  %v1589_v55 = vmul.u32.u64.low 3817748708, %v185_v41  ;;  %v1590_v56 = vmul.u32.u64.high 3817748708, %v185_v41, %v1589_v55  ;;  %vm615_vm12 = vcmp.ne.s32.totalorder %v337_v51, 0  ;;  %vm651_vm13 = vcmp.lt.s32.totalorder %v337_v51, 0 }
  0x3d   : > { %v723_v9 = vadd.s32 18, %v337_v51  ;;  %v348_v58 = vsub.s32 %v184_v18, %v347_v52  ;;  %vm687_vm14 = vmand %vm651_vm13, %vm615_vm12  ;;  %v990_v59 = vmax.f32 %v954_v54, 0.0  ;;  %v955_v60 = vadd.f32 %v1486_v26, %v912_v53 }
  0x3e   : > { %v1593_v61 = vmul.u32.u64.low 3817748708, %v186_v49  ;;  %v1594_v62 = vmul.u32.u64.high 3817748708, %v186_v49, %v1593_v61  ;;  %v357_v2 = vshrl.u32 %v1590_v56, 4  ;;  %v913_v4 = vmul.f32 %v1254_v57, %v1462_v10 }
  0x3f   : > { %v759_v63 = vsel %vm687_vm14, %v723_v9, %v337_v51  ;;  %vm616_vm15 = vcmp.ne.s32.totalorder %v348_v58, 0  ;;  %vm652_vm0 = vcmp.lt.s32.totalorder %v348_v58, 0  ;;  %v724_v0 = vadd.s32 18, %v348_v58 }
  0x40   : > { %vm795_vm1 = vcmp.lt.s32.totalorder %v759_v63, 16  ;;  %vm688_vm2 = vmand %vm652_vm0, %vm616_vm15  ;;  %v991_v3 = vmax.f32 %v955_v60, 0.0  ;;  %v187_v11 = vadd.s32 120, %v1435_v1  ;;  %v1255_v12 = vunpack.c.h.bf16 %v1302_v46 }
  0x41   : > { %v1097_v5 = vsel %vm795_vm1, %v989_v47, 0.0  ;;  %v760_v6 = vsel %vm688_vm2, %v724_v0, %v348_v58  ;;  %v358_v13 = vmul.u32 18, %v357_v2  ;;  %v368_v14 = vshrl.u32 %v1594_v62, 4 }
  0x42   : > { %1133 = vst [vmem:[%s1509_s25 + $0x58] sm:$0xff] %v1097_v5  ;;  %vm796_vm3 = vcmp.lt.s32.totalorder %v760_v6, 16  ;;  %v956_v15 = vadd.f32 %v1486_v26, %v913_v4  ;;  %v1603_v18 = vmul.u32.u64.low 3817748708, %v187_v11  ;;  %v1604_v19 = vmul.u32.u64.high 3817748708, %v187_v11, %v1603_v18  ;;  %v1305_v6 = vld [vmem:[%s1457_s17 + $0x50] sm:$0xff]  }
  0x43   : > { %v1098_v17 = vsel %vm796_vm3, %v990_v59, 0.0  ;;  %v914_v20 = vmul.f32 %v1255_v12, %v1462_v10  ;;  %v359_v7 = vsub.s32 %v185_v41, %v358_v13  ;;  %v369_v21 = vmul.u32 18, %v368_v14 }
  0x44   : > { %1134 = vst [vmem:[%s1509_s25 + $0x60] sm:$0xff] %v1098_v17  ;;  %v992_v22 = vmax.f32 %v956_v15, 0.0  ;;  %v188_v23 = vadd.s32 128, %v1435_v1  ;;  %v1258_v25 = vunpack.c.l.bf16 %v1303_v16  ;;  %v189_v27 = vadd.s32 136, %v1435_v1 }
  0x45   : > { %v957_v24 = vadd.f32 %v1486_v26, %v914_v20  ;;  %v1259_v28 = vunpack.c.h.bf16 %v1303_v16  ;;  %vm617_vm4 = vcmp.ne.s32.totalorder %v359_v7, 0  ;;  %vm653_vm5 = vcmp.lt.s32.totalorder %v359_v7, 0 }
  0x46   : > { %v725_v8 = vadd.s32 18, %v359_v7  ;;  %v370_v29 = vsub.s32 %v186_v49, %v369_v21  ;;  %vm689_vm6 = vmand %vm653_vm5, %vm617_vm4  ;;  %v379_v30 = vshrl.u32 %v1604_v19, 4  ;;  %v915_v37 = vmul.f32 %v1258_v25, %v1462_v10 }
  0x47   : > { %v993_v31 = vmax.f32 %v957_v24, 0.0  ;;  %v1612_v32 = vmul.u32.u64.low 3817748708, %v188_v23  ;;  %v1613_v33 = vmul.u32.u64.high 3817748708, %v188_v23, %v1612_v32  ;;  %v916_v38 = vmul.f32 %v1259_v28, %v1462_v10 }
  0x48   : > { %v761_v34 = vsel %vm689_vm6, %v725_v8, %v359_v7  ;;  %vm618_vm7 = vcmp.ne.s32.totalorder %v370_v29, 0  ;;  %vm654_vm8 = vcmp.lt.s32.totalorder %v370_v29, 0  ;;  %v726_v35 = vadd.s32 18, %v370_v29 }
  0x49   : > { %vm797_vm9 = vcmp.lt.s32.totalorder %v761_v34, 16  ;;  %vm690_vm10 = vmand %vm654_vm8, %vm618_vm7  ;;  %v380_v36 = vmul.u32 18, %v379_v30  ;;  %v1618_v42 = vmul.u32.u64.low 3817748708, %v189_v27  ;;  %v1619_v43 = vmul.u32.u64.high 3817748708, %v189_v27, %v1618_v42 }
  0x4a   : > { %v1099_v40 = vsel %vm797_vm9, %v991_v3, 0.0  ;;  %v762_v41 = vsel %vm690_vm10, %v726_v35, %v370_v29  ;;  %v390_v45 = vshrl.u32 %v1613_v33, 4  ;;  %v958_v46 = vadd.f32 %v1486_v26, %v915_v37 }
  0x4b   : > { %1135 = vst [vmem:[%s1509_s25 + $0x68] sm:$0xff] %v1099_v40  ;;  %vm798_vm11 = vcmp.lt.s32.totalorder %v762_v41, 16  ;;  %v381_v44 = vsub.s32 %v187_v11, %v380_v36  ;;  %v959_v48 = vadd.f32 %v1486_v26, %v916_v38  ;;  %v190_v49 = vadd.s32 144, %v1435_v1  ;;  %v1306_v40 = vld [vmem:[%s1457_s17 + $0x58] sm:$0xff]  }
  0x4c   : > { %v1100_v47 = vsel %vm798_vm11, %v992_v22, 0.0  ;;  %v1262_v50 = vunpack.c.l.bf16 %v1304_v39  ;;  %v391_v52 = vmul.u32 18, %v390_v45  ;;  %v994_v53 = vmax.f32 %v958_v46, 0.0 }
  0x4d   : > { %1136 = vst [vmem:[%s1509_s25 + $0x70] sm:$0xff] %v1100_v47  ;;  %vm619_vm12 = vcmp.ne.s32.totalorder %v381_v44, 0  ;;  %vm655_vm13 = vcmp.lt.s32.totalorder %v381_v44, 0  ;;  %v727_v51 = vadd.s32 18, %v381_v44  ;;  %v401_v54 = vshrl.u32 %v1619_v43, 4 }
  0x4e   : > { %vm691_vm14 = vmand %vm655_vm13, %vm619_vm12  ;;  %v995_v55 = vmax.f32 %v959_v48, 0.0  ;;  %v917_v56 = vmul.f32 %v1262_v50, %v1462_v10  ;;  %v392_v9 = vsub.s32 %v188_v23, %v391_v52  ;;  %v191_v62 = vadd.s32 152, %v1435_v1 }
  0x4f   : > { %v763_v57 = vsel %vm691_vm14, %v727_v51, %v381_v44  ;;  %v1629_v58 = vmul.u32.u64.low 3817748708, %v190_v49  ;;  %v1630_v59 = vmul.u32.u64.high 3817748708, %v190_v49, %v1629_v58  ;;  %v402_v60 = vmul.u32 18, %v401_v54 }
  0x50   : > { %vm799_vm15 = vcmp.lt.s32.totalorder %v763_v57, 16  ;;  %v960_v61 = vadd.f32 %v1486_v26, %v917_v56  ;;  %vm620_vm0 = vcmp.ne.s32.totalorder %v392_v9, 0  ;;  %vm656_vm1 = vcmp.lt.s32.totalorder %v392_v9, 0  ;;  %v1307_v58 = vld [vmem:[%s1457_s17 + $0x60] sm:$0xff]  }
  0x51   : > { %v1101_v63 = vsel %vm799_vm15, %v993_v31, 0.0  ;;  %v728_v0 = vadd.s32 18, %v392_v9  ;;  %vm692_vm2 = vmand %vm656_vm1, %vm620_vm0  ;;  %v403_v2 = vsub.s32 %v189_v27, %v402_v60  ;;  %v412_v12 = vshrl.u32 %v1630_v59, 4 }
  0x52   : > { %1137 = vst [vmem:[%s1509_s25 + $0x78] sm:$0xff] %v1101_v63  ;;  %v996_v3 = vmax.f32 %v960_v61, 0.0  ;;  %v1635_v4 = vmul.u32.u64.low 3817748708, %v191_v62  ;;  %v1636_v5 = vmul.u32.u64.high 3817748708, %v191_v62, %v1635_v4  ;;  %v1263_v13 = vunpack.c.h.bf16 %v1304_v39 }
  0x53   : > { %v764_v11 = vsel %vm692_vm2, %v728_v0, %v392_v9  ;;  %v192_v14 = vadd.s32 160, %v1435_v1  ;;  %vm621_vm4 = vcmp.ne.s32.totalorder %v403_v2, 0  ;;  %vm657_vm5 = vcmp.lt.s32.totalorder %v403_v2, 0 }
  0x54   : > { %vm800_vm3 = vcmp.lt.s32.totalorder %v764_v11, 16  ;;  %v729_v15 = vadd.s32 18, %v403_v2  ;;  %vm693_vm6 = vmand %vm657_vm5, %vm621_vm4  ;;  %v413_v17 = vmul.u32 18, %v412_v12  ;;  %v918_v18 = vmul.f32 %v1263_v13, %v1462_v10 }
  0x55   : > { %v1102_v16 = vsel %vm800_vm3, %v994_v53, 0.0  ;;  %v1266_v19 = vunpack.c.l.bf16 %v1305_v6  ;;  %v423_v7 = vshrl.u32 %v1636_v5, 4  ;;  %v193_v8 = vadd.s32 168, %v1435_v1 }
  0x56   : > { %1138 = vst [vmem:[%s1509_s25 + $0x80] sm:$0xff] %v1102_v16  ;;  %v765_v20 = vsel %vm693_vm6, %v729_v15, %v403_v2  ;;  %v1644_v21 = vmul.u32.u64.low 3817748708, %v192_v14  ;;  %v1645_v22 = vmul.u32.u64.high 3817748708, %v192_v14, %v1644_v21  ;;  %v414_v23 = vsub.s32 %v190_v49, %v413_v17 }
  0x57   : > { %vm801_vm7 = vcmp.lt.s32.totalorder %v765_v20, 16  ;;  %v961_v24 = vadd.f32 %v1486_v26, %v918_v18  ;;  %v919_v25 = vmul.f32 %v1266_v19, %v1462_v10  ;;  %v424_v28 = vmul.u32 18, %v423_v7 }
  0x58   : > { %v1103_v27 = vsel %vm801_vm7, %v995_v55, 0.0  ;;  %v1267_v29 = vunpack.c.h.bf16 %v1305_v6  ;;  %vm622_vm8 = vcmp.ne.s32.totalorder %v414_v23, 0  ;;  %vm658_vm9 = vcmp.lt.s32.totalorder %v414_v23, 0 }
  0x59   : > { %1139 = vst [vmem:[%s1509_s25 + $0x88] sm:$0xff] %v1103_v27  ;;  %v730_v30 = vadd.s32 18, %v414_v23  ;;  %v997_v31 = vmax.f32 %v961_v24, 0.0  ;;  %vm694_vm10 = vmand %vm658_vm9, %vm622_vm8  ;;  %v425_v32 = vsub.s32 %v191_v62, %v424_v28  ;;  %v434_v33 = vshrl.u32 %v1645_v22, 4 }
  0x5a   : > { %v962_v34 = vadd.f32 %v1486_v26, %v919_v25  ;;  %v920_v35 = vmul.f32 %v1267_v29, %v1462_v10  ;;  %v1654_v37 = vmul.u32.u64.low 3817748708, %v193_v8  ;;  %v1655_v38 = vmul.u32.u64.high 3817748708, %v193_v8, %v1654_v37  ;;  %v1308_v25 = vld [vmem:[%s1457_s17 + $0x68] sm:$0xff]  }
  0x5b   : > { %v766_v36 = vsel %vm694_vm10, %v730_v30, %v414_v23  ;;  %v194_v39 = vadd.s32 176, %v1435_v1  ;;  %vm623_vm12 = vcmp.ne.s32.totalorder %v425_v32, 0  ;;  %vm659_vm13 = vcmp.lt.s32.totalorder %v425_v32, 0 }
  0x5c   : > { %vm802_vm11 = vcmp.lt.s32.totalorder %v766_v36, 16  ;;  %v731_v41 = vadd.s32 18, %v425_v32  ;;  %vm695_vm14 = vmand %vm659_vm13, %vm623_vm12  ;;  %v435_v43 = vmul.u32 18, %v434_v33  ;;  %v998_v44 = vmax.f32 %v962_v34, 0.0 }
  0x5d   : > { %v1104_v42 = vsel %vm802_vm11, %v996_v3, 0.0  ;;  %v963_v45 = vadd.f32 %v1486_v26, %v920_v35  ;;  %v1661_v47 = vmul.u32.u64.low 3817748708, %v194_v39  ;;  %v1662_v48 = vmul.u32.u64.high 3817748708, %v194_v39, %v1661_v47 }
  0x5e   : > { %1140 = vst [vmem:[%s1509_s25 + $0x90] sm:$0xff] %v1104_v42  ;;  %v767_v46 = vsel %vm695_vm14, %v731_v41, %v425_v32  ;;  %v1270_v49 = vunpack.c.l.bf16 %v1306_v40  ;;  %v436_v50 = vsub.s32 %v192_v14, %v435_v43  ;;  %v445_v51 = vshrl.u32 %v1655_v38, 4 }
  0x5f   : > { %vm803_vm15 = vcmp.lt.s32.totalorder %v767_v46, 16  ;;  %v999_v52 = vmax.f32 %v963_v45, 0.0  ;;  %v195_v55 = vadd.s32 184, %v1435_v1  ;;  %v1271_v56 = vunpack.c.h.bf16 %v1306_v40 }
  0x60   : > { %v1105_v53 = vsel %vm803_vm15, %v997_v31, 0.0  ;;  %v921_v54 = vmul.f32 %v1270_v49, %v1462_v10  ;;  %vm624_vm0 = vcmp.ne.s32.totalorder %v436_v50, 0  ;;  %vm660_vm1 = vcmp.lt.s32.totalorder %v436_v50, 0 }
  0x61   : > { %1141 = vst [vmem:[%s1509_s25 + $0x98] sm:$0xff] %v1105_v53  ;;  %v732_v57 = vadd.s32 18, %v436_v50  ;;  %v446_v9 = vmul.u32 18, %v445_v51  ;;  %vm696_vm2 = vmand %vm660_vm1, %vm624_vm0  ;;  %v456_v59 = vshrl.u32 %v1662_v48, 4  ;;  %v922_v2 = vmul.f32 %v1271_v56, %v1462_v10 }
  0x62   : > { %v964_v60 = vadd.f32 %v1486_v26, %v921_v54  ;;  %v1671_v61 = vmul.u32.u64.low 3817748708, %v195_v55  ;;  %v1672_v62 = vmul.u32.u64.high 3817748708, %v195_v55, %v1671_v61  ;;  %v196_v3 = vadd.s32 192, %v1435_v1 }
  0x63   : > { %v768_v63 = vsel %vm696_vm2, %v732_v57, %v436_v50  ;;  %v447_v0 = vsub.s32 %v193_v8, %v446_v9  ;;  %v457_v4 = vmul.u32 18, %v456_v59  ;;  %v1274_v6 = vunpack.c.l.bf16 %v1307_v58  ;;  %v1309_v59 = vld [vmem:[%s1457_s17 + $0x70] sm:$0xff]  }
  0x64   : > { %vm804_vm3 = vcmp.lt.s32.totalorder %v768_v63, 16  ;;  %v1000_v5 = vmax.f32 %v964_v60, 0.0  ;;  %v467_v14 = vshrl.u32 %v1672_v62, 4  ;;  %v965_v15 = vadd.f32 %v1486_v26, %v922_v2 }
  0x65   : > { %v1106_v11 = vsel %vm804_vm3, %v998_v44, 0.0  ;;  %vm625_vm4 = vcmp.ne.s32.totalorder %v447_v0, 0  ;;  %vm661_vm5 = vcmp.lt.s32.totalorder %v447_v0, 0  ;;  %v733_v12 = vadd.s32 18, %v447_v0 }
  0x66   : > { %1142 = vst [vmem:[%s1509_s25 + $0xa0] sm:$0xff] %v1106_v11  ;;  %vm697_vm6 = vmand %vm661_vm5, %vm625_vm4  ;;  %v458_v13 = vsub.s32 %v194_v39, %v457_v4  ;;  %v923_v16 = vmul.f32 %v1274_v6, %v1462_v10  ;;  %v1680_v18 = vmul.u32.u64.low 3817748708, %v196_v3  ;;  %v1681_v19 = vmul.u32.u64.high 3817748708, %v196_v3, %v1680_v18 }
  0x67   : > { %v769_v17 = vsel %vm697_vm6, %v733_v12, %v447_v0  ;;  %v197_v20 = vadd.s32 200, %v1435_v1  ;;  %v468_v22 = vmul.u32 18, %v467_v14  ;;  %v1001_v23 = vmax.f32 %v965_v15, 0.0 }
  0x68   : > { %vm805_vm7 = vcmp.lt.s32.totalorder %v769_v17, 16  ;;  %vm626_vm8 = vcmp.ne.s32.totalorder %v458_v13, 0  ;;  %vm662_vm9 = vcmp.lt.s32.totalorder %v458_v13, 0  ;;  %v734_v7 = vadd.s32 18, %v458_v13 }
  0x69   : > { %v1107_v21 = vsel %vm805_vm7, %v999_v52, 0.0  ;;  %vm698_vm10 = vmand %vm662_vm9, %vm626_vm8  ;;  %v966_v24 = vadd.f32 %v1486_v26, %v923_v16  ;;  %v1687_v28 = vmul.u32.u64.low 3817748708, %v197_v20  ;;  %v1688_v8 = vmul.u32.u64.high 3817748708, %v197_v20, %v1687_v28 }
  0x6a   : > { %1143 = vst [vmem:[%s1509_s25 + $0xa8] sm:$0xff] %v1107_v21  ;;  %v770_v27 = vsel %vm698_vm10, %v734_v7, %v458_v13  ;;  %v1275_v29 = vunpack.c.h.bf16 %v1307_v58  ;;  %v469_v30 = vsub.s32 %v195_v55, %v468_v22  ;;  %v478_v31 = vshrl.u32 %v1681_v19, 4  ;;  %v1310_v19 = vld [vmem:[%s1457_s17 + $0x78] sm:$0xff]  }
  0x6b   : > { %vm806_vm11 = vcmp.lt.s32.totalorder %v770_v27, 16  ;;  %v1002_v32 = vmax.f32 %v966_v24, 0.0  ;;  %v198_v35 = vadd.s32 208, %v1435_v1  ;;  %v1278_v36 = vunpack.c.l.bf16 %v1308_v25  ;;  %v1728_v24 = vld [vmem:[%s1796_s1] ss:$0 sm:$0xff] }
  0x6c   : > { %v1108_v33 = vsel %vm806_vm11, %v1000_v5, 0.0  ;;  %v924_v34 = vmul.f32 %v1275_v29, %v1462_v10  ;;  %vm627_vm12 = vcmp.ne.s32.totalorder %v469_v30, 0  ;;  %vm663_vm13 = vcmp.lt.s32.totalorder %v469_v30, 0 }
  0x6d   : > { %1144 = vst [vmem:[%s1509_s25 + $0xb0] sm:$0xff] %v1108_v33  ;;  %v735_v37 = vadd.s32 18, %v469_v30  ;;  %v479_v38 = vmul.u32 18, %v478_v31  ;;  %vm699_vm14 = vmand %vm663_vm13, %vm627_vm12  ;;  %v489_v39 = vshrl.u32 %v1688_v8, 4  ;;  %v925_v45 = vmul.f32 %v1278_v36, %v1462_v10  ;;  %v1737_v33 = vld [vmem:[%s1797_s2] ss:$0 sm:$0xff] }
  0x6e   : > { %v967_v40 = vadd.f32 %v1486_v26, %v924_v34  ;;  %v1696_v41 = vmul.u32.u64.low 3817748708, %v198_v35  ;;  %v1697_v42 = vmul.u32.u64.high 3817748708, %v198_v35, %v1696_v41  ;;  %v199_v46 = vadd.s32 216, %v1435_v1 }
  0x6f   : > { %v771_v43 = vsel %vm699_vm14, %v735_v37, %v469_v30  ;;  %v480_v44 = vsub.s32 %v196_v3, %v479_v38  ;;  %v490_v47 = vmul.u32 18, %v489_v39  ;;  %v1279_v49 = vunpack.c.h.bf16 %v1308_v25 }
  0x70   : > { %vm807_vm15 = vcmp.lt.s32.totalorder %v771_v43, 16  ;;  %v1003_v48 = vmax.f32 %v967_v40, 0.0  ;;  %v500_v53 = vshrl.u32 %v1697_v42, 4  ;;  %v968_v54 = vadd.f32 %v1486_v26, %v925_v45  ;;  %v1311_v45 = vld [vmem:[%s1457_s17 + $0x80] sm:$0xff]  }
  0x71   : > { %v1109_v50 = vsel %vm807_vm15, %v1001_v23, 0.0  ;;  %vm628_vm0 = vcmp.ne.s32.totalorder %v480_v44, 0  ;;  %vm664_vm1 = vcmp.lt.s32.totalorder %v480_v44, 0  ;;  %v736_v51 = vadd.s32 18, %v480_v44 }
  0x72   : > { %1145 = vst [vmem:[%s1509_s25 + $0xb8] sm:$0xff] %v1109_v50  ;;  %vm700_vm2 = vmand %vm664_vm1, %vm628_vm0  ;;  %v491_v52 = vsub.s32 %v197_v20, %v490_v47  ;;  %v926_v55 = vmul.f32 %v1279_v49, %v1462_v10  ;;  %v1705_v57 = vmul.u32.u64.low 3817748708, %v199_v46  ;;  %v1706_v9 = vmul.u32.u64.high 3817748708, %v199_v46, %v1705_v57 }
  0x73   : > { %v772_v56 = vsel %vm700_vm2, %v736_v51, %v480_v44  ;;  %v200_v58 = vadd.s32 224, %v1435_v1  ;;  %v501_v62 = vmul.u32 18, %v500_v53  ;;  %v1004_v63 = vmax.f32 %v968_v54, 0.0 }
  0x74   : > { %vm808_vm3 = vcmp.lt.s32.totalorder %v772_v56, 16  ;;  %vm629_vm4 = vcmp.ne.s32.totalorder %v491_v52, 0  ;;  %vm665_vm5 = vcmp.lt.s32.totalorder %v491_v52, 0  ;;  %v737_v60 = vadd.s32 18, %v491_v52 }
  0x75   : > { %v1110_v61 = vsel %vm808_vm3, %v1002_v32, 0.0  ;;  %vm701_vm6 = vmand %vm665_vm5, %vm629_vm4  ;;  %v969_v0 = vadd.f32 %v1486_v26, %v926_v55  ;;  %v1712_v3 = vmul.u32.u64.low 3817748708, %v200_v58  ;;  %v1713_v4 = vmul.u32.u64.high 3817748708, %v200_v58, %v1712_v3 }
  0x76   : > { %1146 = vst [vmem:[%s1509_s25 + $0xc0] sm:$0xff] %v1110_v61  ;;  %v773_v2 = vsel %vm701_vm6, %v737_v60, %v491_v52  ;;  %v1282_v5 = vunpack.c.l.bf16 %v1309_v59  ;;  %v502_v6 = vsub.s32 %v198_v35, %v501_v62  ;;  %v511_v11 = vshrl.u32 %v1706_v9, 4 }
  0x77   : > { %vm809_vm7 = vcmp.lt.s32.totalorder %v773_v2, 16  ;;  %v1005_v12 = vmax.f32 %v969_v0, 0.0  ;;  %v201_v15 = vadd.s32 232, %v1435_v1  ;;  %v1283_v16 = vunpack.c.h.bf16 %v1309_v59 }
  0x78   : > { %v1111_v13 = vsel %vm809_vm7, %v1003_v48, 0.0  ;;  %v927_v14 = vmul.f32 %v1282_v5, %v1462_v10  ;;  %vm630_vm8 = vcmp.ne.s32.totalorder %v502_v6, 0  ;;  %vm666_vm9 = vcmp.lt.s32.totalorder %v502_v6, 0 }
  0x79   : > { %1147 = vst [vmem:[%s1509_s25 + $0xc8] sm:$0xff] %v1111_v13  ;;  %v738_v17 = vadd.s32 18, %v502_v6  ;;  %v512_v18 = vmul.u32 18, %v511_v11  ;;  %vm702_vm10 = vmand %vm666_vm9, %vm630_vm8  ;;  %v522_v20 = vshrl.u32 %v1713_v4, 4  ;;  %v928_v25 = vmul.f32 %v1728_v24, %v1283_v16 }
  0x7a   : > { %v970_v7 = vadd.f32 %v1486_v26, %v927_v14  ;;  %v1722_v21 = vmul.u32.u64.low 3817748708, %v201_v15  ;;  %v1723_v22 = vmul.u32.u64.high 3817748708, %v201_v15, %v1722_v21  ;;  %v202_v27 = vadd.s32 240, %v1435_v1 }
  0x7b   : > { %v774_v23 = vsel %vm702_vm10, %v738_v17, %v502_v6  ;;  %v513_v10 = vsub.s32 %v199_v46, %v512_v18  ;;  %v523_v28 = vmul.u32 18, %v522_v20  ;;  %v1286_v29 = vunpack.c.l.bf16 %v1310_v19  ;;  %v1312_v20 = vld [vmem:[%s1457_s17 + $0x88] sm:$0xff]  }
  0x7c   : > { %vm810_vm11 = vcmp.lt.s32.totalorder %v774_v23, 16  ;;  %v1006_v8 = vmax.f32 %v970_v7, 0.0  ;;  %v533_v32 = vshrl.u32 %v1723_v22, 4  ;;  %v971_v34 = vadd.f32 %v1737_v33, %v928_v25 }
  0x7d   : > { %v1112_v30 = vsel %vm810_vm11, %v1004_v63, 0.0  ;;  %vm631_vm12 = vcmp.ne.s32.totalorder %v513_v10, 0  ;;  %vm667_vm13 = vcmp.lt.s32.totalorder %v513_v10, 0  ;;  %v739_v26 = vadd.s32 18, %v513_v10 }
  0x7e   : > { %1148 = vst [vmem:[%s1509_s25 + $0xd0] sm:$0xff] %v1112_v30  ;;  %vm703_vm14 = vmand %vm667_vm13, %vm631_vm12  ;;  %v524_v31 = vsub.s32 %v200_v58, %v523_v28  ;;  %v929_v35 = vmul.f32 %v1728_v24, %v1286_v29  ;;  %v1741_v37 = vmul.u32.u64.low 3817748708, %v202_v27  ;;  %v1742_v38 = vmul.u32.u64.high 3817748708, %v202_v27, %v1741_v37 }
  0x7f   : > { %v775_v36 = vsel %vm703_vm14, %v739_v26, %v513_v10  ;;  %v203_v39 = vadd.s32 248, %v1435_v1  ;;  %v534_v42 = vmul.u32 18, %v533_v32  ;;  %v1007_v43 = vmax.f32 %v971_v34, 0.0 }
  0x80   : > { %vm811_vm15 = vcmp.lt.s32.totalorder %v775_v36, 16  ;;  %vm632_vm0 = vcmp.ne.s32.totalorder %v524_v31, 0  ;;  %vm668_vm1 = vcmp.lt.s32.totalorder %v524_v31, 0  ;;  %v740_v40 = vadd.s32 18, %v524_v31 }
  0x81   : > { %v1113_v41 = vsel %vm811_vm15, %v1005_v12, 0.0  ;;  %vm704_vm2 = vmand %vm668_vm1, %vm632_vm0  ;;  %v972_v44 = vadd.f32 %v1737_v33, %v929_v35  ;;  %v1748_v47 = vmul.u32.u64.low 3817748708, %v203_v39  ;;  %v1749_v48 = vmul.u32.u64.high 3817748708, %v203_v39, %v1748_v47 }
  0x82   : > { %1149 = vst [vmem:[%s1509_s25 + $0xd8] sm:$0xff] %v1113_v41  ;;  %v776_v46 = vsel %vm704_vm2, %v740_v40, %v524_v31  ;;  %v1287_v49 = vunpack.c.h.bf16 %v1310_v19  ;;  %v535_v50 = vsub.s32 %v201_v15, %v534_v42  ;;  %v544_v51 = vshrl.u32 %v1742_v38, 4 }
  0x83   : > { %vm812_vm3 = vcmp.lt.s32.totalorder %v776_v46, 16  ;;  %v1008_v52 = vmax.f32 %v972_v44, 0.0  ;;  %v204_v55 = vadd.s32 256, %v1435_v1  ;;  %v1290_v56 = vunpack.c.l.bf16 %v1311_v45 }
  0x84   : > { %v1114_v53 = vsel %vm812_vm3, %v1006_v8, 0.0  ;;  %v930_v54 = vmul.f32 %v1728_v24, %v1287_v49  ;;  %vm633_vm4 = vcmp.ne.s32.totalorder %v535_v50, 0  ;;  %vm669_vm5 = vcmp.lt.s32.totalorder %v535_v50, 0 }
  0x85   : > { %1150 = vst [vmem:[%s1509_s25 + $0xe0] sm:$0xff] %v1114_v53  ;;  %v741_v57 = vadd.s32 18, %v535_v50  ;;  %v545_v9 = vmul.u32 18, %v544_v51  ;;  %vm705_vm6 = vmand %vm669_vm5, %vm633_vm4  ;;  %v555_v58 = vshrl.u32 %v1749_v48, 4  ;;  %v931_v0 = vmul.f32 %v1728_v24, %v1290_v56 }
  0x86   : > { %v973_v59 = vadd.f32 %v1737_v33, %v930_v54  ;;  %v1757_v60 = vmul.u32.u64.low 3817748708, %v204_v55  ;;  %v1758_v61 = vmul.u32.u64.high 3817748708, %v204_v55, %v1757_v60  ;;  %v205_v2 = vadd.s32 264, %v1435_v1 }
  0x87   : > { %v777_v62 = vsel %vm705_vm6, %v741_v57, %v535_v50  ;;  %v546_v63 = vsub.s32 %v202_v27, %v545_v9  ;;  %v556_v3 = vmul.u32 18, %v555_v58  ;;  %v1291_v5 = vunpack.c.h.bf16 %v1311_v45 }
  0x88   : > { %vm813_vm7 = vcmp.lt.s32.totalorder %v777_v62, 16  ;;  %v1009_v4 = vmax.f32 %v973_v59, 0.0  ;;  %v566_v13 = vshrl.u32 %v1758_v61, 4  ;;  %v974_v14 = vadd.f32 %v1737_v33, %v931_v0 }
  0x89   : > { %v1115_v6 = vsel %vm813_vm7, %v1007_v43, 0.0  ;;  %vm634_vm8 = vcmp.ne.s32.totalorder %v546_v63, 0  ;;  %vm670_vm9 = vcmp.lt.s32.totalorder %v546_v63, 0  ;;  %v742_v11 = vadd.s32 18, %v546_v63 }
  0x8a   : > { %1151 = vst [vmem:[%s1509_s25 + $0xe8] sm:$0xff] %v1115_v6  ;;  %vm706_vm10 = vmand %vm670_vm9, %vm634_vm8  ;;  %v557_v12 = vsub.s32 %v203_v39, %v556_v3  ;;  %v932_v15 = vmul.f32 %v1728_v24, %v1291_v5  ;;  %v1766_v17 = vmul.u32.u64.low 3817748708, %v205_v2  ;;  %v1767_v18 = vmul.u32.u64.high 3817748708, %v205_v2, %v1766_v17 }
  0x8b   : > { %v778_v16 = vsel %vm706_vm10, %v742_v11, %v546_v63  ;;  %v206_v19 = vadd.s32 272, %v1435_v1  ;;  %v567_v22 = vmul.u32 18, %v566_v13  ;;  %v1010_v23 = vmax.f32 %v974_v14, 0.0 }
  0x8c   : > { %vm814_vm11 = vcmp.lt.s32.totalorder %v778_v16, 16  ;;  %vm635_vm12 = vcmp.ne.s32.totalorder %v557_v12, 0  ;;  %vm671_vm13 = vcmp.lt.s32.totalorder %v557_v12, 0  ;;  %v743_v7 = vadd.s32 18, %v557_v12 }
  0x8d   : > { %v1116_v21 = vsel %vm814_vm11, %v1008_v52, 0.0  ;;  %vm707_vm14 = vmand %vm671_vm13, %vm635_vm12  ;;  %v1772_v25 = vmul.u32.u64.low 3817748708, %v206_v19  ;;  %v1773_v27 = vmul.u32.u64.high 3817748708, %v206_v19, %v1772_v25  ;;  %v1294_v28 = vunpack.c.l.bf16 %v1312_v20 }
  0x8e   : > { %1152 = vst [vmem:[%s1509_s25 + $0xf0] sm:$0xff] %v1116_v21  ;;  %v779_v10 = vsel %vm707_vm14, %v743_v7, %v557_v12  ;;  %v568_v8 = vsub.s32 %v204_v55, %v567_v22  ;;  %v577_v29 = vshrl.u32 %v1767_v18, 4  ;;  %v975_v30 = vadd.f32 %v1737_v33, %v932_v15 }
  0x8f   : > { %vm815_vm15 = vcmp.lt.s32.totalorder %v779_v10, 16  ;;  %v933_v31 = vmul.f32 %v1728_v24, %v1294_v28  ;;  %v207_v32 = vadd.s32 280, %v1435_v1  ;;  %v1295_v34 = vunpack.c.h.bf16 %v1312_v20 }
  0x90   : > { %v1117_v26 = vsel %vm815_vm15, %v1009_v4, 0.0  ;;  %vm636_vm0 = vcmp.ne.s32.totalorder %v568_v8, 0  ;;  %vm672_vm1 = vcmp.lt.s32.totalorder %v568_v8, 0  ;;  %v744_v35 = vadd.s32 18, %v568_v8 }
  0x91   : > { %1153 = vst [vmem:[%s1509_s25 + $0xf8] sm:$0xff] %v1117_v26  ;;  %v578_v36 = vmul.u32 18, %v577_v29  ;;  %vm708_vm2 = vmand %vm672_vm1, %vm636_vm0  ;;  %v588_v37 = vshrl.u32 %v1773_v27, 4  ;;  %v1781_v38 = vmul.u32.u64.low 3817748708, %v207_v32  ;;  %v1782_v39 = vmul.u32.u64.high 3817748708, %v207_v32, %v1781_v38 }
  0x92   : > { %v780_v40 = vsel %vm708_vm2, %v744_v35, %v568_v8  ;;  %v976_v42 = vadd.f32 %v1737_v33, %v933_v31  ;;  %v1011_v43 = vmax.f32 %v975_v30, 0.0  ;;  %v934_v44 = vmul.f32 %v1728_v24, %v1295_v34 }
  0x93   : > { %v579_v41 = vsub.s32 %v205_v2, %v578_v36  ;;  %vm816_vm3 = vcmp.lt.s32.totalorder %v780_v40, 16  ;;  %v589_v1 = vmul.u32 18, %v588_v37  ;;  %v599_v48 = vshrl.u32 %v1782_v39, 4 }
  0x94   : > { %v1118_v45 = vsel %vm816_vm3, %v1010_v23, 0.0  ;;  %v1012_v50 = vmax.f32 %v976_v42, 0.0  ;;  %v977_v53 = vadd.f32 %v1737_v33, %v934_v44 }
  0x95   : > { %vm637_vm4 = vcmp.ne.s32.totalorder %v579_v41, 0  ;;  %vm673_vm5 = vcmp.lt.s32.totalorder %v579_v41, 0  ;;  %v745_v46 = vadd.s32 18, %v579_v41  ;;  %1154 = vst [vmem:[%s1509_s25 + $0x100] sm:$0xff] %v1118_v45  ;;  %v590_v47 = vsub.s32 %v206_v19, %v589_v1 }
  0x96   : > { %vm709_vm6 = vmand %vm673_vm5, %vm637_vm4  ;;  %v600_v24 = vmul.u32 18, %v599_v48  ;;  %v1013_v9 = vmax.f32 %v977_v53, 0.0 }
  0x97   : > { %v781_v49 = vsel %vm709_vm6, %v745_v46, %v579_v41  ;;  %vm638_vm8 = vcmp.ne.s32.totalorder %v590_v47, 0  ;;  %vm674_vm9 = vcmp.lt.s32.totalorder %v590_v47, 0  ;;  %v746_v51 = vadd.s32 18, %v590_v47 }
  0x98   : > { %vm817_vm7 = vcmp.lt.s32.totalorder %v781_v49, 16  ;;  %vm710_vm10 = vmand %vm674_vm9, %vm638_vm8  ;;  %v601_v55 = vsub.s32 %v207_v32, %v600_v24 }
  0x99   : > { %v1119_v52 = vsel %vm817_vm7, %v1011_v43, 0.0  ;;  %v782_v54 = vsel %vm710_vm10, %v746_v51, %v590_v47 }
  0x9a   : > { %1155 = vst [vmem:[%s1509_s25 + $0x108] sm:$0xff] %v1119_v52  ;;  %vm818_vm11 = vcmp.lt.s32.totalorder %v782_v54, 16  ;;  %vm639_vm12 = vcmp.ne.s32.totalorder %v601_v55, 0  ;;  %vm675_vm13 = vcmp.lt.s32.totalorder %v601_v55, 0  ;;  %v747_v57 = vadd.s32 18, %v601_v55 }
  0x9b   : > { %v1120_v56 = vsel %vm818_vm11, %v1012_v50, 0.0  ;;  %vm711_vm14 = vmand %vm675_vm13, %vm639_vm12 }
  0x9c   : > { %1156 = vst [vmem:[%s1509_s25 + $0x110] sm:$0xff] %v1120_v56  ;;  %v783_v58 = vsel %vm711_vm14, %v747_v57, %v601_v55 }
  0x9d   : > { %vm819_vm15 = vcmp.lt.s32.totalorder %v783_v58, 16 }
  0x9e   : > { %v1121_v59 = vsel %vm819_vm15, %v1013_v9, 0.0 }
  0x9f   : > { %1157 = vst [vmem:[%s1509_s25 + $0x118] sm:$0xff] %v1121_v59 }
  0xa0 PF: > { %s13_s12 = sadd.s32 1, %s1403_s12  }
  0xa1   : > { %p10_p4 = scmp.ge.s32.totalorder %s13_s12, 4  }
  0xa3   :  { %12 = sbr.rel (!%p10_p4) target bundleno = 1 (0x1), region = 62 }

// kernel: bridge_forward.4
= control target key start
LH: loop header
LB: loop body
LE: loop exit
PB: predicated region body
PF: predicated region fallthrough
CT: control target
= control target key end

     0   :  { %s7176_s12 = smov 0   ;;  %s10117_s0 = inlined_call_operand.vmem [shape: bf16[2,336,128], index: 0, kind: input, shape index: {}]   ;;  %s10118_s1 = inlined_call_operand.vmem [shape: bf16[9,128,128], index: 1, kind: input, shape index: {}]   ;;  %s10119_s2 = inlined_call_operand.vmem [shape: bf16[2,288,128], index: 2, kind: output, shape index: {0}]   ;;  %s10120_s3 = inlined_call_operand.vmem [shape: f32[2,2,128], index: 3, kind: output, shape index: {1}]  }
   0x1 LB: > { %s5394_s13 = sadd.s32 4294967295, %s7154_s12   ;;  %p5398_p0 = scmp.ge.s32.totalorder %s7154_s12, 1  ;;  %s7154_s12 = sphi %s7176_s12, %s14_s12  }
   0x2   : > { %p140_p1 = scmp.lt.s32.totalorder %s7154_s12, 3 }
   0x4   : > { %p141_p2 = pnand %p5398_p0, %p140_p1 }
   0x6   : > { %144 = sbr.rel (%p141_p2) target bundleno = 633 (0x279), region = 28 }
   0xd   : > { %v6969_v0 = vld [vmem:[%s10118_s1 + $0x40] sm:$0xff]   ;;  %p168_p3 = scmp.lt.s32.totalorder %s5394_s13, 1  ;;  %v6971_v2 = vld [vmem:[%s10118_s1 + $0x48] sm:$0xff]   ;;  %v6973_v4 = vld [vmem:[%s10118_s1 + $0x50] sm:$0xff]   ;;  %vm347_vm0 = vcmask 1044480   ;;  %vm3511_vm4 = vcmask 1046528  }
   0xe   : > { %v6970_v1 = vld [vmem:[%s10118_s1 + $0x100] sm:$0xff]   ;;  %6115 = vmatprep.subr.bf16.mxu1 %v6969_v0  ;;  %v6972_v3 = vld [vmem:[%s10118_s1 + $0x108] sm:$0xff]   ;;  %v6974_v5 = vld [vmem:[%s10118_s1 + $0x110] sm:$0xff]   ;;  %vm2488_vm1 = vsmask.f32 7424 }
   0xf   : > { %6323 = vmatprep.subr.bf16.mxu0 %v6970_v1  ;;  %6116 = vmatpush3.bf16.msra.mxu1 %v6969_v0  ;;  %s10720_s13 = smov (!%p168_p3, %s5394_s13), 1  ;;  %v6975_v6 = vld [vmem:[%s10118_s1 + $0x58] sm:$0xff]   ;;  %v6977_v8 = vld [vmem:[%s10118_s1 + $0x60] sm:$0xff]   ;;  %v6979_v10 = vld [vmem:[%s10118_s1 + $0x68] sm:$0xff]   ;;  %vm631_vm2 = vsmask.f32 5376 }
  0x10   : > { %6324 = vmatpush3.bf16.msra.mxu0 %v6970_v1  ;;  %6117 = vmatprep.subr.bf16.mxu1 %v6971_v2  ;;  %v6976_v7 = vld [vmem:[%s10118_s1 + $0x118] sm:$0xff]   ;;  %s6887_s30 = smul.u32 168, %s10720_s13  ;;  %v6978_v9 = vld [vmem:[%s10118_s1 + $0x120] sm:$0xff]   ;;  %v6980_v11 = vld [vmem:[%s10118_s1 + $0x128] sm:$0xff]   ;;  %vm1066_vm3 = vsmask.f32 4352 }
  0x11   : > { %6325 = vmatprep.subr.bf16.mxu0 %v6972_v3  ;;  %v6981_v23 = vld [vmem:[%s10118_s1 + $0x70] sm:$0xff]   ;;  %v6983_v26 = vld [vmem:[%s10118_s1 + $0x78] sm:$0xff]   ;;  %v6991_v37 = vld [vmem:[%s10118_s1] sm:$0xff]   ;;  %vm3849_vm5 = vsmask.f32 6400  ;;  %s5401_s9 = sshll.u32 %s10720_s13, 1 }
  0x12   : > { %s7220_s10 = scalar_lea.vmem %s10117_s0, %s6887_s30  ;;  %v6982_v25 = vld [vmem:[%s10118_s1 + $0x130] sm:$0xff]   ;;  %v6984_v29 = vld [vmem:[%s10118_s1 + $0x138] sm:$0xff]   ;;  %v6993_v43 = vld [vmem:[%s10118_s1 + $0x140] sm:$0xff]   ;;  %s181_s15 = scalar_lea.vmem %s10120_s3, %s5401_s9 }
  0x13   : > { %6118 = vmatpush3.bf16.msra.mxu1 %v6971_v2  ;;  %v7229_v12 = vld [vmem:[%s7220_s10 + $0x4] sm:$0xf]  ;;  %v236_v13 = vld [vmem:[%s7220_s10] sm:$0x8]  ;;  %v7233_v14 = vld [vmem:[%s7220_s10 + $0x8] sm:$0xff]  }
  0x14   : > { %6326 = vmatpush3.bf16.msra.mxu0 %v6972_v3  ;;  %6119 = vmatprep.subr.bf16.mxu1 %v6973_v4  ;;  %v1431_v15 = vld [vmem:[%s7220_s10 + $0x8] sm:$0x8]  ;;  %v7237_v16 = vcombine.low %v236_v13, %v7229_v12  ;;  %v1432_v17 = vld [vmem:[%s7220_s10 + $0xc] sm:$0xf]  ;;  %v1433_v18 = vld [vmem:[%s7220_s10 + $0x10] sm:$0xf] }
  0x15   : > { %6327 = vmatprep.subr.bf16.mxu0 %v6974_v5  ;;  %v7242_v19 = vld [vmem:[%s7220_s10 + $0x14] sm:$0xf]  ;;  %v349_v20 = vrot.slane %v7233_v14, 3  ;;  %v5538_v22 = vcombine.low %v1432_v17, %v1433_v18  ;;  %v5495_v28 = vcombine.low %v1431_v15, %v1432_v17  ;;  %v1435_v31 = vld [vmem:[%s7220_s10 + $0x18] sm:$0xf]  ;;  %v7290_v47 = vld [vmem:[%s7220_s10 + $0x20] sm:$0xff]  }
  0x16   : > { %v7246_v21 = vcombine.low %v1433_v18, %v7242_v19  ;;  %v348_v24 = vrot.slane %v7237_v16, 3  ;;  %v7263_v30 = vld [vmem:[%s7220_s10 + $0x10] sm:$0xff]   ;;  %v7267_v32 = vld [vmem:[%s7220_s10 + $0x18] sm:$0xff]   ;;  %v1437_v38 = vld [vmem:[%s7220_s10 + $0x20] sm:$0xf]  ;;  %v5539_v50 = vcombine.low %v7242_v19, %v1435_v31  ;;  %v355_v0 = vrot.slane %v7290_v47, 3 }
  0x17   : > { %6120 = vmatpush3.bf16.msra.mxu1 %v6973_v4  ;;  %6339 = vmatprep.mubr.bf16.mxu0 %v5538_v22  ;;  %v1436_v33 = vld [vmem:[%s7220_s10 + $0x1c] sm:$0xf]  ;;  %v1579_v34 = vshrl.u32 %v5495_v28, 16  ;;  %v351_v36 = vrot.slane %v7263_v30, 3  ;;  %v7276_v39 = vld [vmem:[%s7220_s10 + $0x24] sm:$0xf] }
  0x18   : > { %6328 = vmatpush3.bf16.msra.mxu0 %v6974_v5  ;;  %6121 = vmatprep.subr.bf16.mxu1 %v6975_v6  ;;  %v350_v27 = vsel %vm347_vm0, %v348_v24, %v349_v20  ;;  %v5497_v35 = vcombine.low %v1435_v31, %v1436_v33  ;;  %v1582_v40 = vshll.u32 %v5495_v28, 16  ;;  %v1587_v41 = vshrl.u32 %v7246_v21, 16  ;;  %v1439_v48 = vld [vmem:[%s7220_s10 + $0x28] sm:$0xf]  ;;  %v1440_v53 = vld [vmem:[%s7220_s10 + $0x2c] sm:$0xf] }
  0x19   : > { %6329 = vmatprep.subr.bf16.mxu0 %v6976_v7  ;;  %6131 = vmatprep.mubr.bf16.mxu1 %v350_v27  ;;  %v7280_v42 = vcombine.low %v1437_v38, %v7276_v39  ;;  %v353_v44 = vrot.slane %v7267_v32, 3  ;;  %v7286_v45 = vrot.slane %v1579_v34, 3  ;;  %v1590_v46 = vshll.u32 %v7246_v21, 16  ;;  %v7298_v52 = vld [vmem:[%s7220_s10 + $0x28] sm:$0xff]   ;;  %v1441_v61 = vld [vmem:[%s7220_s10 + $0x30] sm:$0xf] }
  0x1a   : > { %v352_v49 = vsel %vm347_vm0, %v349_v20, %v351_v36  ;;  %v7295_v51 = vrot.slane %v1582_v40, 4  ;;  %v7301_v54 = vrot.slane %v1587_v41, 3  ;;  %v6994_v55 = vld [vmem:[%s10118_s1 + $0x148] sm:$0xff]   ;;  %v5540_v57 = vcombine.low %v1436_v33, %v1437_v38  ;;  %v7314_v62 = vld [vmem:[%s7220_s10 + $0x34] sm:$0xf]  ;;  %v7344_v20 = vld [vmem:[%s7220_s10 + $0x38] sm:$0xff]  }
  0x1b   : > { %6122 = vmatpush3.bf16.msra.mxu1 %v6975_v6  ;;  %10252 = vst [vmem:[#allocation2_spill] sm:$0xff] %v7280_v42  ;;  %10253 = vst [vmem:[#allocation3_spill] sm:$0xff] %v7286_v45  ;;  %v354_v56 = vsel %vm347_vm0, %v351_v36, %v353_v44  ;;  %v7307_v58 = vcombine.low %v1439_v48, %v1440_v53  ;;  %v1596_v59 = vshrl.u32 %v5497_v35, 16  ;;  %v7002_v60 = vld [vmem:[%s10118_s1 + $0x8] sm:$0xff]   ;;  %v1599_v63 = vshll.u32 %v5497_v35, 16  ;;  %v7001_v2 = vld [vmem:[%s10118_s1 + $0x150] sm:$0xff]  }
  0x1c   : > { %6330 = vmatpush3.bf16.msra.mxu0 %v6976_v7  ;;  %6123 = vmatprep.subr.bf16.mxu1 %v6977_v8  ;;  %10254 = vst [vmem:[#allocation4_spill] sm:$0xff] %v7295_v51  ;;  %10255 = vst [vmem:[#allocation5_spill] sm:$0xff] %v7301_v54  ;;  %v7318_v1 = vcombine.low %v1441_v61, %v7314_v62  ;;  %v357_v3 = vrot.slane %v7298_v52, 3  ;;  %v7324_v4 = vrot.slane %v1590_v46, 4  ;;  %v7327_v5 = vld [vmem:[%s7220_s10 + $0x30] sm:$0xff]   ;;  %v10122_v7 = vshrl.u32 %v7233_v14, 16 }
  0x1d   : > { %6331 = vmatprep.subr.bf16.mxu0 %v6978_v9  ;;  %10256 = vst [vmem:[#allocation6_spill] sm:$0xff] %v7307_v58  ;;  %v7011_v6 = vld [vmem:[%s10118_s1 + $0x10] sm:$0xff]   ;;  %v1444_v13 = vld [vmem:[%s7220_s10 + $0x3c] sm:$0xf]  ;;  %v10121_v15 = vshll.u32 %v7233_v14, 16  ;;  %v7340_v17 = vrot.slane %v1599_v63, 4  ;;  %v5542_v19 = vcombine.low %v1440_v53, %v1441_v61 }
  0x1e   : > { %10257 = vst [vmem:[#allocation7_spill] sm:$0xff] %v7318_v1  ;;  %10258 = vst [vmem:[#allocation8_spill] sm:$0xff] %v7324_v4  ;;  %v358_v18 = vsel %vm347_vm0, %v355_v0, %v357_v3  ;;  %v1445_v24 = vld [vmem:[%s7220_s10 + $0x40] sm:$0xf]  ;;  %v359_v27 = vrot.slane %v7327_v5, 3  ;;  %v7366_v31 = vrot.slane %v10122_v7, 2 }
  0x1f   : > { %6124 = vmatpush3.bf16.msra.mxu1 %v6977_v8  ;;  %v7333_v8 = vrot.slane %v1596_v59, 3  ;;  %10260 = vst [vmem:[#allocation10_spill] sm:$0xff] %v7340_v17  ;;  %v7010_v33 = vld [vmem:[%s10118_s1 + $0x160] sm:$0xff]   ;;  %v361_v34 = vrot.slane %v7344_v20, 3  ;;  %v7378_v38 = vld [vmem:[%s7220_s10 + $0x48] sm:$0xff]   ;;  %v7392_v53 = vrot.slane %v10121_v15, 3 }
  0x20   : > { %6332 = vmatpush3.bf16.msra.mxu0 %v6978_v9  ;;  %6125 = vmatprep.subr.bf16.mxu1 %v6979_v10  ;;  %v356_v9 = vsel %vm347_vm0, %v353_v44, %v355_v0  ;;  %v7012_v46 = vld [vmem:[%s10118_s1 + $0x168] sm:$0xff]   ;;  %v7020_v63 = vld [vmem:[%s10118_s1 + $0x170] sm:$0xff]   ;;  %v7504_v40 = vld [vmem:[%s7220_s10 + $0x5c] sm:$0xff]  }
  0x21   : > { %6333 = vmatprep.subr.bf16.mxu0 %v6980_v11  ;;  %10259 = vst [vmem:[#allocation9_spill] sm:$0xff] %v7333_v8  ;;  %v7396_v59 = vld [vmem:[%s7220_s10 + $0x48] sm:$0xf]  ;;  %v7501_v44 = vld [vmem:[%s7220_s10 + $0x90] ss:$0 sps:$4 sm:$0x77]  }
  0x22   : > { %v183_v36 = vld [vmem:[%s7220_s10] sm:$0xc]  ;;  %v7805_v8 = vld [vmem:[%s7220_s10 + $0x4c] sm:$0xff]  }
  0x23   : > { %6126 = vmatpush3.bf16.msra.mxu1 %v6979_v10  ;;  %v5541_v10 = vcombine.low %v7276_v39, %v1439_v48  ;;  %v360_v39 = vsel %vm347_vm0, %v357_v3, %v359_v27  ;;  %v362_v48 = vsel %vm347_vm0, %v359_v27, %v361_v34  ;;  %v7519_v35 = vld [vmem:[%s10118_s1 + $0x80] sm:$0xff]   ;;  %10278 = vst [vmem:[#allocation20_spill] sm:$0xff] %v7805_v8  ;;  %v7914_v51 = vld [vmem:[%s7220_s10 + $0x6c] sm:$0xff]  }
  0x24   : > { %6334 = vmatpush3.bf16.msra.mxu0 %v6980_v11  ;;  %6127 = vmatprep.subr.bf16.mxu1 %v6981_v23  ;;  %v1443_v11 = vld [vmem:[%s7220_s10 + $0x38] sm:$0xf]  ;;  %10295 = vst [vmem:[#allocation26_spill] sm:$0xff] %v7914_v51 }
  0x25   : > { %6335 = vmatprep.subr.bf16.mxu0 %v6982_v25  ;;  %v7346_v21 = vcombine.low %v1443_v11, %v1444_v13  ;;  %v5543_v41 = vcombine.low %v7314_v62, %v1443_v11  ;;  %v7027_v62 = vld [vmem:[%s7220_s10 + $0x1c] sm:$0xff]   ;;  %v10123_v11 = vshrl.u32 %v7263_v30, 16 }
  0x27   : > { %6128 = vmatpush3.bf16.msra.mxu1 %v6981_v23  ;;  %10261 = vst [vmem:[#allocation11_spill] sm:$0xff] %v7346_v21  ;;  %v7003_v23 = vld [vmem:[%s10118_s1 + $0x158] sm:$0xff]  }
  0x28   : > { %6336 = vmatpush3.bf16.msra.mxu0 %v6982_v25  ;;  %6129 = vmatprep.subr.bf16.mxu1 %v6983_v26  ;;  %v7354_v25 = vld [vmem:[%s7220_s10 + $0x44] sm:$0xf] }
  0x29   : > { %6337 = vmatprep.subr.bf16.mxu0 %v6984_v29  ;;  %v7359_v28 = vcombine.low %v1445_v24, %v7354_v25 }
  0x2b   : > { %6130 = vmatpush3.bf16.msra.mxu1 %v6983_v26  ;;  %10262 = vst [vmem:[#allocation12_spill] sm:$0xff] %v7359_v28 }
  0x2c   : > { %6338 = vmatpush3.bf16.msra.mxu0 %v6984_v29  ;;  %6167 = vmatprep.subr.bf16.mxu1 %v6991_v37  ;;  %v7021_v29 = vld [vmem:[%s10118_s1 + $0x18] sm:$0xff]  }
  0x2d   : > { %6375 = vmatprep.subr.bf16.mxu0 %v6993_v43 }
  0x2e   : > { %6132 = vmatmul.mubr.bf16.vlgmr.msra.gmra.mrb[0].mxu1 %v352_v49  ;;  %v5544_v49 = vcombine.low %v1444_v13, %v1445_v24  ;;  %v7022_v24 = vld [vmem:[%s10118_s1 + $0x178] sm:$0xff]  }
  0x2f   : > { %6340 = vmatmul.mubr.bf16.vlgmr.msra.gmra.mrb[0].mxu0 %v5539_v50  ;;  %6168 = vmatpush3.bf16.msra.mxu1 %v6991_v37  ;;  %v7375_v37 = vld [vmem:[%s7220_s10 + $0x40] sm:$0xff]   ;;  %v7025_v50 = vld [vmem:[%s7220_s10 + $0x14] sm:$0xff]  }
  0x30   : > { %6376 = vmatpush3.bf16.msra.mxu0 %v6993_v43  ;;  %6135 = vmatprep.mubr.bf16.mxu1 %v354_v56  ;;  %v7024_v43 = vld [vmem:[%s7220_s10 + $0xc] sm:$0xff]   ;;  %v2497_v61 = vshll.u32 %v7025_v50, 16 }
  0x31   : > { %6377 = vmatprep.subr.bf16.mxu0 %v6994_v55  ;;  %6343 = vmatprep.mubr.bf16.mxu0 %v5540_v57  ;;  %v2492_v56 = vshll.u32 %v7024_v43, 16  ;;  %v363_v57 = vrot.slane %v7375_v37, 3 }
  0x32   : > { %6169 = vmatprep.subr.bf16.mxu1 %v7002_v60 }
  0x33   : > { %6170 = vmatpush3.bf16.msra.mxu1 %v7002_v60  ;;  %v365_v60 = vrot.slane %v7378_v38, 3  ;;  %v2494_v0 = vrot.slane %v2492_v56, 1  ;;  %v7431_v56 = vld [vmem:[%s7220_s10 + $0x34] sm:$0xff]  }
  0x34   : > { %6378 = vmatpush3.bf16.msra.mxu0 %v6994_v55  ;;  %6171 = vmatprep.subr.bf16.mxu1 %v7011_v6  ;;  %v2490_v55 = vshrl.u32 %v7024_v43, 16  ;;  %v7487_v43 = vld [vmem:[%s7220_s10 + $0x80] sm:$0xff]  }
  0x35   : > { %6379 = vmatprep.subr.bf16.mxu0 %v7001_v2  ;;  %v366_v27 = vsel %vm347_vm0, %v363_v57, %v365_v60 }
  0x36   : > { %6136 = vmatmul.mubr.bf16.gmra.mrb[4].mxu1 %v356_v9  ;;  %v2495_v3 = vor.u32 %v2494_v0, %v2490_v55  ;;  %v7407_v9 = vld [vmem:[%s7220_s10 + $0x50] sm:$0xff]   ;;  %v7437_v0 = vld [vmem:[%s7220_s10 + $0x60] sm:$0xff]  }
  0x37   : > { %6344 = vmatmul.mubr.bf16.gmra.mrb[4].mxu0 %v5541_v10  ;;  %6139 = vmatprep.mubr.bf16.mxu1 %v358_v18  ;;  %v7030_v10 = vld [vmem:[%s7220_s10 + $0x24] sm:$0xff]   ;;  %v364_v18 = vsel %vm347_vm0, %v361_v34, %v363_v57 }
  0x38   : > { %6380 = vmatpush3.bf16.msra.mxu0 %v7001_v2  ;;  %6347 = vmatprep.mubr.bf16.mxu0 %v5542_v19  ;;  %v7028_v2 = vld [vmem:[%s10118_s1 + $0x20] sm:$0xff]   ;;  %v5545_v19 = vcombine.low %v7354_v25, %v7396_v59  ;;  %v7034_v25 = vld [vmem:[%s10118_s1 + $0x28] sm:$0xff]  }
  0x39   : > { %6381 = vmatprep.subr.bf16.mxu0 %v7003_v23  ;;  %6172 = vmatpush3.bf16.msra.mxu1 %v7011_v6  ;;  %v2499_v6 = vrot.slane %v2497_v61, 1 }
  0x3a   : > { %6173 = vmatprep.subr.bf16.mxu1 %v7021_v29 }
  0x3b   : > { %v2500_v34 = vsel %vm2488_vm1, %v2495_v3, %v2499_v6 }
  0x3c   : > { %6382 = vmatpush3.bf16.msra.mxu0 %v7003_v23  ;;  %v2505_v23 = vshll.u32 %v7027_v62, 16 }
  0x3d   : > { %6383 = vmatprep.subr.bf16.mxu0 %v7010_v33  ;;  %6174 = vmatpush3.bf16.msra.mxu1 %v7021_v29  ;;  %v2501_v29 = vshrl.u32 %v7025_v50, 16 }
  0x3e   : > { %6140 = vmatmul.mubr.bf16.gmra.mrb[8].mxu1 %v360_v39  ;;  %6175 = vmatprep.subr.bf16.mxu1 %v7028_v2  ;;  %v2509_v39 = vshrl.u32 %v7027_v62, 16  ;;  %v7033_v62 = vld [vmem:[%s10118_s1 + $0x180] sm:$0xff]  }
  0x3f   : > { %6348 = vmatmul.mubr.bf16.gmra.mrb[8].mxu0 %v5543_v41  ;;  %6143 = vmatprep.mubr.bf16.mxu1 %v362_v48  ;;  %v2513_v41 = vshll.u32 %v7030_v10, 16  ;;  %v2507_v48 = vrot.slane %v2505_v23, 1  ;;  %v2503_v50 = vor.u32 %v2501_v29, %v2499_v6  ;;  %v7441_v6 = vld [vmem:[%s7220_s10 + $0x68] sm:$0xff]   ;;  %v2529_v29 = vshll.u32 %v7431_v56, 16 }
  0x40   : > { %6384 = vmatpush3.bf16.msra.mxu0 %v7010_v33  ;;  %6351 = vmatprep.mubr.bf16.mxu0 %v5544_v49  ;;  %v7420_v33 = vld [vmem:[%s7220_s10 + $0x58] sm:$0xff]   ;;  %v7032_v49 = vld [vmem:[%s7220_s10 + $0x2c] sm:$0xff]  }
  0x41   : > { %6385 = vmatprep.subr.bf16.mxu0 %v7012_v46  ;;  %6176 = vmatpush3.bf16.msra.mxu1 %v7028_v2  ;;  %v369_v55 = vrot.slane %v7420_v33, 3  ;;  %v2511_v57 = vor.u32 %v2509_v39, %v2507_v48  ;;  %v2515_v61 = vrot.slane %v2513_v41, 1  ;;  %v2517_v2 = vshrl.u32 %v7030_v10, 16  ;;  %v7039_v10 = vld [vmem:[%s10118_s1 + $0x188] sm:$0xff]  }
  0x42   : > { %6177 = vmatprep.subr.bf16.mxu1 %v7034_v25  ;;  %v2521_v3 = vshll.u32 %v7032_v49, 16  ;;  %v371_v41 = vrot.slane %v7437_v0, 3 }
  0x43   : > { %v2516_v39 = vsel %vm2488_vm1, %v2511_v57, %v2515_v61 }
  0x44   : > { %6386 = vmatpush3.bf16.msra.mxu0 %v7012_v46  ;;  %v367_v46 = vrot.slane %v7407_v9, 3 }
  0x45   : > { %6387 = vmatprep.subr.bf16.mxu0 %v7020_v63  ;;  %6178 = vmatpush3.bf16.msra.mxu1 %v7034_v25  ;;  %v2523_v25 = vrot.slane %v2521_v3, 1  ;;  %v372_v3 = vsel %vm347_vm0, %v369_v55, %v371_v41 }
  0x46   : > { %6144 = vmatmul.mubr.bf16.gmra.mrb[12].mxu1 %v364_v18  ;;  %v1448_v18 = vld [vmem:[%s7220_s10 + $0x4c] sm:$0xf]  ;;  %v370_v23 = vsel %vm347_vm0, %v367_v46, %v369_v55 }
  0x47   : > { %6352 = vmatmul.mubr.bf16.gmra.mrb[12].mxu0 %v5545_v19  ;;  %6147 = vmatprep.mubr.bf16.mxu1 %v366_v27  ;;  %v2508_v19 = vsel %vm2488_vm1, %v2503_v50, %v2507_v48  ;;  %v2525_v27 = vshrl.u32 %v7032_v49, 16  ;;  %v373_v48 = vrot.slane %v7441_v6, 3  ;;  %v7459_v49 = vld [vmem:[%s7220_s10 + $0x44] sm:$0xff]   ;;  %v7462_v50 = vcombine.low %v7396_v59, %v1448_v18  ;;  %v7044_v18 = vld [vmem:[%s7220_s10 + $0x4c] sm:$0xff]  }
  0x48   : > { %6388 = vmatpush3.bf16.msra.mxu0 %v7020_v63  ;;  %6391 = vmatprep.mubr.bf16.mxu0 %v2500_v34  ;;  %v368_v63 = vsel %vm347_vm0, %v365_v60, %v367_v46  ;;  %v7040_v60 = vld [vmem:[%s10118_s1 + $0x30] sm:$0xff]   ;;  %v7038_v34 = vld [vmem:[%s7220_s10 + $0x3c] sm:$0xff]   ;;  %v2519_v46 = vor.u32 %v2517_v2, %v2515_v61  ;;  %v2533_v59 = vshrl.u32 %v7431_v56, 16  ;;  %v2553_v57 = vshll.u32 %v7044_v18, 16 }
  0x49   : > { %6389 = vmatprep.subr.bf16.mxu0 %v7022_v24  ;;  %6179 = vmatprep.subr.bf16.mxu1 %v7040_v60  ;;  %10263 = vst [vmem:[#allocation13_spill] sm:$0xff] %v7462_v50  ;;  %v7045_v61 = vld [vmem:[%s10118_s1 + $0x190] sm:$0xff]   ;;  %v7472_v2 = vld [vmem:[%s7220_s10 + $0x78] sm:$0xff]   ;;  %v2541_v56 = vshrl.u32 %v7038_v34, 16 }
  0x4a   : > { %6180 = vmatpush3.bf16.msra.mxu1 %v7040_v60  ;;  %v2545_v60 = vshll.u32 %v7459_v49, 16  ;;  %v10274_v58 = vshrl.u32 %v7472_v2, 16 }
  0x4c   : > { %6390 = vmatpush3.bf16.msra.mxu0 %v7022_v24 }
  0x4d   : > { %6427 = vmatprep.subr.bf16.mxu0 %v7033_v62 }
  0x4e   : > { %6148 = vmatmul.mubr.bf16.gmra.mrb[16].mxu1 %v368_v63  ;;  %v2527_v63 = vor.u32 %v2525_v27, %v2523_v25  ;;  %v2524_v27 = vsel %vm2488_vm1, %v2519_v46, %v2523_v25  ;;  %v7491_v25 = vld [vmem:[%s7220_s10 + $0x88] sm:$0xff]   ;;  %v7051_v46 = vld [vmem:[%s10118_s1 + $0x198] sm:$0xff]  }
  0x4f   : > { %6392 = vmatmul.mubr.bf16.vlgmr.msra.gmra.mrb[0].mxu0 %v2508_v19  ;;  %6151 = vmatprep.mubr.bf16.mxu1 %v370_v23  ;;  %v2531_v19 = vrot.slane %v2529_v29, 1  ;;  %v7466_v23 = vld [vmem:[%s7220_s10 + $0x70] sm:$0xff]   ;;  %v374_v29 = vsel %vm347_vm0, %v371_v41, %v373_v48  ;;  %v377_v41 = vrot.slane %v7472_v2, 3 }
  0x50   : > { %6395 = vmatprep.mubr.bf16.mxu0 %v2516_v39  ;;  %6428 = vmatpush3.bf16.msra.mxu0 %v7033_v62  ;;  %v2537_v62 = vshll.u32 %v7038_v34, 16  ;;  %v7047_v39 = vld [vmem:[%s10118_s1 + $0x38] sm:$0xff]   ;;  %v375_v55 = vrot.slane %v7466_v23, 3 }
  0x51   : > { %6429 = vmatprep.subr.bf16.mxu0 %v7039_v10  ;;  %v2532_v24 = vsel %vm2488_vm1, %v2527_v63, %v2531_v19  ;;  %6181 = vmatprep.subr.bf16.mxu1 %v7047_v39  ;;  %v2535_v34 = vor.u32 %v2533_v59, %v2531_v19  ;;  %v2549_v63 = vshrl.u32 %v7459_v49, 16  ;;  %v379_v19 = vrot.slane %v7487_v43, 3 }
  0x52   : > { %6182 = vmatpush3.bf16.msra.mxu1 %v7047_v39  ;;  %v10129_v49 = vrot.slane %v7491_v25, 3  ;;  %v2555_v59 = vrot.slane %v2553_v57, 1  ;;  %v7056_v57 = vld [vmem:[%s10118_s1 + $0x1a0] sm:$0xff]  }
  0x53   : > { %6219 = vmatprep.subr.bf16.mxu1 %v7519_v35 }
  0x54   : > { %6430 = vmatpush3.bf16.msra.mxu0 %v7039_v10  ;;  %v2539_v10 = vrot.slane %v2537_v62, 1  ;;  %v7498_v62 = vld [vmem:[%s7220_s10 + $0x54] sm:$0xff]  }
  0x55   : > { %6431 = vmatprep.subr.bf16.mxu0 %v7045_v61  ;;  %v2565_v39 = vshrl.u32 %v7498_v62, 16 }
  0x56   : > { %6152 = vmatmul.mubr.bf16.gmra.mrb[20].mxu1 %v372_v3  ;;  %v2547_v3 = vrot.slane %v2545_v60, 1  ;;  %v2543_v13 = vor.u32 %v2541_v56, %v2539_v10  ;;  %v2561_v60 = vshll.u32 %v7498_v62, 16  ;;  %v5445_v56 = vcombine.low %v183_v36, %v7229_v12  ;;  %v7528_v12 = vld [vmem:[%s7220_s10 + $0x64] sm:$0xff]  }
  0x57   : > { %6396 = vmatmul.mubr.bf16.gmra.mrb[4].mxu0 %v2524_v27  ;;  %6155 = vmatprep.mubr.bf16.mxu1 %v374_v29  ;;  %v376_v27 = vsel %vm347_vm0, %v373_v48, %v375_v55  ;;  %v2557_v29 = vshrl.u32 %v7044_v18, 16  ;;  %v10128_v48 = vshll.u32 %v7263_v30, 16  ;;  %v383_v18 = vrot.slane %v7501_v44, 3 }
  0x58   : > { %6399 = vmatprep.mubr.bf16.mxu0 %v2532_v24  ;;  %6432 = vmatpush3.bf16.msra.mxu0 %v7045_v61  ;;  %v2540_v24 = vsel %vm2488_vm1, %v2535_v34, %v2539_v10  ;;  %v378_v61 = vsel %vm347_vm0, %v375_v55, %v377_v41  ;;  %v2548_v10 = vsel %vm2488_vm1, %v2543_v13, %v2547_v3  ;;  %v2569_v55 = vshll.u32 %v7504_v40, 16 }
  0x59   : > { %6433 = vmatprep.subr.bf16.mxu0 %v7051_v46  ;;  %v652_v36 = vrot.slane %v10123_v11, 2  ;;  %v2551_v13 = vor.u32 %v2549_v63, %v2547_v3  ;;  %v2559_v34 = vor.u32 %v2557_v29, %v2555_v59  ;;  %v655_v62 = vrot.slane %v10128_v48, 3 }
  0x5a   : > { %v2563_v26 = vrot.slane %v2561_v60, 1  ;;  %v633_v22 = vshrl.u32 %v5445_v56, 16  ;;  %v636_v15 = vshll.u32 %v5445_v56, 16  ;;  %v2571_v11 = vrot.slane %v2569_v55, 1 }
  0x5b   : > { %v10127_v3 = vshrl.u32 %v7290_v47, 16  ;;  %v7546_v29 = vor.u32 %v7392_v53, %v7366_v31  ;;  %v2573_v60 = vshrl.u32 %v7504_v40, 16  ;;  %v2577_v56 = vshll.u32 %v7528_v12, 16 }
  0x5c   : > { %6434 = vmatpush3.bf16.msra.mxu0 %v7051_v46  ;;  %v10125_v46 = vshrl.u32 %v7267_v32, 16  ;;  %v7553_v55 = vor.u32 %v655_v62, %v652_v36  ;;  %v635_v31 = vrot.slane %v633_v22, 2  ;;  %v638_v53 = vrot.slane %v636_v15, 3 }
  0x5d   : > { %6435 = vmatprep.subr.bf16.mxu0 %v7056_v57  ;;  %v2564_v36 = vsel %vm2488_vm1, %v2559_v34, %v2563_v26  ;;  %v10139_v62 = vshrl.u32 %v7298_v52, 16  ;;  %v2567_v22 = vor.u32 %v2565_v39, %v2563_v26 }
  0x5e   : > { %6156 = vmatmul.mubr.bf16.gmra.mrb[24].mxu1 %v376_v27  ;;  %v10124_v27 = vshll.u32 %v7267_v32, 16  ;;  %v661_v7 = vrot.slane %v10125_v46, 2  ;;  %v2556_v46 = vsel %vm2488_vm1, %v2551_v13, %v2555_v59  ;;  %v10132_v59 = vshll.u32 %v7298_v52, 16 }
  0x5f   : > { %6400 = vmatmul.mubr.bf16.gmra.mrb[8].mxu0 %v2540_v24  ;;  %6159 = vmatprep.mubr.bf16.mxu1 %v378_v61  ;;  %v10126_v24 = vshll.u32 %v7290_v47, 16  ;;  %v380_v61 = vsel %vm347_vm0, %v377_v41, %v379_v19  ;;  %v670_v41 = vrot.slane %v10127_v3, 2  ;;  %v2575_v13 = vor.u32 %v2573_v60, %v2571_v11  ;;  %v7575_v3 = vld [vmem:[%s7220_s10 + $0x74] sm:$0xff]  }
  0x60   : > { %6403 = vmatprep.mubr.bf16.mxu0 %v2548_v10  ;;  %6436 = vmatpush3.bf16.msra.mxu0 %v7056_v57  ;;  %v664_v63 = vrot.slane %v10124_v27, 3  ;;  %v382_v10 = vsel %vm347_vm0, %v379_v19, %v10129_v49  ;;  %v7556_v57 = vld [vmem:[%s7220_s10 + $0x6c] sm:$0xff]   ;;  %v679_v34 = vrot.slane %v10139_v62, 2  ;;  %v682_v48 = vrot.slane %v10132_v59, 3 }
  0x61   : > { %v673_v40 = vrot.slane %v10126_v24, 3  ;;  %v7060_v19 = vld [vmem:[%s10118_s1 + $0x1a8] sm:$0xff]   ;;  %v2579_v24 = vrot.slane %v2577_v56, 1  ;;  %v10131_v49 = vshrl.u32 %v7327_v5, 16  ;;  %v639_v15 = vor.u32 %v638_v53, %v635_v31 }
  0x62   : > { %v665_v27 = vor.u32 %v664_v63, %v661_v7  ;;  %6437 = vmatprep.subr.bf16.mxu0 %v7060_v19  ;;  %v2585_v26 = vshll.u32 %v7556_v57, 16  ;;  %v2581_v56 = vshrl.u32 %v7528_v12, 16  ;;  %v2572_v31 = vsel %vm2488_vm1, %v2567_v22, %v2571_v11  ;;  %v7058_v22 = vld [vmem:[%s7220_s10 + $0x7c] sm:$0xff]  }
  0x63   : > { %v674_v63 = vor.u32 %v673_v40, %v670_v41  ;;  %v688_v41 = vrot.slane %v10131_v49, 2  ;;  %v7064_v40 = vld [vmem:[%s10118_s1 + $0x1b0] sm:$0xff]   ;;  %v2580_v12 = vsel %vm2488_vm1, %v2575_v13, %v2579_v24  ;;  %v10135_v11 = vshll.u32 %v7344_v20, 16  ;;  %v7612_v49 = vld [vmem:[%s7220_s10 + $0x84] sm:$0xff]  }
  0x64   : > { %v7569_v7 = vsel %vm631_vm2, %v7553_v55, %v665_v27  ;;  %6438 = vmatpush3.bf16.msra.mxu0 %v7060_v19  ;;  %v10134_v59 = vshrl.u32 %v7375_v37, 16 }
  0x65   : > { %v7584_v39 = vsel %vm631_vm2, %v665_v27, %v674_v63  ;;  %v2589_v27 = vshrl.u32 %v7556_v57, 16  ;;  %v648_v57 = vsel %vm631_vm2, %v639_v15, %v7546_v29  ;;  %6439 = vmatprep.subr.bf16.mxu0 %v7064_v40 }
  0x66   : > { %6160 = vmatmul.mubr.bf16.gmra.mrb[28].mxu1 %v380_v61  ;;  %v10264_v61 = vrot.slane %v7491_v25, 3 }
  0x67   : > { %6404 = vmatmul.mubr.bf16.gmra.mrb[12].mxu0 %v2556_v46  ;;  %6163 = vmatprep.mubr.bf16.mxu1 %v382_v10  ;;  %v10130_v46 = vshll.u32 %v7327_v5, 16  ;;  %v683_v10 = vor.u32 %v682_v48, %v679_v34  ;;  %v2593_v48 = vshll.u32 %v7575_v3, 16  ;;  %v2597_v34 = vshrl.u32 %v7575_v3, 16 }
  0x68   : > { %6407 = vmatprep.mubr.bf16.mxu0 %v2564_v36  ;;  %v384_v60 = vsel %vm347_vm0, %v10264_v61, %v383_v18  ;;  %v10136_v18 = vshrl.u32 %v7344_v20, 16  ;;  %v2587_v36 = vrot.slane %v2585_v26, 1  ;;  %6440 = vmatpush3.bf16.msra.mxu0 %v7064_v40  ;;  %v7623_v26 = vld [vmem:[%s7220_s10 + $0x8c] sm:$0xff]   ;;  %v10133_v3 = vshll.u32 %v7375_v37, 16 }
  0x69   : > { %v691_v53 = vrot.slane %v10130_v46, 3  ;;  %v7604_v19 = vsel %vm631_vm2, %v674_v63, %v683_v10  ;;  %v2583_v46 = vor.u32 %v2581_v56, %v2579_v24  ;;  %v700_v63 = vrot.slane %v10135_v11, 3  ;;  %v7066_v11 = vld [vmem:[%s7220_s10 + $0x9c] ss:$0 sps:$4 sm:$0x11]  }
  0x6a   : > { %v697_v13 = vrot.slane %v10136_v18, 2  ;;  %v2591_v24 = vor.u32 %v2589_v27, %v2587_v36  ;;  %v2595_v56 = vrot.slane %v2593_v48, 1  ;;  %v709_v40 = vrot.slane %v10133_v3, 3 }
  0x6b   : > { %v692_v61 = vor.u32 %v691_v53, %v688_v41  ;;  %v706_v53 = vrot.slane %v10134_v59, 2  ;;  %v657_v27 = vsel %vm631_vm2, %v7546_v29, %v7553_v55  ;;  %v2588_v48 = vsel %vm2488_vm1, %v2583_v46, %v2587_v36  ;;  %v7059_v46 = vld [vmem:[%s10118_s1 + $0x88] sm:$0xff]  }
  0x6c   : > { %v701_v41 = vor.u32 %v700_v63, %v697_v13  ;;  %v2609_v13 = vshll.u32 %v7612_v49, 16  ;;  %v2617_v3 = vshll.u32 %v7623_v26, 16  ;;  %v2596_v55 = vsel %vm2488_vm1, %v2591_v24, %v2595_v56 }
  0x6d   : > { %v7620_v15 = vsel %vm631_vm2, %v683_v10, %v692_v61  ;;  %v2601_v10 = vshll.u32 %v7058_v22, 16  ;;  %v710_v59 = vor.u32 %v709_v40, %v706_v53  ;;  %v2605_v36 = vshrl.u32 %v7058_v22, 16 }
  0x6e   : > { %6164 = vmatmul.mubr.bf16.gmra.mrb[32].mxu1 %v384_v60  ;;  %v7068_v60 = vld [vmem:[%s10118_s1 + $0x1b8] sm:$0xff]   ;;  %v7641_v63 = vsel %vm631_vm2, %v692_v61, %v701_v41  ;;  %v10146_v61 = vshrl.u32 %v7407_v9, 16  ;;  %v2611_v62 = vrot.slane %v2609_v13, 1  ;;  %v2621_v24 = vshrl.u32 %v7623_v26, 16 }
  0x6f   : > { %6408 = vmatmul.mubr.bf16.gmra.mrb[16].mxu0 %v2572_v31  ;;  %6183 = vmatprep.mubr.bf16.mxu1 %v648_v57  ;;  %v10137_v31 = vshrl.u32 %v7378_v38, 16  ;;  %v10138_v57 = vshll.u32 %v7378_v38, 16  ;;  %v2603_v40 = vrot.slane %v2601_v10, 1  ;;  %v2599_v28 = vor.u32 %v2597_v34, %v2595_v56  ;;  %v7685_v56 = vld [vmem:[%s7220_s10 + $0x1c] sm:$0xff]  }
  0x70   : > { %6411 = vmatprep.mubr.bf16.mxu0 %v2580_v12  ;;  %v7644_v12 = vld [vmem:[%s7220_s10 + $0x94] sm:$0xff]   ;;  %6441 = vmatprep.subr.bf16.mxu0 %v7068_v60  ;;  %v724_v22 = vrot.slane %v10146_v61, 2  ;;  %v7666_v53 = vrot.slane %v2617_v3, 1  ;;  %v10265_v26 = vshll.u32 %v7407_v9, 16  ;;  %v10145_v34 = vshrl.u32 %v7420_v33, 16  ;;  %10266 = vst [vmem:[#allocation14_spill] sm:$0xff] %v7685_v56 }
  0x71   : > { %6442 = vmatpush3.bf16.msra.mxu0 %v7068_v60  ;;  %v715_v18 = vrot.slane %v10137_v31, 2  ;;  %v718_v29 = vrot.slane %v10138_v57, 3  ;;  %v2613_v60 = vshrl.u32 %v7612_v49, 16  ;;  %v7660_v31 = vsel %vm631_vm2, %v701_v41, %v710_v59  ;;  %v7063_v49 = vld [vmem:[%s10118_s1 + $0x90] sm:$0xff]  }
  0x72   : > { %v2625_v50 = vshll.u32 %v7644_v12, 16  ;;  %v727_v10 = vrot.slane %v10265_v26, 3  ;;  %v2607_v13 = vor.u32 %v2605_v36, %v2603_v40  ;;  %v10144_v3 = vshll.u32 %v7420_v33, 16  ;;  %v7696_v36 = vld [vmem:[%s10118_s1 + $0x1c0] sm:$0xff]  }
  0x73   : > { %v719_v57 = vor.u32 %v718_v29, %v715_v18  ;;  %v2916_v18 = vld [vmem:[%s7220_s10 + $0x14] sm:$0xf]  ;;  %v10148_v61 = vshll.u32 %v7437_v0, 16  ;;  %6479 = vmatprep.subr.bf16.mxu0 %v7696_v36 }
  0x74   : > { %v728_v29 = vor.u32 %v727_v10, %v724_v22  ;;  %v7687_v26 = vrot.slane %v2625_v50, 1  ;;  %v7707_v22 = vld [vmem:[%s7220_s10 + $0x24] sm:$0xff]   ;;  %v2612_v10 = vsel %vm2488_vm1, %v2607_v13, %v2611_v62 }
  0x75   : > { %v7672_v41 = vsel %vm631_vm2, %v710_v59, %v719_v57  ;;  %v2633_v59 = vshll.u32 %v7066_v11, 16  ;;  %10267 = vst [vmem:[#allocation15_spill] sm:$0xff] %v7707_v22  ;;  %v10151_v11 = vshrl.u32 %v7441_v6, 16 }
  0x76   : > { %6184 = vmatmul.mubr.bf16.vlgmr.msra.gmra.mrb[0].mxu1 %v657_v27  ;;  %v7679_v27 = vld [vmem:[%s7220_s10 + $0x18] sm:$0xf]  ;;  %v7704_v50 = vsel %vm631_vm2, %v719_v57, %v728_v29  ;;  %v7717_v57 = vld [vmem:[%s7220_s10 + $0x2c] sm:$0xff]  }
  0x77   : > { %6412 = vmatmul.mubr.bf16.gmra.mrb[20].mxu0 %v2588_v48  ;;  %6220 = vmatpush3.bf16.msra.mxu1 %v7519_v35  ;;  %v733_v35 = vrot.slane %v10145_v34, 2  ;;  %v736_v48 = vrot.slane %v10144_v3, 3  ;;  %v10147_v34 = vshrl.u32 %v7437_v0, 16  ;;  %10268 = vst [vmem:[#allocation16_spill] sm:$0xff] %v7717_v57 }
  0x78   : > { %6187 = vmatprep.mubr.bf16.mxu1 %v7569_v7  ;;  %6415 = vmatprep.mubr.bf16.mxu0 %v2596_v55  ;;  %v2604_v7 = vsel %vm2488_vm1, %v2599_v28, %v2603_v40  ;;  %v7701_v55 = vcombine.low %v2916_v18, %v7679_v27  ;;  %v2615_v28 = vor.u32 %v2613_v60, %v2611_v62  ;;  %v7713_v40 = vrot.slane %v2633_v59, 1 }
  0x79   : > { %6221 = vmatprep.subr.bf16.mxu1 %v7059_v46  ;;  %v737_v3 = vor.u32 %v736_v48, %v733_v35  ;;  %v742_v35 = vrot.slane %v10147_v34, 2  ;;  %v745_v62 = vrot.slane %v10148_v61, 3  ;;  %v10152_v60 = vshll.u32 %v7441_v6, 16  ;;  %v7072_v61 = vld [vmem:[%s10118_s1 + $0xa0] sm:$0xff]  }
  0x7a   : > { %v3064_v59 = vshrl.u32 %v7701_v55, 16  ;;  %v3066_v48 = vshll.u32 %v7701_v55, 16  ;;  %v10156_v55 = vshrl.u32 %v7466_v23, 16  ;;  %v10269_v18 = vshll.u32 %v7685_v56, 16 }
  0x7b   : > { %6222 = vmatpush3.bf16.msra.mxu1 %v7059_v46  ;;  %v7067_v46 = vld [vmem:[%s10118_s1 + $0x98] sm:$0xff]   ;;  %v7724_v13 = vsel %vm631_vm2, %v728_v29, %v737_v3  ;;  %v751_v29 = vrot.slane %v10151_v11, 2  ;;  %v754_v21 = vrot.slane %v10152_v60, 3  ;;  %v2623_v11 = vor.u32 %v2621_v24, %v7666_v53 }
  0x7c   : > { %6223 = vmatprep.subr.bf16.mxu1 %v7063_v49  ;;  %v7750_v34 = vrot.slane %v10269_v18, 1  ;;  %v7758_v60 = vld [vmem:[%s7220_s10 + $0x34] sm:$0xff]   ;;  %v2620_v18 = vsel %vm2488_vm1, %v2615_v28, %v7666_v53  ;;  %v769_v53 = vrot.slane %v10274_v58, 2  ;;  %v10275_v28 = vshll.u32 %v7472_v2, 16 }
  0x7d   : > { %10270 = vst [vmem:[#allocation17_spill] sm:$0xff] %v7758_v60  ;;  %v10277_v58 = vshrl.u32 %v7644_v12, 16  ;;  %v10165_v17 = vshll.u32 %v7758_v60, 16 }
  0x7e   : > { %6188 = vmatmul.mubr.bf16.gmra.mrb[4].mxu1 %v7584_v39  ;;  %v746_v39 = vor.u32 %v745_v62, %v742_v35  ;;  %v755_v62 = vor.u32 %v754_v21, %v751_v29  ;;  %v2628_v29 = vsel %vm2488_vm1, %v2623_v11, %v7687_v26 }
  0x7f   : > { %6416 = vmatmul.mubr.bf16.gmra.mrb[24].mxu0 %v2604_v7  ;;  %6191 = vmatprep.mubr.bf16.mxu1 %v7604_v19  ;;  %v10155_v19 = vshll.u32 %v7466_v23, 16  ;;  %v7779_v7 = vld [vmem:[%s7220_s10 + $0x3c] sm:$0xff]  }
  0x80   : > { %6419 = vmatprep.mubr.bf16.mxu0 %v2612_v10  ;;  %6224 = vmatpush3.bf16.msra.mxu1 %v7063_v49  ;;  %v7753_v35 = vsel %vm631_vm2, %v737_v3, %v746_v39  ;;  %v760_v10 = vrot.slane %v10156_v55, 2  ;;  %v3068_v49 = vrot.slane %v3066_v48, 1  ;;  %v10271_v3 = vshll.u32 %v7707_v22, 16  ;;  %10273 = vst [vmem:[#allocation18_spill] sm:$0xff] %v7779_v7 }
  0x81   : > { %6225 = vmatprep.subr.bf16.mxu1 %v7067_v46  ;;  %v763_v24 = vrot.slane %v10155_v19, 3  ;;  %v7772_v48 = vsel %vm631_vm2, %v746_v39, %v755_v62  ;;  %v10272_v19 = vshll.u32 %v7717_v57, 16  ;;  %v7791_v39 = vld [vmem:[%s7220_s10 + $0x44] sm:$0xff]   ;;  %v10292_v4 = vshrl.u32 %v7779_v7, 16 }
  0x82   : > { %v7768_v21 = vrot.slane %v10271_v3, 1  ;;  %v772_v3 = vrot.slane %v10275_v28, 3  ;;  %10276 = vst [vmem:[#allocation19_spill] sm:$0xff] %v7791_v39  ;;  %v3069_v42 = vor.u32 %v3068_v49, %v3064_v59  ;;  %v10163_v59 = vshll.u32 %v7491_v25, 16 }
  0x83   : > { %v7776_v55 = vrot.slane %v10272_v19, 1  ;;  %v764_v1 = vor.u32 %v763_v24, %v760_v10  ;;  %v10162_v19 = vshrl.u32 %v7487_v43, 16  ;;  %v10161_v10 = vshll.u32 %v7487_v43, 16 }
  0x84   : > { %6226 = vmatpush3.bf16.msra.mxu1 %v7067_v46  ;;  %v7076_v46 = vld [vmem:[%s10118_s1 + $0xa8] sm:$0xff]   ;;  %v2631_v24 = vor.u32 %v10277_v58, %v7687_v26  ;;  %v773_v11 = vor.u32 %v772_v3, %v769_v53  ;;  %v7828_v3 = vld [vmem:[%s7220_s10 + $0x5c] sm:$0xff]   ;;  %v794_v58 = vshrl.u32 %v7501_v44, 16  ;;  %v10166_v26 = vshrl.u32 %v7758_v60, 16 }
  0x85   : > { %6227 = vmatprep.subr.bf16.mxu1 %v7072_v61  ;;  %v7800_v28 = vsel %vm631_vm2, %v755_v62, %v764_v1  ;;  %v781_v12 = vrot.slane %v10161_v10, 3  ;;  %10279 = vst [vmem:[#allocation21_spill] sm:$0xff] %v7828_v3  ;;  %v3074_v10 = vsel %vm2488_vm1, %v3069_v42, %v7750_v34  ;;  %v10281_v42 = vshll.u32 %v7779_v7, 16 }
  0x86   : > { %6192 = vmatmul.mubr.bf16.gmra.mrb[8].mxu1 %v7620_v15  ;;  %v778_v15 = vrot.slane %v10162_v19, 2  ;;  %v7813_v62 = vsel %vm631_vm2, %v764_v1, %v773_v11  ;;  %v796_v49 = vrot.slane %v794_v58, 2  ;;  %v10283_v58 = vshll.u32 %v7791_v39, 16 }
  0x87   : > { %6420 = vmatmul.mubr.bf16.gmra.mrb[28].mxu0 %v2620_v18  ;;  %6195 = vmatprep.mubr.bf16.mxu1 %v7641_v63  ;;  %v10164_v63 = vshrl.u32 %v7491_v25, 16  ;;  %v7080_v18 = vld [vmem:[%s10118_s1 + $0xb0] sm:$0xff]   ;;  %v3105_v19 = vrot.slane %v10281_v42, 1 }
  0x88   : > { %6423 = vmatprep.mubr.bf16.mxu0 %v2628_v29  ;;  %6228 = vmatpush3.bf16.msra.mxu1 %v7072_v61  ;;  %v782_v53 = vor.u32 %v781_v12, %v778_v15  ;;  %v2636_v61 = vsel %vm2488_vm1, %v2631_v24, %v7713_v40  ;;  %v790_v29 = vrot.slane %v10163_v59, 3  ;;  %v797_v40 = vshll.u32 %v7501_v44, 16  ;;  %v7842_v59 = vld [vmem:[%s7220_s10 + $0x54] sm:$0xff]  }
  0x89   : > { %6229 = vmatprep.subr.bf16.mxu1 %v7076_v46  ;;  %v787_v1 = vrot.slane %v10164_v63, 2  ;;  %v3097_v12 = vrot.slane %v10165_v17, 1  ;;  %10280 = vst [vmem:[#allocation22_spill] sm:$0xff] %v7842_v59  ;;  %v7084_v44 = vld [vmem:[%s10118_s1 + $0xb8] sm:$0xff]   ;;  %v3113_v42 = vrot.slane %v10283_v58, 1  ;;  %v10284_v17 = vshll.u32 %v7805_v8, 16 }
  0x8a   : > { %v7835_v15 = vsel %vm631_vm2, %v773_v11, %v782_v53  ;;  %v799_v24 = vrot.slane %v797_v40, 3  ;;  %v7873_v58 = vld [vmem:[%s7220_s10 + $0x64] sm:$0xff]   ;;  %v3109_v54 = vor.u32 %v10292_v4, %v3105_v19 }
  0x8b   : > { %v791_v63 = vor.u32 %v790_v29, %v787_v1  ;;  %v7862_v11 = vrot.slane %v10284_v17, 1  ;;  %10287 = vst [vmem:[#allocation24_spill] sm:$0xff] %v7873_v58  ;;  %v1068_v17 = vshrl.u32 %v7237_v16, 16 }
  0x8c   : > { %6230 = vmatpush3.bf16.msra.mxu1 %v7076_v46  ;;  %v10285_v46 = vshrl.u32 %v7685_v56, 16 }
  0x8d   : > { %6231 = vmatprep.subr.bf16.mxu1 %v7080_v18  ;;  %v7854_v1 = vsel %vm631_vm2, %v782_v53, %v791_v63 }
  0x8e   : > { %6196 = vmatmul.mubr.bf16.gmra.mrb[12].mxu1 %v7660_v31  ;;  %10282 = vst [vmem:[#allocation23_spill] sm:$0xff] %v7854_v1  ;;  %v800_v31 = vor.u32 %v799_v24, %v796_v49  ;;  %v3077_v53 = vor.u32 %v10285_v46, %v7750_v34  ;;  %v7879_v49 = vld [vmem:[%s10118_s1 + $0xc0] sm:$0xff]   ;;  %v10288_v34 = vshrl.u32 %v7717_v57, 16 }
  0x8f   : > { %6424 = vmatmul.mubr.bf16.gmra.mrb[32].mxu0 %v2636_v61  ;;  %6199 = vmatprep.mubr.bf16.mxu1 %v7672_v41  ;;  %v10286_v61 = vshrl.u32 %v7707_v22, 16  ;;  %v3101_v41 = vor.u32 %v10166_v26, %v3097_v12 }
  0x90   : > { %6443 = vmatprep.mubr.bf16.mxu0 %v3074_v10  ;;  %6232 = vmatpush3.bf16.msra.mxu1 %v7080_v18  ;;  %v3093_v10 = vor.u32 %v10288_v34, %v7776_v55  ;;  %v7885_v24 = vsel %vm631_vm2, %v791_v63, %v800_v31  ;;  %v10290_v18 = vshrl.u32 %v7263_v30, 16  ;;  %v10293_v34 = vshll.u32 %v7828_v3, 16  ;;  %v7079_v63 = vld [vmem:[%s10118_s1 + $0x1c8] sm:$0xff]  }
  0x91   : > { %v3085_v29 = vor.u32 %v10286_v61, %v7768_v21  ;;  %6233 = vmatprep.subr.bf16.mxu1 %v7084_v44  ;;  %10289 = vst [vmem:[#allocation25_spill] sm:$0xff] %v7885_v24  ;;  %v10291_v61 = vshll.u32 %v7263_v30, 16  ;;  %v1071_v30 = vshll.u32 %v7237_v16, 16  ;;  %v3082_v4 = vsel %vm2488_vm1, %v3077_v53, %v7768_v21 }
  0x92   : > { %v1079_v46 = vrot.slane %v10290_v18, 3  ;;  %v7898_v45 = vrot.slane %v10293_v34, 1  ;;  %v10296_v24 = vshll.u32 %v7267_v32, 16  ;;  %v3098_v31 = vsel %vm2488_vm1, %v3093_v10, %v3097_v12 }
  0x93   : > { %v1080_v40 = vrot.slane %v10291_v61, 4  ;;  %v10294_v61 = vshrl.u32 %v7267_v32, 16  ;;  %v3090_v34 = vsel %vm2488_vm1, %v3085_v29, %v7776_v55  ;;  %v10167_v16 = vshll.u32 %v7873_v58, 16 }
  0x94   : > { %6234 = vmatpush3.bf16.msra.mxu1 %v7084_v44  ;;  %v1084_v1 = vrot.slane %v10296_v24, 4  ;;  %v10297_v21 = vshrl.u32 %v7233_v14, 16  ;;  %v10298_v44 = vshrl.u32 %v7290_v47, 16  ;;  %v10299_v32 = vshll.u32 %v7290_v47, 16 }
  0x95   : > { %v7905_v18 = vor.u32 %v1080_v40, %v1079_v46  ;;  %v1083_v26 = vrot.slane %v10294_v61, 3  ;;  %v1070_v40 = vrot.slane %v1068_v17, 3  ;;  %6271 = vmatprep.subr.bf16.mxu1 %v7879_v49  ;;  %v3106_v12 = vsel %vm2488_vm1, %v3101_v41, %v3105_v19 }
  0x96   : > { %6200 = vmatmul.mubr.bf16.gmra.mrb[16].mxu1 %v7704_v50  ;;  %v1075_v53 = vrot.slane %v10297_v21, 3  ;;  %v1087_v29 = vrot.slane %v10298_v44, 3  ;;  %v1088_v24 = vrot.slane %v10299_v32, 4  ;;  %v7931_v17 = vsel %vm2488_vm1, %v3109_v54, %v3113_v42 }
  0x97   : > { %v1085_v55 = vor.u32 %v1084_v1, %v1083_v26  ;;  %6444 = vmatmul.mubr.bf16.vlgmr.msra.gmra.mrb[0].mxu0 %v3082_v4  ;;  %6203 = vmatprep.mubr.bf16.mxu1 %v7724_v13  ;;  %v1073_v10 = vrot.slane %v1071_v30, 4  ;;  %v10300_v50 = vshll.u32 %v7233_v14, 16  ;;  %v10301_v1 = vshrl.u32 %v7298_v52, 16 }
  0x98   : > { %6447 = vmatprep.mubr.bf16.mxu0 %v3090_v34  ;;  %6480 = vmatpush3.bf16.msra.mxu0 %v7696_v36  ;;  %v1089_v47 = vor.u32 %v1088_v24, %v1087_v29  ;;  %v10302_v19 = vshll.u32 %v7298_v52, 16  ;;  %v10303_v54 = vshrl.u32 %v7791_v39, 16  ;;  %v10304_v14 = vshll.u32 %v7842_v59, 16  ;;  %v7083_v36 = vld [vmem:[%s10118_s1 + $0x1d0] sm:$0xff]  }
  0x99   : > { %v1076_v46 = vrot.slane %v10300_v50, 4  ;;  %v7938_v26 = vsel %vm1066_vm3, %v7905_v18, %v1085_v55  ;;  %v1091_v13 = vrot.slane %v10301_v1, 3  ;;  %6481 = vmatprep.subr.bf16.mxu0 %v7079_v63  ;;  %v10168_v4 = vshrl.u32 %v7873_v58, 16 }
  0x9a   : > { %v1092_v41 = vrot.slane %v10302_v19, 4  ;;  %v3117_v30 = vor.u32 %v10303_v54, %v3113_v42  ;;  %v3129_v61 = vrot.slane %v10304_v14, 1  ;;  %v10305_v52 = vshrl.u32 %v7805_v8, 16 }
  0x9b   : > { %v7957_v44 = vsel %vm1066_vm3, %v1085_v55, %v1089_v47  ;;  %v10306_v29 = vshrl.u32 %v7327_v5, 16  ;;  %v10307_v24 = vshrl.u32 %v7842_v59, 16  ;;  %v10308_v1 = vshrl.u32 %v7828_v3, 16 }
  0x9c   : > { %v3125_v21 = vor.u32 %v10305_v52, %v7862_v11  ;;  %v1093_v42 = vor.u32 %v1092_v41, %v1091_v13  ;;  %v3145_v54 = vrot.slane %v10167_v16, 1  ;;  %v10309_v14 = vshll.u32 %v7327_v5, 16  ;;  %6482 = vmatpush3.bf16.msra.mxu0 %v7079_v63  ;;  %v7971_v13 = vld [vmem:[%s7220_s10 + $0x74] sm:$0xff]  }
  0x9d   : > { %v1095_v32 = vrot.slane %v10306_v29, 3  ;;  %v3133_v50 = vor.u32 %v10307_v24, %v3129_v61  ;;  %v3141_v19 = vor.u32 %v10308_v1, %v7898_v45  ;;  %v1074_v55 = vor.u32 %v1073_v10, %v1070_v40  ;;  %10310 = vst [vmem:[#allocation27_spill] sm:$0xff] %v7971_v13  ;;  %6483 = vmatprep.subr.bf16.mxu0 %v7083_v36  ;;  %v7087_v1 = vld [vmem:[%s10118_s1 + $0x1d8] sm:$0xff]  }
  0x9e   : > { %v1096_v52 = vrot.slane %v10309_v14, 4  ;;  %v1077_v34 = vor.u32 %v1076_v46, %v1075_v53  ;;  %v7974_v41 = vsel %vm1066_vm3, %v1089_v47, %v1093_v42  ;;  %v10311_v29 = vshrl.u32 %v7344_v20, 16  ;;  %6204 = vmatmul.mubr.bf16.gmra.mrb[20].mxu1 %v7753_v35 }
  0x9f   : > { %v3149_v5 = vor.u32 %v10168_v4, %v3145_v54  ;;  %v10312_v63 = vshll.u32 %v7914_v51, 16  ;;  %v10313_v10 = vshll.u32 %v7344_v20, 16  ;;  %v3122_v47 = vsel %vm2488_vm1, %v3117_v30, %v7862_v11  ;;  %6448 = vmatmul.mubr.bf16.gmra.mrb[4].mxu0 %v3098_v31  ;;  %6207 = vmatprep.mubr.bf16.mxu1 %v7772_v48 }
  0xa0   : > { %v1099_v24 = vrot.slane %v10311_v29, 3  ;;  %v1097_v53 = vor.u32 %v1096_v52, %v1095_v32  ;;  %v7991_v14 = vsel %vm2488_vm1, %v3125_v21, %v3129_v61  ;;  %v10170_v29 = vshrl.u32 %v7914_v51, 16  ;;  %6451 = vmatprep.mubr.bf16.mxu0 %v3106_v12  ;;  %6484 = vmatpush3.bf16.msra.mxu0 %v7083_v36 }
  0xa1   : > { %v3153_v40 = vrot.slane %v10312_v63, 1  ;;  %v1100_v46 = vrot.slane %v10313_v10, 4  ;;  %v10314_v16 = vshrl.u32 %v7375_v37, 16  ;;  %v7999_v20 = vsel %vm2488_vm1, %v3133_v50, %v7898_v45  ;;  %6485 = vmatprep.subr.bf16.mxu0 %v7087_v1 }
  0xa2   : > { %v8002_v35 = vsel %vm1066_vm3, %v1093_v42, %v1097_v53  ;;  %v10315_v30 = vshll.u32 %v7375_v37, 16  ;;  %v8007_v21 = vsel %vm2488_vm1, %v3141_v19, %v3145_v54  ;;  %v8010_v31 = vsel %vm1066_vm3, %v1074_v55, %v1077_v34  ;;  %v7091_v37 = vld [vmem:[%s10118_s1 + $0x1e0] sm:$0xff]   ;;  %v3490_v19 = vld [vmem:[%s7220_s10 + $0x14] sm:$0xe] }
  0xa3   : > { %v1103_v4 = vrot.slane %v10314_v16, 3  ;;  %v1101_v11 = vor.u32 %v1100_v46, %v1099_v24  ;;  %v10169_v48 = vshll.u32 %v7971_v13, 16  ;;  %v10316_v45 = vshrl.u32 %v7378_v38, 16  ;;  %v7095_v46 = vld [vmem:[%s10118_s1 + $0x1e8] sm:$0xff]  }
  0xa4   : > { %v1104_v61 = vrot.slane %v10315_v30, 4  ;;  %v8016_v42 = vsel %vm2488_vm1, %v3149_v5, %v3153_v40  ;;  %v10317_v32 = vshll.u32 %v7378_v38, 16  ;;  %v8029_v54 = vsel %vm1066_vm3, %v1077_v34, %v7905_v18  ;;  %6486 = vmatpush3.bf16.msra.mxu0 %v7087_v1 }
  0xa5   : > { %v1107_v16 = vrot.slane %v10316_v45, 3  ;;  %v8022_v12 = vsel %vm1066_vm3, %v1097_v53, %v1101_v11  ;;  %v8033_v52 = vor.u32 %v10170_v29, %v3153_v40  ;;  %v10171_v55 = vshrl.u32 %v7971_v13, 16  ;;  %6487 = vmatprep.subr.bf16.mxu0 %v7091_v37 }
  0xa6   : > { %v1105_v36 = vor.u32 %v1104_v61, %v1103_v4  ;;  %v1108_v50 = vrot.slane %v10317_v32, 4  ;;  %v8037_v24 = vcombine.low %v3490_v19, %v7679_v27  ;;  %v3513_v38 = vrot.slane %v7685_v56, 1  ;;  %6208 = vmatmul.mubr.bf16.gmra.mrb[24].mxu1 %v7800_v28 }
  0xa7   : > { %v10319_v34 = vshrl.u32 %v7407_v9, 16  ;;  %v10320_v40 = vshll.u32 %v7407_v9, 16  ;;  %v3515_v10 = vrot.slane %v7707_v22, 1  ;;  %v8051_v27 = vrot.slane %v10169_v48, 1  ;;  %6452 = vmatmul.mubr.bf16.gmra.mrb[8].mxu0 %v7931_v17  ;;  %6211 = vmatprep.mubr.bf16.mxu1 %v7813_v62  ;;  %v8181_v48 = vld [vmem:[%s7220_s10 + $0x84] sm:$0xff]   ;;  %v8246_v22 = vld [vmem:[%s7220_s10 + $0x9c] sm:$0xff]  }
  0xa8   : > { %10318 = vst [vmem:[#allocation28_spill] sm:$0xff] %v8037_v24  ;;  %v8040_v5 = vsel %vm1066_vm3, %v1101_v11, %v1105_v36  ;;  %v1109_v4 = vor.u32 %v1108_v50, %v1107_v16  ;;  %v3512_v18 = vrot.slane %v8037_v24, 1  ;;  %v10321_v11 = vshrl.u32 %v7420_v33, 16  ;;  %6455 = vmatprep.mubr.bf16.mxu0 %v3122_v47  ;;  %6488 = vmatpush3.bf16.msra.mxu0 %v7091_v37 }
  0xa9   : > { %v1111_v63 = vrot.slane %v10319_v34, 3  ;;  %v1112_v53 = vrot.slane %v10320_v40, 4  ;;  %v10322_v9 = vshll.u32 %v7420_v33, 16  ;;  %v8068_v32 = vsel %vm3511_vm4, %v3513_v38, %v3515_v10  ;;  %6489 = vmatprep.subr.bf16.mxu0 %v7095_v46 }
  0xaa   : > { %v8057_v1 = vsel %vm1066_vm3, %v1105_v36, %v1109_v4  ;;  %v1115_v30 = vrot.slane %v10321_v11, 3  ;;  %v8065_v45 = vsel %vm3511_vm4, %v3512_v18, %v3513_v38  ;;  %v3517_v50 = vrot.slane %v7717_v57, 1 }
  0xab   : > { %v1116_v61 = vrot.slane %v10322_v9, 4  ;;  %v1113_v16 = vor.u32 %v1112_v53, %v1111_v63  ;;  %v10323_v19 = vshrl.u32 %v7437_v0, 16  ;;  %v10324_v34 = vshll.u32 %v7437_v0, 16  ;;  %v7099_v0 = vld [vmem:[%s10118_s1 + $0x1f0] sm:$0xff]  }
  0xac   : > { %v3519_v18 = vrot.slane %v7758_v60, 1  ;;  %v8082_v63 = vsel %vm3511_vm4, %v3515_v10, %v3517_v50  ;;  %v10325_v17 = vshrl.u32 %v7441_v6, 16  ;;  %v10326_v40 = vshll.u32 %v7441_v6, 16  ;;  %6490 = vmatpush3.bf16.msra.mxu0 %v7095_v46 }
  0xad   : > { %v1117_v36 = vor.u32 %v1116_v61, %v1115_v30  ;;  %v1119_v33 = vrot.slane %v10323_v19, 3  ;;  %v1120_v28 = vrot.slane %v10324_v34, 4  ;;  %v8079_v38 = vsel %vm1066_vm3, %v1109_v4, %v1113_v16  ;;  %6491 = vmatprep.subr.bf16.mxu0 %v7099_v0 }
  0xae   : > { %v1123_v62 = vrot.slane %v10325_v17, 3  ;;  %v1124_v53 = vrot.slane %v10326_v40, 4  ;;  %v8095_v4 = vsel %vm3511_vm4, %v3517_v50, %v3519_v18  ;;  %v3521_v10 = vrot.slane %v7779_v7, 1  ;;  %6212 = vmatmul.mubr.bf16.gmra.mrb[28].mxu1 %v7835_v15 }
  0xaf   : > { %v8092_v47 = vsel %vm1066_vm3, %v1113_v16, %v1117_v36  ;;  %v1121_v37 = vor.u32 %v1120_v28, %v1119_v33  ;;  %v10327_v30 = vshrl.u32 %v7466_v23, 16  ;;  %v10328_v9 = vshll.u32 %v7466_v23, 16  ;;  %6456 = vmatmul.mubr.bf16.gmra.mrb[12].mxu0 %v7991_v14 }
  0xb0   : > { %v1125_v11 = vor.u32 %v1124_v53, %v1123_v62  ;;  %v3523_v19 = vrot.slane %v7791_v39, 1  ;;  %v8107_v16 = vsel %vm3511_vm4, %v3519_v18, %v3521_v10  ;;  %v10329_v50 = vshrl.u32 %v7472_v2, 16  ;;  %v8114_v62 = vld [vmem:[%s7220_s10 + $0x7c] sm:$0xff]   ;;  %6459 = vmatprep.mubr.bf16.mxu0 %v7999_v20  ;;  %6492 = vmatpush3.bf16.msra.mxu0 %v7099_v0 }
  0xb1   : > { %v1127_v6 = vrot.slane %v10327_v30, 3  ;;  %v1128_v61 = vrot.slane %v10328_v9, 4  ;;  %v8104_v34 = vsel %vm1066_vm3, %v1117_v36, %v1121_v37  ;;  %v10330_v28 = vshll.u32 %v7472_v2, 16  ;;  %v7103_v18 = vld [vmem:[%s10118_s1 + $0x1f8] sm:$0xff]  }
  0xb2   : > { %v1131_v33 = vrot.slane %v10329_v50, 3  ;;  %v8117_v23 = vsel %vm1066_vm3, %v1121_v37, %v1125_v11  ;;  %v8120_v53 = vsel %vm3511_vm4, %v3521_v10, %v3523_v19  ;;  %v3525_v36 = vrot.slane %v7805_v8, 1  ;;  %6493 = vmatprep.subr.bf16.mxu0 %v7103_v18  ;;  %v10338_v0 = vld [vmem:[#allocation5_spill] sm:$0xff] }
  0xb3   : > { %v1132_v17 = vrot.slane %v10330_v28, 4  ;;  %v1129_v40 = vor.u32 %v1128_v61, %v1127_v6  ;;  %v10331_v2 = vshrl.u32 %v7487_v43, 16  ;;  %v10332_v46 = vshll.u32 %v7487_v43, 16  ;;  %v10335_v43 = vld [vmem:[#allocation23_spill] sm:$0xff] }
  0xb4   : > { %v3527_v37 = vrot.slane %v7842_v59, 1  ;;  %v8136_v6 = vsel %vm3511_vm4, %v3523_v19, %v3525_v36  ;;  %v10333_v61 = vshrl.u32 %v7491_v25, 16  ;;  %6215 = vmatprep.mubr.bf16.mxu1 %v10335_v43  ;;  %v3529_v19 = vrot.slane %v7828_v3, 1  ;;  %6494 = vmatpush3.bf16.msra.mxu0 %v7103_v18  ;;  %v8205_v59 = vld [vmem:[%s7220_s10 + $0x8c] sm:$0xff]  }
  0xb5   : > { %v1133_v30 = vor.u32 %v1132_v17, %v1131_v33  ;;  %v1135_v9 = vrot.slane %v10331_v2, 3  ;;  %v1136_v50 = vrot.slane %v10332_v46, 4  ;;  %v8133_v10 = vsel %vm1066_vm3, %v1125_v11, %v1129_v40 }
  0xb6   : > { %v1139_v28 = vrot.slane %v10333_v61, 3  ;;  %v10334_v33 = vshll.u32 %v7491_v25, 16  ;;  %v8148_v11 = vsel %vm3511_vm4, %v3525_v36, %v3527_v37  ;;  %v10178_v46 = vshll.u32 %v8114_v62, 16 }
  0xb7   : > { %v8145_v2 = vsel %vm1066_vm3, %v1129_v40, %v1133_v30  ;;  %v1137_v15 = vor.u32 %v1136_v50, %v1135_v9  ;;  %v3531_v61 = vrot.slane %v7873_v58, 1  ;;  %v8160_v40 = vld [vmem:[%s10118_s1 + $0x200] sm:$0xff]   ;;  %v8166_v20 = vsel %vm3511_vm4, %v3527_v37, %v3529_v19  ;;  %v10336_v9 = vld [vmem:[#allocation3_spill] sm:$0xff]  ;;  %v10337_v50 = vld [vmem:[#allocation4_spill] sm:$0xff]  ;;  %6460 = vmatmul.mubr.bf16.gmra.mrb[16].mxu0 %v8007_v21 }
  0xb8   : > { %v1140_v17 = vrot.slane %v10334_v33, 4  ;;  %v1585_v33 = vor.u32 %v10337_v50, %v10336_v9  ;;  %v8175_v43 = vsel %vm2488_vm1, %v8033_v52, %v8051_v27  ;;  %v10340_v52 = vld [vmem:[#allocation9_spill] sm:$0xff]  ;;  %v3535_v25 = vrot.slane %v7971_v13, 1  ;;  %6531 = vmatprep.subr.bf16.mxu0 %v8160_v40  ;;  %6463 = vmatprep.mubr.bf16.mxu0 %v8016_v42 }
  0xb9   : > { %v8163_v36 = vsel %vm1066_vm3, %v1133_v30, %v1137_v15  ;;  %v3165_v30 = vor.u32 %v10171_v55, %v8051_v27  ;;  %v8188_v9 = vsel %vm3511_vm4, %v3529_v19, %v3531_v61  ;;  %v3169_v27 = vrot.slane %v10178_v46, 1  ;;  %v10342_v55 = vld [vmem:[#allocation2_spill] sm:$0xff]  ;;  %v10347_v13 = vld [vmem:[#allocation25_spill] sm:$0xff] }
  0xba   : > { %v8154_v14 = vor.u32 %v1140_v17, %v1139_v28  ;;  %v10339_v28 = vld [vmem:[#allocation8_spill] sm:$0xff]  ;;  %v10344_v19 = vshll.u32 %v10342_v55, 16  ;;  %6216 = vmatmul.mubr.bf16.gmra.mrb[32].mxu1 %v10347_v13  ;;  %v10350_v13 = vld [vmem:[#allocation7_spill] sm:$0xff] }
  0xbb   : > { %v1593_v17 = vor.u32 %v10339_v28, %v10338_v0  ;;  %v3533_v0 = vrot.slane %v7914_v51, 1  ;;  %v10341_v28 = vld [vmem:[#allocation10_spill] sm:$0xff]  ;;  %6235 = vmatprep.mubr.bf16.mxu1 %v8010_v31  ;;  %v10351_v39 = vshrl.u32 %v10350_v13, 16 }
  0xbc   : > { %v8185_v37 = vsel %vm1066_vm3, %v1137_v15, %v8154_v14  ;;  %v1602_v29 = vor.u32 %v10341_v28, %v10340_v52  ;;  %v10343_v15 = vshrl.u32 %v10342_v55, 16  ;;  %v1610_v3 = vrot.slane %v10344_v19, 4 }
  0xbd   : > { %v8191_v50 = vsel %vm1066_vm3, %v1585_v33, %v1593_v17  ;;  %v3537_v33 = vrot.slane %v8114_v62, 1  ;;  %v8209_v52 = vsel %vm3511_vm4, %v3531_v61, %v3533_v0  ;;  %v8215_v18 = vsel %vm3511_vm4, %v3533_v0, %v3535_v25  ;;  %v8229_v0 = vld [vmem:[%s7220_s10 + $0x94] sm:$0xff]  }
  0xbe   : > { %v1607_v58 = vrot.slane %v10343_v15, 3  ;;  %v8212_v28 = vsel %vm1066_vm3, %v1593_v17, %v1602_v29  ;;  %v10345_v15 = vld [vmem:[#allocation6_spill] sm:$0xff]  ;;  %v1625_v19 = vrot.slane %v10351_v39, 3 }
  0xbf   : > { %v10346_v46 = vshrl.u32 %v10345_v15, 16  ;;  %v8222_v8 = vsel %vm3511_vm4, %v3535_v25, %v3537_v33  ;;  %v10349_v61 = vshll.u32 %v10345_v15, 16  ;;  %v3541_v25 = vrot.slane %v8205_v59, 1  ;;  %v8249_v39 = vld [vmem:[%s7220_s10 + $0xa4] ss:$0 sps:$4 sm:$0x11]   ;;  %6464 = vmatmul.mubr.bf16.gmra.mrb[20].mxu0 %v8175_v43 }
  0xc0   : > { %v1611_v51 = vor.u32 %v1610_v3, %v1607_v58  ;;  %10348 = vst [vmem:[#allocation23_spill] sm:$0xff] %v8222_v8  ;;  %v10352_v3 = vshll.u32 %v10350_v13, 16 }
  0xc1   : > { %v1616_v55 = vrot.slane %v10346_v46, 3  ;;  %v1619_v17 = vrot.slane %v10349_v61, 4  ;;  %v3539_v46 = vrot.slane %v8181_v48, 1  ;;  %v10353_v61 = vld [vmem:[#allocation11_spill] sm:$0xff] }
  0xc2   : > { %v1628_v58 = vrot.slane %v10352_v3, 4  ;;  %v8239_v15 = vsel %vm1066_vm3, %v1602_v29, %v1611_v51  ;;  %v10354_v31 = vshrl.u32 %v10353_v61, 16  ;;  %v10355_v60 = vshll.u32 %v10353_v61, 16  ;;  %6236 = vmatmul.mubr.bf16.vlgmr.msra.gmra.mrb[0].mxu1 %v8029_v54 }
  0xc3   : > { %v1620_v21 = vor.u32 %v1619_v17, %v1616_v55  ;;  %v8252_v13 = vsel %vm3511_vm4, %v3537_v33, %v3539_v46  ;;  %v8255_v42 = vsel %vm3511_vm4, %v3539_v46, %v3541_v25  ;;  %v3543_v29 = vrot.slane %v8229_v0, 1  ;;  %v10361_v46 = vld [vmem:[#allocation13_spill] sm:$0xff]  ;;  %6272 = vmatpush3.bf16.msra.mxu1 %v7879_v49  ;;  %6239 = vmatprep.mubr.bf16.mxu1 %v7938_v26 }
  0xc4   : > { %v1634_v7 = vrot.slane %v10354_v31, 3  ;;  %v1637_v57 = vrot.slane %v10355_v60, 4  ;;  %v1629_v3 = vor.u32 %v1628_v58, %v1625_v19  ;;  %10356 = vst [vmem:[#allocation3_spill] sm:$0xff] %v8255_v42  ;;  %v10357_v31 = vld [vmem:[#allocation12_spill] sm:$0xff]  ;;  %v3545_v19 = vrot.slane %v8246_v22, 1 }
  0xc5   : > { %v8259_v55 = vsel %vm1066_vm3, %v1611_v51, %v1620_v21  ;;  %v10358_v61 = vshrl.u32 %v10357_v31, 16  ;;  %v10359_v56 = vshll.u32 %v10357_v31, 16  ;;  %v8269_v33 = vsel %vm3511_vm4, %v3541_v25, %v3543_v29  ;;  %v7094_v25 = vld [vmem:[%s10118_s1 + $0xc8] sm:$0xff]  }
  0xc6   : > { %v1638_v17 = vor.u32 %v1637_v57, %v1634_v7  ;;  %v8266_v8 = vsel %vm1066_vm3, %v1620_v21, %v1629_v3  ;;  %10360 = vst [vmem:[#allocation4_spill] sm:$0xff] %v8269_v33  ;;  %v10362_v58 = vshrl.u32 %v10361_v46, 16  ;;  %v10363_v7 = vshll.u32 %v10361_v46, 16  ;;  %6273 = vmatprep.subr.bf16.mxu1 %v7094_v25 }
  0xc7   : > { %v1643_v60 = vrot.slane %v10358_v61, 3  ;;  %v1646_v24 = vrot.slane %v10359_v56, 4  ;;  %v3547_v56 = vrot.slane %v8249_v39, 1  ;;  %v3170_v21 = vsel %vm2488_vm1, %v3165_v30, %v3169_v27  ;;  %6274 = vmatpush3.bf16.msra.mxu1 %v7094_v25 }
  0xc8   : > { %v1652_v42 = vrot.slane %v10362_v58, 3  ;;  %v8275_v51 = vsel %vm1066_vm3, %v1629_v3, %v1638_v17  ;;  %v1655_v61 = vrot.slane %v10363_v7, 4  ;;  %v3179_v31 = vshrl.u32 %v8181_v48, 16  ;;  %6467 = vmatprep.mubr.bf16.mxu0 %v3170_v21 }
  0xc9   : > { %v1647_v57 = vor.u32 %v1646_v24, %v1643_v60  ;;  %v3183_v33 = vshll.u32 %v8205_v59, 16  ;;  %v8287_v58 = vsel %vm3511_vm4, %v3543_v29, %v3545_v19  ;;  %v8296_v30 = vsel %vm3511_vm4, %v3545_v19, %v3547_v56  ;;  %v7102_v56 = vld [vmem:[%s10118_s1 + $0xd8] sm:$0xff]  }
  0xca   : > { %v8293_v3 = vor.u32 %v1655_v61, %v1652_v42  ;;  %v10364_v60 = vshll.u32 %v8181_v48, 16  ;;  %v10365_v54 = vshrl.u32 %v8114_v62, 16  ;;  %v7098_v42 = vld [vmem:[%s10118_s1 + $0xd0] sm:$0xff]   ;;  %v3191_v26 = vshll.u32 %v8229_v0, 16  ;;  %6240 = vmatmul.mubr.bf16.gmra.mrb[4].mxu1 %v7957_v44 }
  0xcb   : > { %v8291_v24 = vsel %vm1066_vm3, %v1638_v17, %v1647_v57  ;;  %v3185_v43 = vrot.slane %v3183_v33, 1  ;;  %v3187_v19 = vshrl.u32 %v8205_v59, 16  ;;  %6275 = vmatprep.subr.bf16.mxu1 %v7098_v42  ;;  %v3199_v61 = vshll.u32 %v8246_v22, 16  ;;  %6243 = vmatprep.mubr.bf16.mxu1 %v7974_v41 }
  0xcc   : > { %v3177_v46 = vrot.slane %v10364_v60, 1  ;;  %v3173_v29 = vor.u32 %v10365_v54, %v3169_v27  ;;  %v8310_v17 = vsel %vm1066_vm3, %v1647_v57, %v8293_v3  ;;  %v3195_v57 = vshrl.u32 %v8229_v0, 16  ;;  %6276 = vmatpush3.bf16.msra.mxu1 %v7098_v42  ;;  %v7105_v0 = vld [vmem:[%s10118_s1 + $0xe0] sm:$0xff]   ;;  %v7107_v42 = vld [vmem:[%s10118_s1 + $0xe8] sm:$0xff]  }
  0xcd   : > { %v3193_v21 = vrot.slane %v3191_v26, 1  ;;  %v3189_v25 = vor.u32 %v3187_v19, %v3185_v43  ;;  %6277 = vmatprep.subr.bf16.mxu1 %v7102_v56  ;;  %v3203_v44 = vshrl.u32 %v8246_v22, 16  ;;  %v7109_v22 = vld [vmem:[%s10118_s1 + $0xf0] sm:$0xff]  }
  0xce   : > { %v3181_v49 = vor.u32 %v3179_v31, %v3177_v46  ;;  %v3178_v27 = vsel %vm2488_vm1, %v3173_v29, %v3177_v46  ;;  %v3201_v46 = vrot.slane %v3199_v61, 1  ;;  %v3207_v29 = vshll.u32 %v8249_v39, 16 }
  0xcf   : > { %6468 = vmatmul.mubr.bf16.gmra.mrb[24].mxu0 %v3178_v27  ;;  %v3197_v60 = vor.u32 %v3195_v57, %v3193_v21  ;;  %v3194_v54 = vsel %vm2488_vm1, %v3189_v25, %v3193_v21  ;;  %v8357_v27 = vld [vmem:[%s10118_s1 + $0x100] sm:$0xff]   ;;  %v3923_v21 = vrot.slane %v3199_v61, 2 }
  0xd0   : > { %v3186_v7 = vsel %vm2488_vm1, %v3181_v49, %v3185_v43  ;;  %6278 = vmatpush3.bf16.msra.mxu1 %v7102_v56  ;;  %v3205_v49 = vor.u32 %v3203_v44, %v3201_v46  ;;  %v3209_v43 = vrot.slane %v3207_v29, 1  ;;  %v3922_v56 = vrot.slane %v3203_v44, 1  ;;  %v10368_v29 = vld [vmem:[#allocation28_spill] sm:$0xff] }
  0xd1   : > { %6471 = vmatprep.mubr.bf16.mxu0 %v3186_v7  ;;  %v3202_v41 = vsel %vm2488_vm1, %v3197_v60, %v3201_v46  ;;  %6279 = vmatprep.subr.bf16.mxu1 %v7105_v0  ;;  %v7110_v7 = vld [vmem:[%s10118_s1 + $0x210] sm:$0xff]   ;;  %v7114_v60 = vld [vmem:[%s10118_s1 + $0x220] sm:$0xff]  }
  0xd2   : > { %6244 = vmatmul.mubr.bf16.gmra.mrb[8].mxu1 %v8002_v35  ;;  %v3210_v39 = vsel %vm2488_vm1, %v3205_v49, %v3209_v43  ;;  %v7111_v35 = vld [vmem:[%s10118_s1 + $0xf8] sm:$0xff]  }
  0xd3   : > { %6247 = vmatprep.mubr.bf16.mxu1 %v8022_v12  ;;  %v7108_v12 = vld [vmem:[%s10118_s1 + $0x208] sm:$0xff]  }
  0xd4   : > { %6280 = vmatpush3.bf16.msra.mxu1 %v7105_v0  ;;  %v7116_v0 = vld [vmem:[%s10118_s1 + $0x230] sm:$0xff]  }
  0xd5   : > { %6281 = vmatprep.subr.bf16.mxu1 %v7107_v42 }
  0xd7   : > { %6472 = vmatmul.mubr.bf16.gmra.mrb[28].mxu0 %v3194_v54 }
  0xd8   : > { %6475 = vmatprep.mubr.bf16.mxu0 %v3202_v41  ;;  %6282 = vmatpush3.bf16.msra.mxu1 %v7107_v42  ;;  %v8446_v41 = vld [vmem:[%s7220_s10 + $0x60] sm:$0xf] }
  0xd9   : > { %6283 = vmatprep.subr.bf16.mxu1 %v7109_v22 }
  0xda   : > { %6248 = vmatmul.mubr.bf16.gmra.mrb[12].mxu1 %v8040_v5  ;;  %v7136_v5 = vld [vmem:[%s7220_s10 + $0xa4] ss:$0 sps:$4 sm:$0x33]  }
  0xdb   : > { %6251 = vmatprep.mubr.bf16.mxu1 %v8057_v1  ;;  %v3918_v1 = vrot.slane %v3195_v57, 1  ;;  %v3927_v25 = vshrl.u32 %v7136_v5, 16 }
  0xdc   : > { %6284 = vmatpush3.bf16.msra.mxu1 %v7109_v22 }
  0xdd   : > { %6285 = vmatprep.subr.bf16.mxu1 %v7111_v35 }
  0xdf   : > { %6476 = vmatmul.mubr.bf16.gmra.mrb[32].mxu0 %v3210_v39 }
  0xe0   : > { %6495 = vmatprep.mubr.bf16.mxu0 %v8065_v45  ;;  %6286 = vmatpush3.bf16.msra.mxu1 %v7111_v35  ;;  %v3919_v45 = vrot.slane %v3191_v26, 2 }
  0xe1   : > { %6583 = vmatprep.subr.bf16.mxu1 %v8357_v27 }
  0xe2   : > { %6252 = vmatmul.mubr.bf16.gmra.mrb[16].mxu1 %v8079_v38  ;;  %v3930_v38 = vshll.u32 %v7136_v5, 16 }
  0xe3   : > { %6255 = vmatprep.mubr.bf16.mxu1 %v8092_v47  ;;  %v3924_v47 = vor.u32 %v3923_v21, %v3922_v56  ;;  %v10372_v56 = vld [vmem:[#allocation4_spill] sm:$0xff] }
  0xe4   : > { %v3932_v26 = vrot.slane %v3930_v38, 2 }
  0xe7   : > { %6496 = vmatmul.mubr.bf16.vlgmr.msra.gmra.mrb[0].mxu0 %v8068_v32  ;;  %v8369_v32 = vor.u32 %v3919_v45, %v3918_v1 }
  0xe8   : > { %6499 = vmatprep.mubr.bf16.mxu0 %v8082_v63  ;;  %6532 = vmatpush3.bf16.msra.mxu0 %v8160_v40  ;;  %v7113_v63 = vld [vmem:[%s10118_s1 + $0x218] sm:$0xff]   ;;  %v3929_v40 = vrot.slane %v3927_v25, 1 }
  0xe9   : > { %6533 = vmatprep.subr.bf16.mxu0 %v7108_v12  ;;  %v8377_v57 = vsel %vm3849_vm5, %v8369_v32, %v3924_v47 }
  0xea   : > { %6256 = vmatmul.mubr.bf16.gmra.mrb[20].mxu1 %v8104_v34  ;;  %v3933_v61 = vor.u32 %v3932_v26, %v3929_v40  ;;  %v7112_v34 = vld [vmem:[%s7220_s10 + $0x90] ss:$0 sps:$4 sm:$0xff]   ;;  %v8467_v40 = vld [vmem:[%s7220_s10 + $0x68] sm:$0xf]  ;;  %v8470_v26 = vld [vmem:[%s7220_s10 + $0x6c] sm:$0xf] }
  0xeb   : > { %6259 = vmatprep.mubr.bf16.mxu1 %v8117_v23  ;;  %v1147_v23 = vshll.u32 %v7112_v34, 16 }
  0xec   : > { %6534 = vmatpush3.bf16.msra.mxu0 %v7108_v12  ;;  %v8386_v46 = vsel %vm3849_vm5, %v3924_v47, %v3933_v61  ;;  %v10369_v12 = vld [vmem:[#allocation14_spill] sm:$0xff] }
  0xed   : > { %6535 = vmatprep.subr.bf16.mxu0 %v7110_v7  ;;  %v1149_v44 = vrot.slane %v1147_v23, 4  ;;  %v10371_v1 = vshll.u32 %v10369_v12, 16 }
  0xef   : > { %6500 = vmatmul.mubr.bf16.gmra.mrb[4].mxu0 %v8095_v4  ;;  %v7115_v4 = vld [vmem:[%s10118_s1 + $0x228] sm:$0xff]   ;;  %v3859_v45 = vrot.slane %v10371_v1, 2  ;;  %v10379_v1 = vld [vmem:[#allocation17_spill] sm:$0xff] }
  0xf0   : > { %6503 = vmatprep.mubr.bf16.mxu0 %v8107_v16  ;;  %6536 = vmatpush3.bf16.msra.mxu0 %v7110_v7  ;;  %v1144_v16 = vshrl.u32 %v7112_v34, 16  ;;  %v7143_v7 = vld [vmem:[%s10118_s1 + $0x120] sm:$0xff]   ;;  %v8479_v34 = vld [vmem:[%s7220_s10 + $0x74] sm:$0xf] }
  0xf1   : > { %6537 = vmatprep.subr.bf16.mxu0 %v7113_v63 }
  0xf2   : > { %6260 = vmatmul.mubr.bf16.gmra.mrb[24].mxu1 %v8133_v10  ;;  %v1146_v54 = vrot.slane %v1144_v16, 3 }
  0xf3   : > { %6263 = vmatprep.mubr.bf16.mxu1 %v8145_v2  ;;  %v10366_v2 = vld [vmem:[#allocation23_spill] sm:$0xff] }
  0xf4   : > { %6538 = vmatpush3.bf16.msra.mxu0 %v7113_v63  ;;  %v1150_v10 = vor.u32 %v1149_v44, %v1146_v54 }
  0xf5   : > { %6539 = vmatprep.subr.bf16.mxu0 %v7114_v60 }
  0xf7   : > { %6504 = vmatmul.mubr.bf16.gmra.mrb[8].mxu0 %v8120_v53  ;;  %v7117_v53 = vld [vmem:[%s10118_s1 + $0x238] sm:$0xff]  }
  0xf8   : > { %6507 = vmatprep.mubr.bf16.mxu0 %v8136_v6  ;;  %6540 = vmatpush3.bf16.msra.mxu0 %v7114_v60  ;;  %v1151_v6 = vsel %vm1066_vm3, %v8154_v14, %v1150_v10  ;;  %v8420_v14 = vld [vmem:[%s7220_s10 + $0x50] sm:$0xf]  ;;  %v7144_v60 = vld [vmem:[%s10118_s1 + $0x128] sm:$0xff]  }
  0xf9   : > { %6541 = vmatprep.subr.bf16.mxu0 %v7115_v4 }
  0xfa   : > { %6264 = vmatmul.mubr.bf16.gmra.mrb[28].mxu1 %v8163_v36  ;;  %v8423_v36 = vld [vmem:[%s7220_s10 + $0x54] sm:$0xf] }
  0xfb   : > { %6267 = vmatprep.mubr.bf16.mxu1 %v8185_v37  ;;  %v5504_v37 = vcombine.low %v8420_v14, %v8423_v36 }
  0xfc   : > { %6542 = vmatpush3.bf16.msra.mxu0 %v7115_v4 }
  0xfd   : > { %6543 = vmatprep.subr.bf16.mxu0 %v7116_v0 }
  0xff   : > { %6508 = vmatmul.mubr.bf16.gmra.mrb[12].mxu0 %v8148_v11  ;;  %v7140_v11 = vld [vmem:[%s10118_s1 + $0x108] sm:$0xff]  }
 0x100   : > { %6511 = vmatprep.mubr.bf16.mxu0 %v8166_v20  ;;  %6544 = vmatpush3.bf16.msra.mxu0 %v7116_v0  ;;  %v7141_v20 = vld [vmem:[%s10118_s1 + $0x110] sm:$0xff]  }
 0x101   : > { %6545 = vmatprep.subr.bf16.mxu0 %v7117_v53 }
 0x102   : > { %6268 = vmatmul.mubr.bf16.gmra.mrb[32].mxu1 %v1151_v6 }
 0x103   : > { %6287 = vmatprep.mubr.bf16.mxu1 %v8191_v50  ;;  %v1659_v50 = vshrl.u32 %v5504_v37, 16 }
 0x104   : > { %6546 = vmatpush3.bf16.msra.mxu0 %v7117_v53  ;;  %v5507_v53 = vcombine.low %v8467_v40, %v8470_v26 }
 0x105   : > { %v1661_v49 = vrot.slane %v1659_v50, 3 }
 0x107   : > { %6512 = vmatmul.mubr.bf16.gmra.mrb[16].mxu0 %v8188_v9  ;;  %v10367_v9 = vld [vmem:[#allocation3_spill] sm:$0xff] }
 0x108   : > { %6515 = vmatprep.mubr.bf16.mxu0 %v8209_v52  ;;  %v1662_v52 = vshll.u32 %v5504_v37, 16  ;;  %v10376_v37 = vld [vmem:[#allocation16_spill] sm:$0xff] }
 0x10a   : > { %6288 = vmatmul.mubr.bf16.vlgmr.msra.gmra.mrb[0].mxu1 %v8212_v28  ;;  %v8435_v28 = vld [vmem:[%s7220_s10 + $0x58] sm:$0xf]  ;;  %v1664_v43 = vrot.slane %v1662_v52, 4  ;;  %v10378_v52 = vshll.u32 %v10376_v37, 16 }
 0x10b   : > { %6591 = vmatpush3.bf16.msra.mxu1 %v8357_v27  ;;  %6291 = vmatprep.mubr.bf16.mxu1 %v8239_v15  ;;  %v7142_v15 = vld [vmem:[%s10118_s1 + $0x118] sm:$0xff]   ;;  %v10370_v27 = vshrl.u32 %v10369_v12, 16 }
 0x10c   : > { %6584 = vmatprep.subr.bf16.mxu1 %v7140_v11  ;;  %v1665_v38 = vor.u32 %v1664_v43, %v1661_v49 }
 0x10d   : > { %v3858_v5 = vrot.slane %v10370_v27, 1  ;;  %v8508_v27 = vld [vmem:[%s7220_s10 + $0x80] sm:$0xf] }
 0x10e   : > { %v1666_v10 = vsel %vm1066_vm3, %v8293_v3, %v1665_v38  ;;  %v7145_v3 = vld [vmem:[%s10118_s1 + $0x130] sm:$0xff]  }
 0x10f   : > { %6516 = vmatmul.mubr.bf16.gmra.mrb[20].mxu0 %v8215_v18  ;;  %6592 = vmatpush3.bf16.msra.mxu1 %v7140_v11  ;;  %v8438_v18 = vld [vmem:[%s7220_s10 + $0x5c] sm:$0xf] }
 0x110   : > { %6519 = vmatprep.mubr.bf16.mxu0 %v10366_v2  ;;  %6585 = vmatprep.subr.bf16.mxu1 %v7141_v20  ;;  %v5505_v42 = vcombine.low %v8435_v28, %v8438_v18 }
 0x112   : > { %6292 = vmatmul.mubr.bf16.gmra.mrb[4].mxu1 %v8259_v55  ;;  %v3851_v55 = vshrl.u32 %v10368_v29, 16  ;;  %v1668_v21 = vshrl.u32 %v5505_v42, 16  ;;  %v1671_v25 = vshll.u32 %v5505_v42, 16  ;;  %v1689_v42 = vshll.u32 %v5507_v53, 16 }
 0x113   : > { %6295 = vmatprep.mubr.bf16.mxu1 %v8266_v8  ;;  %6593 = vmatpush3.bf16.msra.mxu1 %v7141_v20  ;;  %v8449_v8 = vld [vmem:[%s7220_s10 + $0x64] sm:$0xf] }
 0x114   : > { %6586 = vmatprep.subr.bf16.mxu1 %v7142_v15  ;;  %v5506_v22 = vcombine.low %v8446_v41, %v8449_v8  ;;  %v3853_v39 = vrot.slane %v3851_v55, 1  ;;  %v1670_v54 = vrot.slane %v1668_v21, 3  ;;  %v1673_v44 = vrot.slane %v1671_v25, 4 }
 0x116   : > { %v1677_v47 = vshrl.u32 %v5506_v22, 16  ;;  %v1680_v63 = vshll.u32 %v5506_v22, 16  ;;  %v1674_v55 = vor.u32 %v1673_v44, %v1670_v54 }
 0x117   : > { %6520 = vmatmul.mubr.bf16.gmra.mrb[24].mxu0 %v8252_v13  ;;  %v3854_v13 = vshll.u32 %v10368_v29, 16  ;;  %6594 = vmatpush3.bf16.msra.mxu1 %v7142_v15  ;;  %v3867_v15 = vrot.slane %v10378_v52, 2 }
 0x118   : > { %6523 = vmatprep.mubr.bf16.mxu0 %v10367_v9  ;;  %6587 = vmatprep.subr.bf16.mxu1 %v7143_v7  ;;  %v1679_v6 = vrot.slane %v1677_v47, 3  ;;  %v1682_v2 = vrot.slane %v1680_v63, 4  ;;  %v10377_v9 = vshrl.u32 %v10376_v37, 16  ;;  %v1675_v25 = vsel %vm1066_vm3, %v1665_v38, %v1674_v55 }
 0x119   : > { %v3856_v35 = vrot.slane %v3854_v13, 2  ;;  %v1686_v13 = vshrl.u32 %v5507_v53, 16  ;;  %v1691_v63 = vrot.slane %v1689_v42, 4 }
 0x11a   : > { %6296 = vmatmul.mubr.bf16.gmra.mrb[8].mxu1 %v8275_v51  ;;  %v3860_v51 = vor.u32 %v3859_v45, %v3858_v5  ;;  %v3866_v50 = vrot.slane %v10377_v9, 1  ;;  %v1683_v49 = vor.u32 %v1682_v2, %v1679_v6  ;;  %v10380_v45 = vshrl.u32 %v10379_v1, 16  ;;  %v8533_v9 = vld [vmem:[%s7220_s10 + $0x88] sm:$0xf] }
 0x11b   : > { %6299 = vmatprep.mubr.bf16.mxu1 %v8291_v24  ;;  %6595 = vmatpush3.bf16.msra.mxu1 %v7143_v7  ;;  %v3857_v61 = vor.u32 %v3856_v35, %v3853_v39  ;;  %v8476_v24 = vld [vmem:[%s7220_s10 + $0x70] sm:$0xf]  ;;  %v8502_v39 = vld [vmem:[%s7220_s10 + $0x78] sm:$0xf]  ;;  %v8505_v35 = vld [vmem:[%s7220_s10 + $0x7c] sm:$0xf] }
 0x11c   : > { %6588 = vmatprep.subr.bf16.mxu1 %v7144_v60  ;;  %v5508_v11 = vcombine.low %v8476_v24, %v8479_v34  ;;  %v3868_v12 = vor.u32 %v3867_v15, %v3866_v50  ;;  %v3870_v7 = vrot.slane %v10380_v45, 1  ;;  %v1688_v47 = vrot.slane %v1686_v13, 3  ;;  %v8536_v50 = vld [vmem:[%s7220_s10 + $0x8c] sm:$0xf]  ;;  %v8539_v15 = vld [vmem:[%s7220_s10 + $0x90] sm:$0xf] }
 0x11d   : > { %v3861_v20 = vsel %vm3849_vm5, %v3857_v61, %v3860_v51  ;;  %v5509_v61 = vcombine.low %v8502_v39, %v8505_v35  ;;  %v5511_v45 = vcombine.low %v8533_v9, %v8536_v50  ;;  %v5551_v59 = vcombine.low %v8479_v34, %v8502_v39 }
 0x11e   : > { %v1695_v43 = vshrl.u32 %v5508_v11, 16  ;;  %v1698_v22 = vshll.u32 %v5508_v11, 16 }
 0x11f   : > { %6524 = vmatmul.mubr.bf16.gmra.mrb[28].mxu0 %v10372_v56  ;;  %6596 = vmatpush3.bf16.msra.mxu1 %v7144_v60  ;;  %v10381_v56 = vshll.u32 %v10379_v1, 16  ;;  %v1684_v60 = vsel %vm1066_vm3, %v1674_v55, %v1683_v49  ;;  %v1704_v6 = vshrl.u32 %v5509_v61, 16  ;;  %v1707_v2 = vshll.u32 %v5509_v61, 16  ;;  %v10385_v55 = vld [vmem:[#allocation19_spill] sm:$0xff] }
 0x120   : > { %6527 = vmatprep.mubr.bf16.mxu0 %v8287_v58  ;;  %v10373_v58 = vld [vmem:[#allocation15_spill] sm:$0xff]  ;;  %6589 = vmatprep.subr.bf16.mxu1 %v7145_v3  ;;  %v10386_v13 = vshrl.u32 %v10385_v55, 16 }
 0x121   : > { %v10374_v4 = vshrl.u32 %v10373_v58, 16  ;;  %v10375_v23 = vshll.u32 %v10373_v58, 16  ;;  %v3871_v21 = vrot.slane %v10381_v56, 2  ;;  %v1697_v58 = vrot.slane %v1695_v43, 3 }
 0x122   : > { %6300 = vmatmul.mubr.bf16.gmra.mrb[12].mxu1 %v8310_v17  ;;  %v8511_v17 = vld [vmem:[%s7220_s10 + $0x84] sm:$0xf]  ;;  %v3878_v42 = vrot.slane %v10386_v13, 1  ;;  %v10387_v43 = vshll.u32 %v10385_v55, 16  ;;  %v1709_v1 = vrot.slane %v1707_v2, 4 }
 0x123   : > { %v3862_v16 = vrot.slane %v10374_v4, 1  ;;  %v3863_v0 = vrot.slane %v10375_v23, 2  ;;  %6303 = vmatprep.mubr.bf16.mxu1 %v1666_v10  ;;  %6597 = vmatpush3.bf16.msra.mxu1 %v7145_v3  ;;  %v1700_v4 = vrot.slane %v1698_v22, 4  ;;  %v10382_v23 = vld [vmem:[#allocation18_spill] sm:$0xff]  ;;  %v3872_v53 = vor.u32 %v3871_v21, %v3870_v7  ;;  %v8542_v3 = vld [vmem:[%s7220_s10 + $0x94] sm:$0xf] }
 0x124   : > { %v10384_v54 = vshll.u32 %v10382_v23, 16  ;;  %v1692_v10 = vor.u32 %v1691_v63, %v1688_v47  ;;  %v3879_v22 = vrot.slane %v10387_v43, 2  ;;  %v10388_v47 = vld [vmem:[#allocation20_spill] sm:$0xff] }
 0x125   : > { %v3864_v29 = vor.u32 %v3863_v0, %v3862_v16  ;;  %v10383_v0 = vshrl.u32 %v10382_v23, 16  ;;  %v1701_v11 = vor.u32 %v1700_v4, %v1697_v58  ;;  %v10389_v63 = vshrl.u32 %v10388_v47, 16 }
 0x126   : > { %v3875_v44 = vrot.slane %v10384_v54, 2  ;;  %v3880_v58 = vor.u32 %v3879_v22, %v3878_v42  ;;  %v8561_v54 = vld [vmem:[%s7220_s10 + $0x98] sm:$0xf] }
 0x127   : > { %6528 = vmatmul.mubr.bf16.gmra.mrb[32].mxu0 %v8296_v30  ;;  %v7146_v30 = vld [vmem:[%s10118_s1 + $0x138] sm:$0xff]   ;;  %v3865_v5 = vsel %vm3849_vm5, %v3860_v51, %v3864_v29  ;;  %v5510_v51 = vcombine.low %v8508_v27, %v8511_v17  ;;  %v3869_v16 = vsel %vm3849_vm5, %v3864_v29, %v3868_v12  ;;  %v3874_v38 = vrot.slane %v10383_v0, 1 }
 0x128   : > { %6547 = vmatprep.mubr.bf16.mxu0 %v3861_v20  ;;  %6590 = vmatprep.subr.bf16.mxu1 %v7146_v30  ;;  %v3873_v29 = vsel %vm3849_vm5, %v3868_v12, %v3872_v53  ;;  %v1702_v7 = vsel %vm1066_vm3, %v1692_v10, %v1701_v11  ;;  %v5512_v12 = vcombine.low %v8539_v15, %v8542_v3  ;;  %v3882_v61 = vrot.slane %v10389_v63, 1 }
 0x129   : > { %6598 = vmatpush3.bf16.msra.mxu1 %v7146_v30  ;;  %v1713_v20 = vshrl.u32 %v5510_v51, 16  ;;  %v1716_v37 = vshll.u32 %v5510_v51, 16  ;;  %v3876_v52 = vor.u32 %v3875_v44, %v3874_v38  ;;  %v1693_v30 = vsel %vm1066_vm3, %v1683_v49, %v1692_v10  ;;  %v10391_v10 = vld [vmem:[#allocation22_spill] sm:$0xff] }
 0x12a   : > { %6304 = vmatmul.mubr.bf16.gmra.mrb[16].mxu1 %v1675_v25  ;;  %v10390_v49 = vshll.u32 %v10388_v47, 16  ;;  %v1722_v51 = vshrl.u32 %v5511_v45, 16  ;;  %v1731_v0 = vshrl.u32 %v5512_v12, 16  ;;  %v1734_v38 = vshll.u32 %v5512_v12, 16 }
 0x12b   : > { %6307 = vmatprep.mubr.bf16.mxu1 %v1684_v60  ;;  %v1715_v56 = vrot.slane %v1713_v20, 3  ;;  %v1718_v21 = vrot.slane %v1716_v37, 4  ;;  %v3877_v25 = vsel %vm3849_vm5, %v3872_v53, %v3876_v52  ;;  %v3881_v53 = vsel %vm3849_vm5, %v3876_v52, %v3880_v58  ;;  %v10394_v52 = vld [vmem:[#allocation21_spill] sm:$0xff] }
 0x12c   : > { %v3883_v60 = vrot.slane %v10390_v49, 2  ;;  %v1724_v37 = vrot.slane %v1722_v51, 3  ;;  %v5513_v55 = vcombine.low %v8561_v54, %v8561_v54  ;;  %v10393_v42 = vshll.u32 %v10391_v10, 16  ;;  %v10397_v51 = vld [vmem:[#allocation24_spill] sm:$0xff] }
 0x12d   : > { %v1719_v23 = vor.u32 %v1718_v21, %v1715_v56  ;;  %v1733_v22 = vrot.slane %v1731_v0, 3 }
 0x12e   : > { %v3884_v44 = vor.u32 %v3883_v60, %v3882_v61  ;;  %v3887_v43 = vrot.slane %v10393_v42, 2  ;;  %v1740_v21 = vshrl.u32 %v5513_v55, 16  ;;  %v1743_v12 = vshll.u32 %v5513_v55, 16  ;;  %v7147_v42 = vld [vmem:[%s7220_s10 + $0x4c] sm:$0xf]  ;;  %s6888_s10 = smul.u32 144, %s10720_s13 }
 0x12f   : > { %6548 = vmatmul.mubr.bf16.vlgmr.msra.gmra.mrb[0].mxu0 %v3865_v5  ;;  %v1706_v5 = vrot.slane %v1704_v6, 3  ;;  %v10392_v6 = vshrl.u32 %v10391_v10, 16 }
 0x130   : > { %6551 = vmatprep.mubr.bf16.mxu0 %v3869_v16  ;;  %v1725_v16 = vshll.u32 %v5511_v45, 16  ;;  %v1742_v49 = vrot.slane %v1740_v21, 3  ;;  %v1745_v60 = vrot.slane %v1743_v12, 4  ;;  %v10407_v21 = vshll.u32 %v8114_v62, 16  ;;  %s9412_s8 = scalar_lea.vmem %s10119_s2, %s6888_s10 }
 0x131   : > { %v1710_v4 = vor.u32 %v1709_v1, %v1706_v5  ;;  %v3886_v2 = vrot.slane %v10392_v6, 1  ;;  %v3885_v5 = vsel %vm3849_vm5, %v3880_v58, %v3884_v44  ;;  %v10395_v1 = vshrl.u32 %v10394_v52, 16  ;;  %v10400_v6 = vld [vmem:[#allocation26_spill] sm:$0xff] }
 0x132   : > { %6308 = vmatmul.mubr.bf16.gmra.mrb[20].mxu1 %v1693_v30  ;;  %v1736_v30 = vrot.slane %v1734_v38, 4  ;;  %v10399_v38 = vshll.u32 %v10397_v51, 16  ;;  %v3907_v12 = vrot.slane %v10407_v21, 2 }
 0x133   : > { %6311 = vmatprep.mubr.bf16.mxu1 %v1702_v7  ;;  %v1711_v20 = vsel %vm1066_vm3, %v1701_v11, %v1710_v4  ;;  %v1720_v13 = vsel %vm1066_vm3, %v1710_v4, %v1719_v23  ;;  %v3890_v45 = vrot.slane %v10395_v1, 1  ;;  %v10396_v7 = vshll.u32 %v10394_v52, 16 }
 0x134   : > { %v1737_v47 = vor.u32 %v1736_v30, %v1733_v22  ;;  %v10403_v30 = vld [vmem:[#allocation27_spill] sm:$0xff] }
 0x135   : > { %v3891_v11 = vrot.slane %v10396_v7, 2  ;;  %v10405_v1 = vshll.u32 %v10403_v30, 16 }
 0x137   : > { %6552 = vmatmul.mubr.bf16.gmra.mrb[4].mxu0 %v3873_v29  ;;  %v1727_v29 = vrot.slane %v1725_v16, 4  ;;  %v3892_v63 = vor.u32 %v3891_v11, %v3890_v45  ;;  %v10398_v16 = vshrl.u32 %v10397_v51, 16  ;;  %v3903_v45 = vrot.slane %v10405_v1, 2 }
 0x138   : > { %6555 = vmatprep.mubr.bf16.mxu0 %v3877_v25  ;;  %v3888_v25 = vor.u32 %v3887_v43, %v3886_v2  ;;  %v10401_v2 = vshrl.u32 %v10400_v6, 16  ;;  %v5546_v43 = vcombine.low %v7147_v42, %v8420_v14  ;;  %v10406_v11 = vshrl.u32 %v8114_v62, 16 }
 0x139   : > { %v1728_v56 = vor.u32 %v1727_v29, %v1724_v37  ;;  %v3894_v0 = vrot.slane %v10398_v16, 1  ;;  %v10408_v62 = vshll.u32 %v8181_v48, 16  ;;  %v3915_v51 = vrot.slane %v3183_v33, 2 }
 0x13a   : > { %6312 = vmatmul.mubr.bf16.gmra.mrb[24].mxu1 %v1711_v20  ;;  %v3889_v58 = vsel %vm3849_vm5, %v3884_v44, %v3888_v25  ;;  %v3893_v10 = vsel %vm3849_vm5, %v3888_v25, %v3892_v63  ;;  %v3898_v20 = vrot.slane %v10401_v2, 1  ;;  %v1746_v44 = vor.u32 %v1745_v60, %v1742_v49 }
 0x13b   : > { %6315 = vmatprep.mubr.bf16.mxu1 %v1720_v13  ;;  %v1729_v61 = vsel %vm1066_vm3, %v1719_v23, %v1728_v56  ;;  %v1738_v4 = vsel %vm1066_vm3, %v1728_v56, %v1737_v47  ;;  %v10402_v23 = vshll.u32 %v10400_v6, 16  ;;  %v3906_v56 = vrot.slane %v10406_v11, 1 }
 0x13c   : > { %v1747_v13 = vsel %vm1066_vm3, %v1737_v47, %v1746_v44  ;;  %v5547_v47 = vcombine.low %v8423_v36, %v8435_v28  ;;  %v3910_v49 = vrot.slane %v3179_v31, 1  ;;  %v3911_v60 = vrot.slane %v10408_v62, 2 }
 0x13d   : > { %v3899_v37 = vrot.slane %v10402_v23, 2  ;;  %v3908_v25 = vor.u32 %v3907_v12, %v3906_v56  ;;  %v5549_v31 = vcombine.low %v8449_v8, %v8467_v40  ;;  %v5550_v48 = vcombine.low %v8470_v26, %v8476_v24 }
 0x13e   : > { %v3912_v36 = vor.u32 %v3911_v60, %v3910_v49  ;;  %v5552_v33 = vcombine.low %v8505_v35, %v8508_v27  ;;  %v5553_v8 = vcombine.low %v8511_v17, %v8533_v9  ;;  %v5554_v40 = vcombine.low %v8536_v50, %v8539_v15 }
 0x13f   : > { %6556 = vmatmul.mubr.bf16.gmra.mrb[8].mxu0 %v3881_v53  ;;  %v3895_v53 = vrot.slane %v10399_v38, 2  ;;  %v3900_v55 = vor.u32 %v3899_v37, %v3898_v20  ;;  %v5555_v26 = vcombine.low %v8542_v3, %v8561_v54 }
 0x140   : > { %6559 = vmatprep.mubr.bf16.mxu0 %v3885_v5  ;;  %v10404_v5 = vshrl.u32 %v10403_v30, 16 }
 0x141   : > { %v3896_v29 = vor.u32 %v3895_v53, %v3894_v0 }
 0x142   : > { %6316 = vmatmul.mubr.bf16.gmra.mrb[28].mxu1 %v1729_v61  ;;  %v3902_v52 = vrot.slane %v10404_v5, 1 }
 0x143   : > { %6319 = vmatprep.mubr.bf16.mxu1 %v1738_v4  ;;  %v3897_v22 = vsel %vm3849_vm5, %v3892_v63, %v3896_v29  ;;  %v3901_v7 = vsel %vm3849_vm5, %v3896_v29, %v3900_v55  ;;  %v5548_v63 = vcombine.low %v8438_v18, %v8446_v41  ;;  %v3914_v4 = vrot.slane %v3187_v19, 1 }
 0x144   : > { %v3904_v14 = vor.u32 %v3903_v45, %v3902_v52  ;;  %v3913_v18 = vsel %vm3849_vm5, %v3908_v25, %v3912_v36 }
 0x145   : > { %v3916_v28 = vor.u32 %v3915_v51, %v3914_v4 }
 0x146   : > { %v3905_v61 = vsel %vm3849_vm5, %v3900_v55, %v3904_v14 }
 0x147   : > { %6560 = vmatmul.mubr.bf16.gmra.mrb[12].mxu0 %v3889_v58  ;;  %v3909_v58 = vsel %vm3849_vm5, %v3904_v14, %v3908_v25  ;;  %v3917_v41 = vsel %vm3849_vm5, %v3912_v36, %v3916_v28  ;;  %v3921_v19 = vsel %vm3849_vm5, %v3916_v28, %v8369_v32  ;;  %v4214_v32 = vlaneseq }
 0x148   : > { %6563 = vmatprep.mubr.bf16.mxu0 %v3893_v10 }
 0x149   : > { %v8636_v24 = vshrl.u32 %v4214_v32, 7 }
 0x14a   : > { %6320 = vmatmul.mubr.bf16.gmra.mrb[32].mxu1 %v1747_v13 }
 0x14b   : > { %6355 = vmatprep.mubr.bf16.mxu1 %v5546_v43  ;;  %v4217_v34 = vadd.s32 16, %v8636_v24  ;;  %v4216_v27 = vadd.s32 8, %v8636_v24  ;;  %v4221_v15 = vadd.s32 48, %v8636_v24  ;;  %v4219_v16 = vadd.s32 32, %v8636_v24 }
 0x14c   : > { %v4222_v0 = vadd.s32 56, %v8636_v24  ;;  %v4220_v38 = vadd.s32 40, %v8636_v24  ;;  %v8669_v44 = vadd.s32 80, %v8636_v24  ;;  %v8705_v51 = vadd.s32 88, %v8636_v24 }
 0x14d   : > { %v8640_v39 = vmul.u32.u64.low 3817748708, %v4217_v34  ;;  %v8641_v35 = vmul.u32.u64.high 3817748708, %v4217_v34, %v8640_v39  ;;  %v8652_v3 = vmul.u32.u64.low 3817748708, %v4216_v27  ;;  %v8653_v54 = vmul.u32.u64.high 3817748708, %v4216_v27, %v8652_v3 }
 0x14e   : > { %v8658_v53 = vmul.u32.u64.low 3817748708, %v4221_v15  ;;  %v8659_v10 = vmul.u32.u64.high 3817748708, %v4221_v15, %v8658_v53  ;;  %v8662_v2 = vmul.u32.u64.low 3817748708, %v4219_v16  ;;  %v8663_v20 = vmul.u32.u64.high 3817748708, %v4219_v16, %v8662_v2 }
 0x14f   : > { %6564 = vmatmul.mubr.bf16.gmra.mrb[16].mxu0 %v3897_v22  ;;  %v4279_v6 = vshrl.u32 %v8641_v35, 4  ;;  %v8665_v23 = vmul.u32.u64.low 3817748708, %v4222_v0  ;;  %v8666_v37 = vmul.u32.u64.high 3817748708, %v4222_v0, %v8665_v23  ;;  %v4268_v22 = vshrl.u32 %v8653_v54, 4 }
 0x150   : > { %6567 = vmatprep.mubr.bf16.mxu0 %v3901_v7  ;;  %v8672_v55 = vmul.u32.u64.low 3817748708, %v4220_v38  ;;  %v8673_v13 = vmul.u32.u64.high 3817748708, %v4220_v38, %v8672_v55  ;;  %v8678_v30 = vmul.u32.u64.low 3817748708, %v8669_v44  ;;  %v8679_v5 = vmul.u32.u64.high 3817748708, %v8669_v44, %v8678_v30 }
 0x151   : > { %v4280_v43 = vmul.u32 18, %v4279_v6  ;;  %v4323_v45 = vshrl.u32 %v8659_v10, 4  ;;  %v8683_v7 = vadd.s32 64, %v8636_v24  ;;  %v4269_v56 = vmul.u32 18, %v4268_v22 }
 0x152   : > { %6356 = vmatmul.mubr.bf16.vlgmr.msra.gmra.mrb[16].mxu1 %v5547_v47  ;;  %v4301_v21 = vshrl.u32 %v8663_v20, 4  ;;  %v4334_v12 = vshrl.u32 %v8666_v37, 4  ;;  %v4312_v25 = vshrl.u32 %v8673_v13, 4  ;;  %v4367_v4 = vshrl.u32 %v8679_v5, 4 }
 0x153   : > { %6359 = vmatprep.mubr.bf16.mxu1 %v5548_v63  ;;  %v8685_v11 = vsub.s32 %v4217_v34, %v4280_v43  ;;  %v4324_v63 = vmul.u32 18, %v4323_v45  ;;  %v8700_v62 = vsub.s32 %v4216_v27, %v4269_v56  ;;  %v8741_v34 = vadd.s32 112, %v8636_v24 }
 0x154   : > { %v4302_v60 = vmul.u32 18, %v4301_v21  ;;  %v4313_v28 = vmul.u32 18, %v4312_v25  ;;  %v8755_v35 = vadd.s32 96, %v8636_v24  ;;  %v8857_v22 = vadd.s32 104, %v8636_v24 }
 0x155   : > { %vm4649_vm6 = vcmp.ne.s32.totalorder %v8685_v11, 0  ;;  %vm4685_vm7 = vcmp.lt.s32.totalorder %v8685_v11, 0  ;;  %v8708_v36 = vadd.s32 18, %v8685_v11  ;;  %vm4648_vm12 = vcmp.ne.s32.totalorder %v8700_v62, 0 }
 0x156   : > { %vm4684_vm13 = vcmp.lt.s32.totalorder %v8700_v62, 0  ;;  %v8738_v32 = vsub.s32 %v4220_v38, %v4313_v28  ;;  %vm8747_vm14 = vmand %vm4685_vm7, %vm4649_vm6  ;;  %v10422_v38 = vmov 0  ;;  %v8911_v28 = vadd.s32 128, %v8636_v24 }
 0x157   : > { %6568 = vmatmul.mubr.bf16.gmra.mrb[20].mxu0 %v3905_v61  ;;  %v8696_v61 = vmul.u32.u64.low 3817748708, %v8683_v7  ;;  %v8697_v49 = vmul.u32.u64.high 3817748708, %v8683_v7, %v8696_v61  ;;  %vm8793_vm6 = vmand %vm4684_vm13, %vm4648_vm12  ;;  %v8813_v10 = vmul.u32.u64.low 3817748708, %v8755_v35  ;;  %v8814_v6 = vmul.u32.u64.high 3817748708, %v8755_v35, %v8813_v10 }
 0x158   : > { %6571 = vmatprep.mubr.bf16.mxu0 %v3909_v58  ;;  %v4335_v58 = vmul.u32 18, %v4334_v12  ;;  %10411 = vst [vmem:[#allocation9_spill] sm:$0xff] %v8738_v32  ;;  %v8841_v55 = vadd.s32 18, %v8738_v32  ;;  %v8894_v12 = vadd.s32 144, %v8636_v24  ;;  %v10517_v54 = vsel %vm8747_vm14, %v8708_v36, %v8685_v11 }
 0x159   : > { %v4345_v39 = vshrl.u32 %v8697_v49, 4  ;;  %v10523_v11 = vmov 0 }
 0x15a   : > { %6360 = vmatmul.mubr.bf16.gmra.mrb[20].mxu1 %v5549_v31 }
 0x15b   : > { %6363 = vmatprep.mubr.bf16.mxu1 %v5550_v48  ;;  %v8717_v48 = vsub.s32 %v4221_v15, %v4324_v63  ;;  %v4346_v53 = vmul.u32 18, %v4345_v39 }
 0x15d   : > { %10409 = vst [vmem:[#allocation5_spill] sm:$0xff] %v8717_v48  ;;  %vm4653_vm15 = vcmp.ne.s32.totalorder %v8717_v48, 0  ;;  %vm4689_vm0 = vcmp.lt.s32.totalorder %v8717_v48, 0 }
 0x15f   : > { %6572 = vmatmul.mubr.bf16.gmra.mrb[24].mxu0 %v3913_v18 }
 0x160   : > { %6575 = vmatprep.mubr.bf16.mxu0 %v3917_v41  ;;  %v8723_v41 = vsub.s32 %v4219_v16, %v4302_v60 }
 0x162   : > { %6364 = vmatmul.mubr.bf16.gmra.mrb[24].mxu1 %v5551_v59  ;;  %v8726_v59 = vadd.s32 72, %v8636_v24  ;;  %vm4651_vm2 = vcmp.ne.s32.totalorder %v8723_v41, 0  ;;  %vm4687_vm3 = vcmp.lt.s32.totalorder %v8723_v41, 0  ;;  %v8825_v20 = vadd.s32 18, %v8723_v41 }
 0x163   : > { %6367 = vmatprep.mubr.bf16.mxu1 %v5552_v33  ;;  %v8728_v33 = vsub.s32 %v4222_v0, %v4335_v58  ;;  %v8800_v16 = vmul.u32.u64.low 3817748708, %v8741_v34  ;;  %v8801_v0 = vmul.u32.u64.high 3817748708, %v8741_v34, %v8800_v16 }
 0x164   : > { %v8786_v15 = vmul.u32.u64.low 3817748708, %v8726_v59  ;;  %v8787_v3 = vmul.u32.u64.high 3817748708, %v8726_v59, %v8786_v15 }
 0x165   : > { %10410 = vst [vmem:[#allocation8_spill] sm:$0xff] %v8728_v33  ;;  %vm4654_vm5 = vcmp.ne.s32.totalorder %v8728_v33, 0  ;;  %vm4690_vm7 = vcmp.lt.s32.totalorder %v8728_v33, 0  ;;  %v8828_v23 = vadd.s32 18, %v8728_v33  ;;  %v4411_v60 = vshrl.u32 %v8801_v0, 4 }
 0x166   : > { %vm8836_vm12 = vmand %vm4690_vm7, %vm4654_vm5  ;;  %v4356_v49 = vshrl.u32 %v8787_v3, 4  ;;  %v8926_v3 = vmul.u32.u64.low 3817748708, %v8894_v12  ;;  %v8927_v16 = vmul.u32.u64.high 3817748708, %v8894_v12, %v8926_v3  ;;  %v8930_v0 = vadd.s32 136, %v8636_v24 }
 0x167   : > { %6576 = vmatmul.mubr.bf16.gmra.mrb[28].mxu0 %v3921_v19  ;;  %v4368_v19 = vmul.u32 18, %v4367_v4  ;;  %10427 = vst [vmem:[#allocation25_spill] sm:$0xff] %v8828_v23  ;;  %v8907_v58 = vmul.u32.u64.low 3817748708, %v8857_v22  ;;  %v8908_v4 = vmul.u32.u64.high 3817748708, %v8857_v22, %v8907_v58  ;;  %v10468_v23 = vmov 0 }
 0x168   : > { %6579 = vmatprep.mubr.bf16.mxu0 %v8377_v57  ;;  %v4218_v57 = vadd.s32 24, %v8636_v24  ;;  %v8944_v58 = vmul.u32.u64.low 3817748708, %v8911_v28  ;;  %v8945_v3 = vmul.u32.u64.high 3817748708, %v8911_v28, %v8944_v58 }
 0x169   : > { %v8964_v58 = vadd.s32 184, %v8636_v24 }
 0x16a   : > { %6368 = vmatmul.mubr.bf16.gmra.mrb[28].mxu1 %v5553_v8  ;;  %v8648_v9 = vmul.u32.u64.low 3817748708, %v4218_v57  ;;  %v8649_v50 = vmul.u32.u64.high 3817748708, %v4218_v57, %v8648_v9 }
 0x16b   : > { %6371 = vmatprep.mubr.bf16.mxu1 %v5554_v40  ;;  %v8731_v8 = vmul.u32.u64.low 3817748708, %v8705_v51  ;;  %v8732_v40 = vmul.u32.u64.high 3817748708, %v8705_v51, %v8731_v8 }
 0x16c   : > { %v4290_v42 = vshrl.u32 %v8649_v50, 4  ;;  %v8783_v50 = vsub.s32 %v8669_v44, %v4368_v19  ;;  %v4389_v8 = vshrl.u32 %v8814_v6, 4  ;;  %v8948_v19 = vadd.s32 176, %v8636_v24 }
 0x16d   : > { %v4378_v13 = vshrl.u32 %v8732_v40, 4  ;;  %v8920_v40 = vadd.s32 152, %v8636_v24 }
 0x16e   : > { %v4291_v1 = vmul.u32 18, %v4290_v42  ;;  %10419 = vst [vmem:[#allocation2_spill] sm:$0xff] %v8783_v50  ;;  %vm4657_vm13 = vcmp.ne.s32.totalorder %v8783_v50, 0  ;;  %v4390_v56 = vmul.u32 18, %v4389_v8 }
 0x16f   : > { %6580 = vmatmul.mubr.bf16.gmra.mrb[32].mxu0 %v8386_v46  ;;  %v8645_v17 = vmul.u32.u64.low 3817748708, %v8636_v24  ;;  %v8646_v46 = vmul.u32.u64.high 3817748708, %v8636_v24, %v8645_v17  ;;  %v4379_v61 = vmul.u32 18, %v4378_v13 }
 0x170   : > { %v8693_v47 = vsub.s32 %v4218_v57, %v4291_v1  ;;  %v8766_v17 = vadd.s32 18, %v8717_v48  ;;  %v8871_v1 = vsub.s32 %v8683_v7, %v4346_v53  ;;  %v10435_v7 = vmov 0 }
 0x171   : > { %v4257_v29 = vshrl.u32 %v8646_v46, 4  ;;  %v8771_v46 = vadd.s32 120, %v8636_v24  ;;  %v8939_v6 = vsub.s32 %v8705_v51, %v4379_v61  ;;  %v8957_v51 = vadd.s32 160, %v8636_v24 }
 0x172   : > { %6372 = vmatmul.mubr.bf16.gmra.mrb[32].mxu1 %v5555_v26  ;;  %vm4650_vm10 = vcmp.ne.s32.totalorder %v8693_v47, 0  ;;  %vm4686_vm11 = vcmp.lt.s32.totalorder %v8693_v47, 0  ;;  %v8720_v18 = vadd.s32 18, %v8693_v47  ;;  %v8736_v26 = vadd.s32 18, %v8700_v62  ;;  %10416 = vst [vmem:[#allocation10_spill] sm:$0xff] %v8766_v17  ;;  %10434 = vst [vmem:[#allocation12_spill] sm:$0xff] %v8871_v1 }
 0x173   : > { %v4258_v52 = vmul.u32 18, %v4257_v29  ;;  %vm8777_vm4 = vmand %vm4686_vm11, %vm4650_vm10  ;;  %vm4688_vm10 = vcmp.lt.s32.totalorder %v8738_v32, 0  ;;  %v8831_v37 = vmul.u32.u64.low 3817748708, %v8771_v46  ;;  %v8832_v44 = vmul.u32.u64.high 3817748708, %v8771_v46, %v8831_v37 }
 0x174   : > { %vm8820_vm11 = vmand %vm4687_vm3, %vm4651_vm2  ;;  %v10428_v29 = vmov 0  ;;  %vm4655_vm3 = vcmp.ne.s32.totalorder %v8871_v1, 0  ;;  %vm4691_vm5 = vcmp.lt.s32.totalorder %v8871_v1, 0  ;;  %v8936_v10 = vadd.s32 18, %v8871_v1 }
 0x175   : > { %v8690_v14 = vsub.s32 %v8636_v24, %v4258_v52  ;;  %v10429_v29 = vsel %vm8836_vm12, 4294967295, %v10428_v29  ;;  %v8868_v52 = vadd.s32 18, %v8783_v50  ;;  %v4422_v15 = vshrl.u32 %v8832_v44, 4 }
 0x176   : > { %10430 = vst [vmem:[#allocation7_spill] sm:$0xff] %v10429_v29  ;;  %10438 = vst [vmem:[#allocation23_spill] sm:$0xff] %v8936_v10  ;;  %v4357_v37 = vmul.u32 18, %v4356_v49  ;;  %v4412_v44 = vmul.u32 18, %v4411_v60  ;;  %vm4658_vm7 = vcmp.ne.s32.totalorder %v8939_v6, 0  ;;  %v8983_v45 = vadd.s32 18, %v8939_v6 }
 0x177   : > { %vm4647_vm8 = vcmp.ne.s32.totalorder %v8690_v14, 0  ;;  %vm4683_vm9 = vcmp.lt.s32.totalorder %v8690_v14, 0  ;;  %v8713_v31 = vadd.s32 18, %v8690_v14  ;;  %10433 = vst [vmem:[#allocation11_spill] sm:$0xff] %v8868_v52  ;;  %v4423_v61 = vmul.u32 18, %v4422_v15 }
 0x178   : > { %vm8761_vm1 = vmand %vm4683_vm9, %vm4647_vm8  ;;  %vm4652_vm8 = vcmp.ne.s32.totalorder %v8738_v32, 0  ;;  %v8953_v63 = vmul.u32.u64.low 3817748708, %v8920_v40  ;;  %v8954_v21 = vmul.u32.u64.high 3817748708, %v8920_v40, %v8953_v63  ;;  %v8969_v8 = vsub.s32 %v8726_v59, %v4357_v37 }
 0x179   : > { %vm8807_vm9 = vmand %vm4689_vm0, %vm4653_vm15  ;;  %vm4693_vm15 = vcmp.lt.s32.totalorder %v8783_v50, 0  ;;  %v8960_v49 = vmul.u32.u64.low 3817748708, %v8930_v0  ;;  %v8961_v60 = vmul.u32.u64.high 3817748708, %v8930_v0, %v8960_v49  ;;  %v8972_v63 = vadd.s32 168, %v8636_v24 }
 0x17a   : > { %v10423_v38 = vsel %vm8807_vm9, 4294967295, %v10422_v38  ;;  %vm8852_vm0 = vmand %vm4688_vm10, %vm4652_vm8  ;;  %v8975_v5 = vsub.s32 %v8741_v34, %v4412_v44  ;;  %v4400_v15 = vshrl.u32 %v8908_v4, 4  ;;  %v8986_v30 = vsub.s32 %v8755_v35, %v4390_v56 }
 0x17b   : > { %10424 = vst [vmem:[#allocation6_spill] sm:$0xff] %v10423_v38  ;;  %vm8889_vm2 = vmand %vm4693_vm15, %vm4657_vm13  ;;  %v8979_v49 = vmul.u32.u64.low 3817748708, %v8948_v19  ;;  %v8980_v42 = vmul.u32.u64.high 3817748708, %v8948_v19, %v8979_v49  ;;  %v8989_v59 = vmul.u32.u64.low 3817748708, %v8957_v51  ;;  %v8990_v37 = vmul.u32.u64.high 3817748708, %v8957_v51, %v8989_v59 }
 0x17c   : > { %v10436_v7 = vsel %vm8889_vm2, 4294967295, %v10435_v7  ;;  %10439 = vst [vmem:[#allocation3_spill] sm:$0xff] %v8975_v5  ;;  %v8995_v34 = vsub.s32 %v8771_v46, %v4423_v61  ;;  %v4455_v4 = vshrl.u32 %v8927_v16, 4  ;;  %vm9016_vm15 = vmand %vm4691_vm5, %vm4655_vm3  ;;  %v10444_v46 = vmov 0 }
 0x17d   : > { %10437 = vst [vmem:[#allocation13_spill] sm:$0xff] %v10436_v7  ;;  %v8999_v44 = vmul.u32.u64.low 3817748708, %v8964_v58  ;;  %v9000_v49 = vmul.u32.u64.high 3817748708, %v8964_v58, %v8999_v44  ;;  %v9007_v35 = vmul.u32.u64.low 3817748708, %v8972_v63  ;;  %v9008_v56 = vmul.u32.u64.high 3817748708, %v8972_v63, %v9007_v35 }
 0x17e   : > { %10441 = vst [vmem:[#allocation14_spill] sm:$0xff] %v8995_v34  ;;  %v10445_v46 = vsel %vm9016_vm15, 4294967295, %v10444_v46  ;;  %v4401_v16 = vmul.u32 18, %v4400_v15  ;;  %v4433_v61 = vshrl.u32 %v8945_v3, 4  ;;  %vm10448_vm13 = vcmp.lt.s32.totalorder %v8939_v6, 0 }
 0x17f   : > { %10446 = vst [vmem:[#allocation16_spill] sm:$0xff] %v10445_v46  ;;  %vm9029_vm2 = vmand %vm10448_vm13, %vm4658_vm7  ;;  %v10449_v35 = vmov 0  ;;  %vm4659_vm3 = vcmp.ne.s32.totalorder %v8986_v30, 0  ;;  %v4466_v7 = vshrl.u32 %v8954_v21, 4  ;;  %v9037_v15 = vadd.s32 208, %v8636_v24 }
 0x180   : > { %v10450_v35 = vsel %vm9029_vm2, 4294967295, %v10449_v35  ;;  %vm10451_vm10 = vcmp.ne.s32.totalorder %v8969_v8, 0  ;;  %vm10452_vm8 = vcmp.lt.s32.totalorder %v8969_v8, 0  ;;  %v10453_v3 = vmov 0 }
 0x181   : > { %vm9043_vm12 = vmand %vm10452_vm8, %vm10451_vm10  ;;  %vm10455_vm8 = vcmp.ne.s32.totalorder %v8975_v5, 0  ;;  %vm10456_vm10 = vcmp.lt.s32.totalorder %v8975_v5, 0  ;;  %vm10461_vm13 = vcmp.lt.s32.totalorder %v8986_v30, 0  ;;  %v10462_v21 = vmov 0 }
 0x182   : > { %v10454_v3 = vsel %vm9043_vm12, 4294967295, %v10453_v3  ;;  %vm9061_vm5 = vmand %vm10456_vm10, %vm10455_vm8  ;;  %v9080_v1 = vadd.s32 18, %v8995_v34  ;;  %v9083_v10 = vsub.s32 %v8857_v22, %v4401_v16  ;;  %v4434_v46 = vmul.u32 18, %v4433_v61 }
 0x183   : > { %vm9075_vm7 = vmand %vm10461_vm13, %vm4659_vm3  ;;  %v4499_v33 = vshrl.u32 %v8980_v42, 4  ;;  %vm10466_vm8 = vcmp.ne.s32.totalorder %v8995_v34, 0  ;;  %vm10467_vm10 = vcmp.lt.s32.totalorder %v8995_v34, 0  ;;  %v4467_v29 = vmul.u32 18, %v4466_v7 }
 0x184   : > { %v10463_v21 = vsel %vm9075_vm7, 4294967295, %v10462_v21  ;;  %10464 = vst [vmem:[#allocation20_spill] sm:$0xff] %v9080_v1  ;;  %10465 = vst [vmem:[#allocation22_spill] sm:$0xff] %v9083_v10  ;;  %v4477_v48 = vshrl.u32 %v8990_v37, 4  ;;  %v9096_v17 = vmul.u32.u64.low 3817748708, %v9037_v15  ;;  %v9097_v38 = vmul.u32.u64.high 3817748708, %v9037_v15, %v9096_v17 }
 0x185   : > { %vm9090_vm15 = vmand %vm10467_vm10, %vm10466_vm8  ;;  %v4510_v32 = vshrl.u32 %v9000_v49, 4  ;;  %v4488_v42 = vshrl.u32 %v9008_v56, 4  ;;  %v9134_v17 = vsub.s32 %v8911_v28, %v4434_v46  ;;  %v4500_v37 = vmul.u32 18, %v4499_v33 }
 0x186   : > { %v10469_v23 = vsel %vm9090_vm15, 4294967295, %v10468_v23  ;;  %v9148_v28 = vadd.s32 216, %v8636_v24  ;;  %v9155_v1 = vadd.s32 200, %v8636_v24  ;;  %vm10478_vm13 = vcmp.lt.s32.totalorder %v9083_v10, 0 }
 0x187   : > { %10470 = vst [vmem:[#allocation21_spill] sm:$0xff] %v10469_v23  ;;  %10472 = vst [vmem:[#allocation26_spill] sm:$0xff] %v9134_v17  ;;  %v4489_v33 = vmul.u32 18, %v4488_v42  ;;  %v10484_v42 = vmov 0  ;;  %v10503_v23 = vmov 0 }
 0x1dd   : > { %v8922_v39 = vpop.f32.mrb[0].mxu1 }
 0x1de   : > { %v8932_v53 = vpop.f32.mrb[1].mxu1 }
 0x1df   : > { %v8941_v13 = vpop.f32.mrb[2].mxu1 }
 0x1e0   : > { %v8950_v25 = vpop.f32.mrb[3].mxu1 }
 0x1e5   : > { %v8992_v50 = vpop.f32.mrb[4].mxu1 }
 0x1e6   : > { %10440 = vst [vmem:[#allocation28_spill] sm:$0xff] %v8992_v50  ;;  %v9002_v52 = vpop.f32.mrb[5].mxu1  ;;  %v10457_v50 = vmov 0 }
 0x1e7   : > { %10442 = vst [vmem:[#allocation4_spill] sm:$0xff] %v9002_v52  ;;  %v9010_v59 = vpop.f32.mrb[6].mxu1  ;;  %v9055_v52 = vadd.s32 18, %v8969_v8  ;;  %v10458_v50 = vsel %vm9061_vm5, 4294967295, %v10457_v50  ;;  %vm10477_vm5 = vcmp.ne.s32.totalorder %v9083_v10, 0 }
 0x1e8   : > { %10443 = vst [vmem:[#allocation15_spill] sm:$0xff] %v9010_v59  ;;  %v9023_v44 = vpop.f32.mrb[7].mxu1  ;;  %v4444_v59 = vshrl.u32 %v8961_v60, 4  ;;  %10459 = vst [vmem:[#allocation18_spill] sm:$0xff] %v10458_v50  ;;  %v9069_v60 = vadd.s32 18, %v8986_v30  ;;  %v10506_v50 = vmov 0 }
 0x1e9   : > { %10447 = vst [vmem:[#allocation17_spill] sm:$0xff] %v9023_v44  ;;  %v4456_v44 = vmul.u32 18, %v4455_v4  ;;  %v9066_v4 = vadd.s32 18, %v8975_v5  ;;  %v9141_v5 = vsub.s32 %v8920_v40, %v4467_v29  ;;  %v4543_v29 = vshrl.u32 %v9097_v38, 4  ;;  %vm9175_vm7 = vmand %vm10478_vm13, %vm10477_vm5 }
 0x1ea   : > { %v4445_v61 = vmul.u32 18, %v4444_v59  ;;  %vm10492_vm13 = vcmp.lt.s32.totalorder %v9134_v17, 0  ;;  %vm9289_vm5 = vcmp.lt.s32.totalorder %v10517_v54, 16  ;;  %v10531_v54 = vsel %vm8777_vm4, %v8720_v18, %v8693_v47 }
 0x1eb   : > { %10460 = vst [vmem:[#allocation19_spill] sm:$0xff] %v9066_v4  ;;  %v9106_v16 = vsub.s32 %v8894_v12, %v4456_v44  ;;  %v9121_v12 = vadd.s32 192, %v8636_v24  ;;  %v4478_v4 = vmul.u32 18, %v4477_v48  ;;  %v4511_v44 = vmul.u32 18, %v4510_v32 }
 0x1ec   : > { %v9145_v49 = vsub.s32 %v8930_v0, %v4445_v61  ;;  %v9161_v48 = vsub.s32 %v8948_v19, %v4500_v37  ;;  %v9197_v61 = vsub.s32 %v8972_v63, %v4489_v33  ;;  %v9224_v33 = vadd.s32 18, %v9134_v17 }
 0x1ed   : > { %v9099_v22 = vpop.f32.mrb[8].mxu1  ;;  %10471 = vst [vmem:[#allocation24_spill] sm:$0xff] %v9106_v16  ;;  %v9151_v46 = vmul.u32.u64.low 3817748708, %v9121_v12  ;;  %v9152_v34 = vmul.u32.u64.high 3817748708, %v9121_v12, %v9151_v46  ;;  %vm4701_vm10 = vcmp.lt.s32.totalorder %v9106_v16, 0  ;;  %v9166_v32 = vsub.s32 %v8957_v51, %v4478_v4 }
 0x1ee   : > { %v9109_v7 = vpop.f32.mrb[9].mxu1  ;;  %10474 = vst [vmem:[#allocation29_spill] sm:$0xff] %v9161_v48  ;;  %v9181_v19 = vsub.s32 %v8964_v58, %v4511_v44  ;;  %v9184_v51 = vmul.u32.u64.low 3817748708, %v9148_v28  ;;  %v9185_v4 = vmul.u32.u64.high 3817748708, %v9148_v28, %v9184_v51  ;;  %vm10483_vm15 = vcmp.ne.s32.totalorder %v9106_v16, 0  ;;  %10487 = vst [vmem:[#allocation35_spill] sm:$0xff] %v9197_v61 }
 0x1ef   : > { %v9123_v59 = vpop.f32.mrb[10].mxu1  ;;  %10475 = vst [vmem:[#allocation30_spill] sm:$0xff] %v9166_v32  ;;  %vm9191_vm3 = vmand %vm4701_vm10, %vm10483_vm15  ;;  %v9200_v58 = vmul.u32.u64.low 3817748708, %v9155_v1  ;;  %v9201_v37 = vmul.u32.u64.high 3817748708, %v9155_v1, %v9200_v58  ;;  %v9206_v46 = vadd.s32 18, %v9083_v10  ;;  %v9209_v51 = vadd.s32 18, %v9106_v16 }
 0x1f0   : > { %v9136_v56 = vpop.f32.mrb[11].mxu1  ;;  %10481 = vst [vmem:[#allocation32_spill] sm:$0xff] %v9181_v19  ;;  %v10485_v42 = vsel %vm9191_vm3, 4294967295, %v10484_v42  ;;  %vm10491_vm15 = vcmp.ne.s32.totalorder %v9134_v17, 0  ;;  %10497 = vst [vmem:[#allocation41_spill] sm:$0xff] %v9224_v33  ;;  %vm10498_vm2 = vcmp.ne.s32.totalorder %v9141_v5, 0  ;;  %v10539_v10 = vsel %vm8820_vm11, %v8825_v20, %v8723_v41 }
 0x1f1   : > { %10473 = vst [vmem:[#allocation27_spill] sm:$0xff] %v9136_v56  ;;  %10486 = vst [vmem:[#allocation34_spill] sm:$0xff] %v10485_v42  ;;  %vm10499_vm12 = vcmp.lt.s32.totalorder %v9141_v5, 0  ;;  %v4521_v27 = vshrl.u32 %v9152_v34, 4  ;;  %v9302_v57 = vadd.s32 18, %v9161_v48  ;;  %vm10521_vm14 = vcmp.ne.s32.totalorder %v9166_v32, 0 }
 0x1f2   : > { %10489 = vst [vmem:[#allocation37_spill] sm:$0xff] %v9206_v46  ;;  %10490 = vst [vmem:[#allocation38_spill] sm:$0xff] %v9209_v51  ;;  %v9313_v36 = vadd.s32 18, %v9166_v32  ;;  %v10526_v34 = vmov 0  ;;  %v9331_v16 = vadd.s32 18, %v9197_v61  ;;  %v10536_v17 = vmov 0 }
 0x1f3   : > { %vm9215_vm10 = vmand %vm10492_vm13, %vm10491_vm15  ;;  %vm4670_vm15 = vcmp.ne.s32.totalorder %v9181_v19, 0  ;;  %10520 = vst [vmem:[#allocation43_spill] sm:$0xff] %v9302_v57  ;;  %v9359_v47 = vadd.s32 224, %v8636_v24  ;;  %vm9377_vm4 = vcmp.lt.s32.totalorder %v10539_v10, 16  ;;  %v10542_v10 = vld [vmem:[#allocation9_spill] sm:$0xff] }
 0x1f4   : > { %vm9230_vm9 = vmand %vm10499_vm12, %vm10498_vm2  ;;  %vm10508_vm2 = vcmp.ne.s32.totalorder %v9145_v49, 0  ;;  %10530 = vst [vmem:[#allocation46_spill] sm:$0xff] %v9331_v16 }
 0x1f5   : > { %v9169_v40 = vpop.f32.mrb[12].mxu1 }
 0x1f6   : > { %10476 = vst [vmem:[#allocation31_spill] sm:$0xff] %v9169_v40  ;;  %v9187_v38 = vpop.f32.mrb[13].mxu1  ;;  %v10505_v40 = vsel %vm8793_vm6, %v8736_v26, %v8700_v62  ;;  %v9268_v62 = vadd.s32 240, %v8636_v24  ;;  %vm10512_vm6 = vcmp.ne.s32.totalorder %v9161_v48, 0  ;;  %v10514_v26 = vmov 0 }
 0x1f7   : > { %10482 = vst [vmem:[#allocation33_spill] sm:$0xff] %v9187_v38  ;;  %v9203_v44 = vpop.f32.mrb[14].mxu1  ;;  %v10493_v38 = vmov 0  ;;  %vm9250_vm12 = vcmp.lt.s32.totalorder %v10505_v40, 16 }
 0x1f8   : > { %10488 = vst [vmem:[#allocation36_spill] sm:$0xff] %v9203_v44  ;;  %v10494_v38 = vsel %vm9215_vm10, 4294967295, %v10493_v38  ;;  %v9221_v63 = vpop.f32.mrb[15].mxu1  ;;  %v4544_v44 = vmul.u32 18, %v4543_v29  ;;  %v10507_v50 = vsel %vm9250_vm12, 4294967295, %v10506_v50  ;;  %v9255_v29 = vadd.s32 18, %v9141_v5 }
 0x1f9   : > { %10495 = vst [vmem:[#allocation39_spill] sm:$0xff] %v10494_v38  ;;  %10496 = vst [vmem:[#allocation40_spill] sm:$0xff] %v9221_v63  ;;  %v10502_v63 = vsel %vm8761_vm1, %v8713_v31, %v8690_v14  ;;  %vm10509_vm1 = vcmp.lt.s32.totalorder %v9145_v49, 0  ;;  %v9271_v31 = vadd.s32 18, %v9145_v49  ;;  %vm10513_vm12 = vcmp.lt.s32.totalorder %v9161_v48, 0 }
 0x1fa   : > { %vm9241_vm8 = vcmp.lt.s32.totalorder %v10502_v63, 16  ;;  %vm9261_vm13 = vmand %vm10509_vm1, %vm10508_vm2  ;;  %vm10525_vm1 = vcmp.lt.s32.totalorder %v9181_v19, 0  ;;  %v9328_v63 = vadd.s32 18, %v9181_v19  ;;  %v9334_v51 = vsub.s32 %v9037_v15, %v4544_v44 }
 0x1fb   : > { %v10504_v23 = vsel %vm9241_vm8, 4294967295, %v10503_v23  ;;  %vm9277_vm8 = vmand %vm10513_vm12, %vm10512_vm6  ;;  %vm10522_vm12 = vcmp.lt.s32.totalorder %v9166_v32, 0  ;;  %v4554_v15 = vshrl.u32 %v9185_v4, 4  ;;  %v4522_v4 = vmul.u32 18, %v4521_v27 }
 0x1fc   : > { %v10515_v26 = vsel %vm9277_vm8, 4294967295, %v10514_v26  ;;  %vm9308_vm6 = vmand %vm10522_vm12, %vm10521_vm14  ;;  %10529 = vst [vmem:[#allocation45_spill] sm:$0xff] %v9328_v63  ;;  %vm9341_vm14 = vcmp.lt.s32.totalorder %v10531_v54, 16  ;;  %v9355_v44 = vmul.u32.u64.low 3817748708, %v9268_v62  ;;  %v9356_v9 = vmul.u32.u64.high 3817748708, %v9268_v62, %v9355_v44 }
 0x1fd   : > { %10516 = vst [vmem:[#allocation42_spill] sm:$0xff] %v10515_v26  ;;  %v10524_v11 = vsel %vm9308_vm6, 4294967295, %v10523_v11  ;;  %vm9323_vm2 = vmand %vm10525_vm1, %vm4670_vm15  ;;  %vm10534_vm15 = vcmp.ne.s32.totalorder %v9197_v61, 0  ;;  %vm10535_vm1 = vcmp.lt.s32.totalorder %v9197_v61, 0  ;;  %v4532_v38 = vshrl.u32 %v9201_v37, 4 }
 0x1fe   : > { %v10527_v34 = vsel %vm9323_vm2, 4294967295, %v10526_v34  ;;  %vm9349_vm12 = vmand %vm10535_vm1, %vm10534_vm15  ;;  %v9390_v37 = vadd.s32 248, %v8636_v24  ;;  %v9402_v27 = vadd.s32 18, %v9334_v51  ;;  %vm10546_vm15 = vnez %v10504_v23 }
 0x1ff   : > { %10528 = vst [vmem:[#allocation44_spill] sm:$0xff] %v10527_v34  ;;  %v10537_v17 = vsel %vm9349_vm12, 4294967295, %v10536_v17  ;;  %v4587_v61 = vshrl.u32 %v9356_v9, 4  ;;  %v9466_v9 = vadd.s32 232, %v8636_v24 }
 0x200   : > { %10538 = vst [vmem:[#allocation47_spill] sm:$0xff] %v10537_v17  ;;  %v9428_v34 = vmul.u32.u64.low 3817748708, %v9390_v37  ;;  %v9429_v48 = vmul.u32.u64.high 3817748708, %v9390_v37, %v9428_v34 }
 0x202   : > { %v6549_v18 = vpop.f32.mrb[0].mxu0 }
 0x203   : > { %v6599_v44 = vadd.f32 %v6549_v18, %v8922_v39  ;;  %v4035_v56 = vpop.f32.mrb[1].mxu0  ;;  %v4555_v39 = vmul.u32 18, %v4554_v15  ;;  %v9558_v15 = vadd.s32 256, %v8636_v24 }
 0x204   : > { %v6600_v2 = vadd.f32 %v4035_v56, %v8932_v53  ;;  %v6550_v41 = vpop.f32.mrb[2].mxu0  ;;  %v9406_v53 = vmul.u32.u64.low 3817748708, %v9359_v47  ;;  %v9407_v56 = vmul.u32.u64.high 3817748708, %v9359_v47, %v9406_v53 }
 0x205   : > { %v6601_v18 = vadd.f32 %v6550_v41, %v8941_v13  ;;  %v4038_v54 = vpop.f32.mrb[3].mxu0  ;;  %v10543_v13 = vsel %vm8852_vm0, %v8841_v55, %v10542_v10  ;;  %v9425_v41 = vsub.s32 %v9121_v12, %v4522_v4  ;;  %v4533_v53 = vmul.u32 18, %v4532_v38  ;;  %v10548_v10 = vld [vmem:[#allocation6_spill] sm:$0xff]  ;;  %v10551_v4 = vld [vmem:[#allocation5_spill] sm:$0xff] }
 0x206   : > { %v5012_v33 = vmul.f32 %v6600_v2, %v6600_v2  ;;  %v6602_v20 = vadd.f32 %v4038_v54, %v8950_v25  ;;  %vm9420_vm11 = vcmp.lt.s32.totalorder %v10543_v13, 16  ;;  %v5014_v19 = vmul.f32 %v6599_v44, %v6599_v44  ;;  %v10550_v12 = vld [vmem:[#allocation10_spill] sm:$0xff] }
 0x207   : > { %v5782_v63 = vpack.c.bf16 %v6601_v18, %v6599_v44  ;;  %v4935_v43 = vsel %vm10546_vm15, %v6600_v2, 0.0  ;;  %vm10547_vm0 = vnez %v10507_v50  ;;  %vm10549_vm1 = vnez %v10548_v10 }
 0x208   : > { %v4936_v55 = vsel %vm10547_vm0, %v6602_v20, 0.0  ;;  %v5013_v25 = vmul.f32 %v6602_v20, %v6602_v20  ;;  %v5777_v54 = vpack.c.bf16 %v6602_v20, %v6600_v2  ;;  %v10552_v38 = vsel %vm10549_vm1, %v10550_v12, %v10551_v4  ;;  %v10555_v4 = vld [vmem:[#allocation7_spill] sm:$0xff] }
 0x209   : > { %vm9440_vm2 = vcmp.lt.s32.totalorder %v10552_v38, 16  ;;  %v5015_v57 = vmul.f32 %v6601_v18, %v6601_v18  ;;  %5864 = vst [vmem:[%s9412_s8 + $0x8] sm:$0xff] %v5782_v63   ;;  %v4971_v34 = vadd.f32 %v4936_v55, %v4935_v43  ;;  %v9446_v26 = vsub.s32 %v9148_v28, %v4555_v39  ;;  %v10557_v63 = vld [vmem:[#allocation25_spill] sm:$0xff]  ;;  %v10558_v43 = vld [vmem:[#allocation8_spill] sm:$0xff]  ;;  %v10598_v28 = vld [vmem:[#allocation18_spill] sm:$0xff] }
 0x20a   : > { %v4937_v2 = vsel %vm9289_vm5, %v6599_v44, 0.0  ;;  %v5048_v20 = vsel %vm10546_vm15, %v5012_v33, 0.0  ;;  %v5049_v10 = vsel %vm10547_vm0, %v5013_v25, 0.0  ;;  %5778 = vst [vmem:[%s9412_s8] sm:$0xff] %v5777_v54   ;;  %v6553_v12 = vpop.f32.mrb[4].mxu0  ;;  %vm10556_vm1 = vnez %v10555_v4  ;;  %v10562_v33 = vld [vmem:[#allocation28_spill] sm:$0xff]  ;;  %v10565_v54 = vld [vmem:[#allocation23_spill] sm:$0xff] }
 0x20b   : > { %v10559_v55 = vsel %vm10556_vm1, %v10557_v63, %v10558_v43  ;;  %v4972_v44 = vadd.f32 %v4971_v34, %v4937_v2  ;;  %v5084_v23 = vadd.f32 %v5049_v10, %v5048_v20  ;;  %v6603_v39 = vadd.f32 %v6553_v12, %v10562_v33  ;;  %v4051_v50 = vpop.f32.mrb[5].mxu0  ;;  %v10563_v25 = vld [vmem:[#allocation16_spill] sm:$0xff] }
 0x20c   : > { %vm9461_vm8 = vcmp.lt.s32.totalorder %v10559_v55, 16  ;;  %vm10564_vm15 = vnez %v10563_v25  ;;  %v10566_v38 = vld [vmem:[#allocation12_spill] sm:$0xff]  ;;  %v9479_v63 = vadd.s32 272, %v8636_v24  ;;  %v5050_v43 = vsel %vm9289_vm5, %v5014_v19, 0.0  ;;  %v6554_v10 = vpop.f32.mrb[6].mxu0 }
 0x20d   : > { %v10567_v4 = vsel %vm10564_vm15, %v10565_v54, %v10566_v38  ;;  %v4938_v34 = vsel %vm9341_vm14, %v6601_v18, 0.0  ;;  %v10570_v2 = vld [vmem:[#allocation4_spill] sm:$0xff]  ;;  %v9487_v12 = vsub.s32 %v9155_v1, %v4533_v53  ;;  %v5051_v55 = vsel %vm9341_vm14, %v5015_v57, 0.0  ;;  %v4054_v54 = vpop.f32.mrb[7].mxu0  ;;  %v10572_v18 = vld [vmem:[#allocation17_spill] sm:$0xff] }
 0x20e   : > { %vm9474_vm0 = vcmp.lt.s32.totalorder %v10567_v4, 16  ;;  %v6604_v20 = vadd.f32 %v4051_v50, %v10570_v2  ;;  %v5085_v33 = vadd.f32 %v5084_v23, %v5050_v43  ;;  %v4973_v25 = vadd.f32 %v4972_v44, %v4938_v34  ;;  %v10571_v4 = vld [vmem:[#allocation15_spill] sm:$0xff] }
 0x20f   : > { %v4588_v38 = vmul.u32 18, %v4587_v61  ;;  %v6605_v17 = vadd.f32 %v6554_v10, %v10571_v4  ;;  %v6606_v50 = vadd.f32 %v4054_v54, %v10572_v18  ;;  %vm10573_vm5 = vnez %v10454_v3  ;;  %v10577_v10 = vld [vmem:[#allocation13_spill] sm:$0xff] }
 0x210   : > { %v4939_v40 = vsel %vm9377_vm4, %v6604_v20, 0.0  ;;  %v5016_v19 = vmul.f32 %v6604_v20, %v6604_v20  ;;  %v5086_v32 = vadd.f32 %v5085_v33, %v5051_v55  ;;  %v10574_v1 = vsel %vm10573_vm5, %v9055_v52, %v8969_v8  ;;  %v10579_v55 = vld [vmem:[#allocation11_spill] sm:$0xff]  ;;  %v10580_v33 = vld [vmem:[#allocation2_spill] sm:$0xff] }
 0x211   : > { %v4974_v2 = vadd.f32 %v4973_v25, %v4939_v40  ;;  %vm9500_vm14 = vcmp.lt.s32.totalorder %v10574_v1, 16  ;;  %v9505_v61 = vadd.s32 18, %v9425_v41  ;;  %v9508_v57 = vadd.s32 18, %v9446_v26 }
 0x212   : > { %v5018_v53 = vmul.f32 %v6603_v39, %v6603_v39  ;;  %v5052_v44 = vsel %vm9377_vm4, %v5016_v19, 0.0  ;;  %v5792_v23 = vpack.c.bf16 %v6605_v17, %v6603_v39  ;;  %v4565_v3 = vshrl.u32 %v9407_v56, 4  ;;  %v6557_v40 = vpop.f32.mrb[8].mxu0 }
 0x213   : > { %v5087_v43 = vadd.f32 %v5086_v32, %v5052_v44  ;;  %v4940_v52 = vsel %vm9420_vm11, %v6606_v50, 0.0  ;;  %v5017_v8 = vmul.f32 %v6606_v50, %v6606_v50  ;;  %v5787_v34 = vpack.c.bf16 %v6606_v50, %v6604_v20 }
 0x214   : > { %vm10578_vm1 = vnez %v10577_v10  ;;  %5866 = vst [vmem:[%s9412_s8 + $0x18] sm:$0xff] %v5792_v23   ;;  %v4975_v46 = vadd.f32 %v4974_v2, %v4940_v52  ;;  %vm10584_vm4 = vnez %v10450_v35  ;;  %v9535_v20 = vadd.s32 18, %v9487_v12 }
 0x215   : > { %v10581_v25 = vsel %vm10578_vm1, %v10579_v55, %v10580_v33  ;;  %v10585_v32 = vsel %vm10584_vm4, %v8983_v45, %v8939_v6  ;;  %v9538_v19 = vsub.s32 %v9268_v62, %v4588_v38  ;;  %v4598_v4 = vshrl.u32 %v9429_v48, 4  ;;  %5865 = vst [vmem:[%s9412_s8 + $0x10] sm:$0xff] %v5787_v34   ;;  %v4067_v6 = vpop.f32.mrb[9].mxu0  ;;  %v10593_v34 = vld [vmem:[#allocation22_spill] sm:$0xff] }
 0x216   : > { %vm9520_vm15 = vcmp.lt.s32.totalorder %v10581_v25, 16  ;;  %vm9530_vm5 = vcmp.lt.s32.totalorder %v10585_v32, 16  ;;  %v4941_v18 = vsel %vm9440_vm2, %v6603_v39, 0.0  ;;  %v5019_v50 = vmul.f32 %v6605_v17, %v6605_v17  ;;  %v6558_v1 = vpop.f32.mrb[10].mxu0  ;;  %v10597_v25 = vld [vmem:[#allocation27_spill] sm:$0xff]  ;;  %v10618_v62 = vld [vmem:[#allocation26_spill] sm:$0xff] }
 0x217   : > { %v5053_v35 = vsel %vm9420_vm11, %v5017_v8, 0.0  ;;  %v6607_v45 = vadd.f32 %v6557_v40, %v9099_v22  ;;  %vm10588_vm1 = vnez %v10463_v21  ;;  %v4976_v48 = vadd.f32 %v4975_v46, %v4941_v18  ;;  %v10592_v8 = vld [vmem:[#allocation37_spill] sm:$0xff]  ;;  %v10600_v32 = vld [vmem:[#allocation19_spill] sm:$0xff] }
 0x218   : > { %v10589_v2 = vsel %vm10588_vm1, %v9069_v60, %v8986_v30  ;;  %v5088_v38 = vadd.f32 %v5087_v43, %v5053_v35  ;;  %v6608_v39 = vadd.f32 %v4067_v6, %v9109_v7  ;;  %v5054_v22 = vsel %vm9440_vm2, %v5018_v53, 0.0  ;;  %v4070_v60 = vpop.f32.mrb[11].mxu0 }
 0x219   : > { %vm9552_vm4 = vcmp.lt.s32.totalorder %v10589_v2, 16  ;;  %v4942_v21 = vsel %vm9461_vm8, %v6605_v17, 0.0  ;;  %v6609_v30 = vadd.f32 %v6558_v1, %v9123_v59  ;;  %v4566_v44 = vmul.u32 18, %v4565_v3 }
 0x21a   : > { %v5089_v23 = vadd.f32 %v5088_v38, %v5054_v22  ;;  %v4943_v43 = vsel %vm9474_vm0, %v6608_v39, 0.0  ;;  %v4977_v7 = vadd.f32 %v4976_v48, %v4942_v21  ;;  %v5020_v52 = vmul.f32 %v6608_v39, %v6608_v39  ;;  %v6561_v22 = vpop.f32.mrb[12].mxu0 }
 0x21b   : > { %v10594_v13 = vsel %vm9175_vm7, %v10592_v8, %v10593_v34  ;;  %v5055_v17 = vsel %vm9461_vm8, %v5019_v50, 0.0  ;;  %v5802_v59 = vpack.c.bf16 %v6609_v30, %v6607_v45  ;;  %v4599_v3 = vmul.u32 18, %v4598_v4  ;;  %v10601_v4 = vld [vmem:[#allocation3_spill] sm:$0xff] }
 0x21c   : > { %vm9572_vm2 = vcmp.lt.s32.totalorder %v10594_v13, 16  ;;  %v9579_v10 = vadd.s32 280, %v8636_v24  ;;  %v4978_v55 = vadd.f32 %v4977_v7, %v4943_v43  ;;  %v5056_v33 = vsel %vm9474_vm0, %v5020_v52, 0.0  ;;  %v10608_v43 = vld [vmem:[#allocation20_spill] sm:$0xff]  ;;  %v10609_v7 = vld [vmem:[#allocation14_spill] sm:$0xff] }
 0x21d   : > { %v5090_v0 = vadd.f32 %v5089_v23, %v5055_v17  ;;  %v6610_v46 = vadd.f32 %v4070_v60, %v10597_v25  ;;  %v5022_v40 = vmul.f32 %v6607_v45, %v6607_v45  ;;  %5868 = vst [vmem:[%s9412_s8 + $0x28] sm:$0xff] %v5802_v59   ;;  %vm10599_vm8 = vnez %v10598_v28  ;;  %v10605_v60 = vld [vmem:[#allocation31_spill] sm:$0xff]  ;;  %v10606_v23 = vld [vmem:[#allocation21_spill] sm:$0xff] }
 0x21e   : > { %v10602_v18 = vsel %vm10599_vm8, %v10600_v32, %v10601_v4  ;;  %v9599_v16 = vsub.s32 %v9359_v47, %v4566_v44  ;;  %v9602_v35 = vmul.u32.u64.low 3817748708, %v9466_v9  ;;  %v9603_v6 = vmul.u32.u64.high 3817748708, %v9466_v9, %v9602_v35  ;;  %v4083_v44 = vpop.f32.mrb[13].mxu0 }
 0x21f   : > { %vm9592_vm1 = vcmp.lt.s32.totalorder %v10602_v18, 16  ;;  %v5091_v2 = vadd.f32 %v5090_v0, %v5056_v33  ;;  %v4944_v48 = vsel %vm9500_vm14, %v6610_v46, 0.0  ;;  %v5021_v38 = vmul.f32 %v6610_v46, %v6610_v46  ;;  %v6562_v0 = vpop.f32.mrb[14].mxu0  ;;  %v10614_v18 = vld [vmem:[#allocation36_spill] sm:$0xff] }
 0x220   : > { %v5797_v1 = vpack.c.bf16 %v6610_v46, %v6608_v39  ;;  %vm4674_vm8 = vcmp.ne.s32.totalorder %v9446_v26, 0  ;;  %vm4710_vm0 = vcmp.lt.s32.totalorder %v9446_v26, 0  ;;  %v4979_v21 = vadd.f32 %v4978_v55, %v4944_v48  ;;  %v10613_v55 = vld [vmem:[#allocation33_spill] sm:$0xff]  ;;  %v4086_v32 = vpop.f32.mrb[15].mxu0  ;;  %v10615_v48 = vld [vmem:[#allocation40_spill] sm:$0xff] }
 0x221   : > { %v6611_v47 = vadd.f32 %v6561_v22, %v10605_v60  ;;  %vm10607_vm12 = vnez %v10606_v23  ;;  %vm4708_vm6 = vcmp.lt.s32.totalorder %v9487_v12, 0  ;;  %v4945_v13 = vsel %vm9520_vm15, %v6607_v45, 0.0 }
 0x222   : > { %v10610_v52 = vsel %vm10607_vm12, %v10608_v43, %v10609_v7  ;;  %v9622_v39 = vmul.u32.u64.low 3817748708, %v9479_v63  ;;  %v9623_v34 = vmul.u32.u64.high 3817748708, %v9479_v63, %v9622_v39  ;;  %v5023_v17 = vmul.f32 %v6609_v30, %v6609_v30  ;;  %5867 = vst [vmem:[%s9412_s8 + $0x20] sm:$0xff] %v5797_v1  }
 0x223   : > { %vm9615_vm11 = vcmp.lt.s32.totalorder %v10610_v52, 16  ;;  %v5057_v59 = vsel %vm9500_vm14, %v5021_v38, 0.0  ;;  %v6612_v33 = vadd.f32 %v4083_v44, %v10613_v55  ;;  %v5058_v25 = vsel %vm9520_vm15, %v5022_v40, 0.0 }
 0x224   : > { %v4946_v46 = vsel %vm9530_vm5, %v6609_v30, 0.0  ;;  %v4980_v28 = vadd.f32 %v4979_v21, %v4945_v13  ;;  %v5092_v45 = vadd.f32 %v5091_v2, %v5057_v59  ;;  %v6613_v35 = vadd.f32 %v6562_v0, %v10614_v18  ;;  %v6565_v13 = vpop.f32.mrb[16].mxu0 }
 0x225   : > { %v4947_v42 = vsel %vm9552_vm4, %v6612_v33, 0.0  ;;  %v5024_v4 = vmul.f32 %v6612_v33, %v6612_v33  ;;  %v6614_v38 = vadd.f32 %v4086_v32, %v10615_v48  ;;  %v5059_v30 = vsel %vm9530_vm5, %v5023_v17, 0.0  ;;  %v10617_v17 = vld [vmem:[#allocation41_spill] sm:$0xff] }
 0x226   : > { %v5093_v1 = vadd.f32 %v5092_v45, %v5058_v25  ;;  %v4981_v22 = vadd.f32 %v4980_v28, %v4946_v46  ;;  %v9642_v54 = vmul.u32.u64.low 3817748708, %v9558_v15  ;;  %v9643_v40 = vmul.u32.u64.high 3817748708, %v9558_v15, %v9642_v54  ;;  %v4099_v46 = vpop.f32.mrb[17].mxu0 }
 0x227   : > { %v5060_v2 = vsel %vm9552_vm4, %v5024_v4, 0.0  ;;  %v5812_v21 = vpack.c.bf16 %v6613_v35, %v6611_v47  ;;  %v9650_v60 = vsub.s32 %v9390_v37, %v4599_v3  ;;  %v4948_v43 = vsel %vm9572_vm2, %v6614_v38, 0.0  ;;  %v6566_v32 = vpop.f32.mrb[18].mxu0  ;;  %v10636_v54 = vld [vmem:[#allocation38_spill] sm:$0xff] }
 0x228   : > { %v4982_v44 = vadd.f32 %v4981_v22, %v4947_v42  ;;  %v5094_v23 = vadd.f32 %v5093_v1, %v5059_v30  ;;  %v5025_v7 = vmul.f32 %v6614_v38, %v6614_v38  ;;  %v5026_v52 = vmul.f32 %v6611_v47, %v6611_v47  ;;  %v4102_v18 = vpop.f32.mrb[19].mxu0  ;;  %v10637_v30 = vld [vmem:[#allocation24_spill] sm:$0xff] }
 0x229   : > { %5870 = vst [vmem:[%s9412_s8 + $0x38] sm:$0xff] %v5812_v21   ;;  %v5807_v39 = vpack.c.bf16 %v6614_v38, %v6612_v33  ;;  %v10619_v59 = vsel %vm9215_vm10, %v10617_v17, %v10618_v62  ;;  %v9665_v37 = vadd.s32 18, %v9538_v19  ;;  %v4576_v3 = vshrl.u32 %v9603_v6, 4 }
 0x22a   : > { %vm9660_vm14 = vcmp.lt.s32.totalorder %v10619_v59, 16  ;;  %v5095_v0 = vadd.f32 %v5094_v23, %v5060_v2  ;;  %v4983_v25 = vadd.f32 %v4982_v44, %v4948_v43  ;;  %v5061_v33 = vsel %vm9572_vm2, %v5025_v7, 0.0 }
 0x22b   : > { %vm10622_vm15 = vcmp.ne.s32.totalorder %v9334_v51, 0  ;;  %vm10623_vm5 = vcmp.lt.s32.totalorder %v9334_v51, 0  ;;  %v4949_v45 = vsel %vm9592_vm1, %v6611_v47, 0.0  ;;  %v5027_v6 = vmul.f32 %v6613_v35, %v6613_v35  ;;  %5869 = vst [vmem:[%s9412_s8 + $0x30] sm:$0xff] %v5807_v39  }
 0x22c   : > { %vm9674_vm10 = vmand %vm10623_vm5, %vm10622_vm15  ;;  %v10626_v53 = vsel %vm9261_vm13, %v9271_v31, %v9145_v49  ;;  %vm10629_vm15 = vcmp.ne.s32.totalorder %v9425_v41, 0  ;;  %vm10630_vm5 = vcmp.lt.s32.totalorder %v9425_v41, 0  ;;  %vm4711_vm7 = vcmp.lt.s32.totalorder %v9599_v16, 0 }
 0x22d   : > { %vm9687_vm2 = vcmp.lt.s32.totalorder %v10626_v53, 16  ;;  %vm9695_vm4 = vmand %vm10630_vm5, %vm10629_vm15  ;;  %v4984_v14 = vadd.f32 %v4983_v25, %v4949_v45  ;;  %v5096_v47 = vadd.f32 %v5095_v0, %v5061_v33  ;;  %v5062_v38 = vsel %vm9592_vm1, %v5026_v52, 0.0  ;;  %v6569_v25 = vpop.f32.mrb[20].mxu0 }
 0x22e   : > { %vm9705_vm13 = vmand %vm4710_vm0, %vm4674_vm8  ;;  %v9710_v31 = vmul.u32.u64.low 3817748708, %v9579_v10  ;;  %v9711_v48 = vmul.u32.u64.high 3817748708, %v9579_v10, %v9710_v31  ;;  %v4950_v1 = vsel %vm9615_vm11, %v6613_v35, 0.0  ;;  %v10638_v2 = vsel %vm9191_vm3, %v10636_v54, %v10637_v30  ;;  %v4115_v4 = vpop.f32.mrb[21].mxu0 }
 0x22f   : > { %vm9722_vm15 = vcmp.lt.s32.totalorder %v10638_v2, 16  ;;  %vm10641_vm0 = vcmp.ne.s32.totalorder %v9487_v12, 0  ;;  %vm4714_vm1 = vcmp.lt.s32.totalorder %v9650_v60, 0  ;;  %v4577_v50 = vmul.u32 18, %v4576_v3 }
 0x230   : > { %vm9730_vm8 = vmand %vm4708_vm6, %vm10641_vm0  ;;  %v5097_v35 = vadd.f32 %v5096_v47, %v5062_v38  ;;  %v4985_v23 = vadd.f32 %v4984_v14, %v4950_v1  ;;  %vm10644_vm5 = vcmp.ne.s32.totalorder %v9538_v19, 0  ;;  %vm10645_vm3 = vcmp.lt.s32.totalorder %v9538_v19, 0  ;;  %v6570_v1 = vpop.f32.mrb[22].mxu0  ;;  %v10678_v14 = vld [vmem:[#allocation45_spill] sm:$0xff] }
 0x231   : > { %vm9739_vm12 = vmand %vm10645_vm3, %vm10644_vm5  ;;  %v9744_v7 = vadd.s32 18, %v9599_v16  ;;  %v9747_v52 = vadd.s32 264, %v8636_v24  ;;  %v5063_v39 = vsel %vm9615_vm11, %v5027_v6, 0.0  ;;  %v10648_v56 = vsel %vm9230_vm9, %v9255_v29, %v9141_v5  ;;  %v6357_v5 = vpop.f32.mrb[16].mxu1 }
 0x232   : > { %vm9756_vm6 = vcmp.lt.s32.totalorder %v10648_v56, 16  ;;  %vm10651_vm0 = vcmp.ne.s32.totalorder %v9599_v16, 0  ;;  %v9769_v24 = vadd.s32 18, %v9650_v60  ;;  %v4631_v58 = vshrl.u32 %v9623_v34, 4  ;;  %v2226_v33 = vpop.f32.mrb[17].mxu1  ;;  %v10664_v56 = vld [vmem:[#allocation46_spill] sm:$0xff] }
 0x233   : > { %vm9764_vm5 = vmand %vm4711_vm7, %vm10651_vm0  ;;  %v4609_v8 = vshrl.u32 %v9643_v40, 4  ;;  %v5098_v29 = vadd.f32 %v5097_v35, %v5063_v39  ;;  %v4817_v59 = vsel %vm9674_vm10, %v9402_v27, %v9334_v51  ;;  %v4815_v3 = vsel %vm9695_vm4, %v9505_v61, %v9425_v41  ;;  %v10658_v41 = vld [vmem:[#allocation30_spill] sm:$0xff]  ;;  %v4118_v35 = vpop.f32.mrb[23].mxu0  ;;  %v10662_v39 = vld [vmem:[#allocation47_spill] sm:$0xff] }
 0x234   : > { %v4818_v0 = vsel %vm9705_vm13, %v9508_v57, %v9446_v26  ;;  %vm10654_vm9 = vcmp.ne.s32.totalorder %v9650_v60, 0  ;;  %v10655_v34 = vmov 0  ;;  %v6615_v40 = vadd.f32 %v6565_v13, %v6357_v5  ;;  %v10665_v5 = vld [vmem:[#allocation35_spill] sm:$0xff] }
 0x235   : > { %vm9789_vm7 = vmand %vm4714_vm1, %vm10654_vm9  ;;  %vm10657_vm11 = vnez %v10524_v11  ;;  %v4816_v6 = vsel %vm9730_vm8, %v9535_v20, %v9487_v12  ;;  %v9811_v53 = vsub.s32 %v9466_v9, %v4577_v50  ;;  %v6616_v11 = vadd.f32 %v4099_v46, %v2226_v33 }
 0x236   : > { %v10656_v34 = vsel %vm9789_vm7, 4294967295, %v10655_v34  ;;  %v10659_v61 = vsel %vm10657_vm11, %v9313_v36, %v10658_v41  ;;  %v6358_v36 = vpop.f32.mrb[18].mxu1  ;;  %v9818_v47 = vmul.u32.u64.low 3817748708, %v9747_v52  ;;  %v9819_v31 = vmul.u32.u64.high 3817748708, %v9747_v52, %v9818_v47 }
 0x237   : > { %vm9798_vm4 = vcmp.lt.s32.totalorder %v10659_v61, 16  ;;  %v6617_v38 = vadd.f32 %v6566_v32, %v6358_v36  ;;  %v2229_v22 = vpop.f32.mrb[19].mxu1  ;;  %v4632_v46 = vmul.u32 18, %v4631_v58  ;;  %v4610_v54 = vmul.u32 18, %v4609_v8 }
 0x238   : > { %v4951_v30 = vsel %vm9660_vm14, %v6616_v11, 0.0  ;;  %v5028_v2 = vmul.f32 %v6616_v11, %v6616_v11  ;;  %v6618_v50 = vadd.f32 %v4102_v18, %v2229_v22  ;;  %vm10663_vm1 = vnez %v10662_v39  ;;  %v10669_v22 = vld [vmem:[#allocation42_spill] sm:$0xff]  ;;  %v10671_v39 = vld [vmem:[#allocation43_spill] sm:$0xff]  ;;  %v6361_v13 = vpop.f32.mrb[20].mxu1 }
 0x239   : > { %v10666_v32 = vsel %vm10663_vm1, %v10664_v56, %v10665_v5  ;;  %v4642_v41 = vshrl.u32 %v9711_v48, 4  ;;  %v5030_v58 = vmul.f32 %v6615_v40, %v6615_v40  ;;  %v4986_v8 = vadd.f32 %v4985_v23, %v4951_v30  ;;  %v10672_v56 = vld [vmem:[#allocation29_spill] sm:$0xff] }
 0x23a   : > { %vm9832_vm3 = vcmp.lt.s32.totalorder %v10666_v32, 16  ;;  %vm4676_vm0 = vcmp.ne.s32.totalorder %v9811_v53, 0  ;;  %vm4712_vm9 = vcmp.lt.s32.totalorder %v9811_v53, 0  ;;  %v5064_v18 = vsel %vm9660_vm14, %v5028_v2, 0.0 }
 0x23b   : > { %v5822_v61 = vpack.c.bf16 %v6617_v38, %v6615_v40  ;;  %v4952_v36 = vsel %vm9687_vm2, %v6618_v50, 0.0  ;;  %v5029_v47 = vmul.f32 %v6618_v50, %v6618_v50  ;;  %vm10670_vm11 = vnez %v10669_v22  ;;  %v10676_v22 = vld [vmem:[#allocation44_spill] sm:$0xff] }
 0x23c   : > { %v10673_v48 = vsel %vm10670_vm11, %v10671_v39, %v10672_v56  ;;  %v5099_v30 = vadd.f32 %v5098_v29, %v5064_v18  ;;  %v5031_v5 = vmul.f32 %v6617_v38, %v6617_v38  ;;  %v4987_v32 = vadd.f32 %v4986_v8, %v4952_v36  ;;  %v10679_v39 = vld [vmem:[#allocation32_spill] sm:$0xff]  ;;  %v6573_v8 = vpop.f32.mrb[24].mxu0  ;;  %v2242_v18 = vpop.f32.mrb[21].mxu1 }
 0x23d   : > { %vm9848_vm1 = vcmp.lt.s32.totalorder %v10673_v48, 16  ;;  %v5817_v55 = vpack.c.bf16 %v6618_v50, %v6616_v11  ;;  %v4953_v2 = vsel %vm9722_vm15, %v6615_v40, 0.0  ;;  %5872 = vst [vmem:[%s9412_s8 + $0x48] sm:$0xff] %v5822_v61   ;;  %v5065_v9 = vsel %vm9687_vm2, %v5029_v47, 0.0  ;;  %v4131_v47 = vpop.f32.mrb[25].mxu0 }
 0x23e   : > { %vm10677_vm14 = vnez %v10676_v22  ;;  %v9867_v29 = vadd.s32 18, %v9811_v53  ;;  %v9870_v11 = vsub.s32 %v9479_v63, %v4632_v46  ;;  %v4988_v40 = vadd.f32 %v4987_v32, %v4953_v2  ;;  %v6574_v32 = vpop.f32.mrb[26].mxu0 }
 0x23f   : > { %v10680_v56 = vsel %vm10677_vm14, %v10678_v14, %v10679_v39  ;;  %v5100_v50 = vadd.f32 %v5099_v30, %v5065_v9  ;;  %5871 = vst [vmem:[%s9412_s8 + $0x40] sm:$0xff] %v5817_v55   ;;  %v6619_v42 = vadd.f32 %v6569_v25, %v6361_v13  ;;  %vm9873_vm2 = vcmp.lt.s32.totalorder %v4815_v3, 16  ;;  %v6362_v9 = vpop.f32.mrb[22].mxu1 }
 0x240   : > { %vm9862_vm11 = vcmp.lt.s32.totalorder %v10680_v56, 16  ;;  %v9878_v14 = vsub.s32 %v9558_v15, %v4610_v54  ;;  %v5066_v36 = vsel %vm9722_vm15, %v5030_v58, 0.0  ;;  %v4954_v63 = vsel %vm9756_vm6, %v6617_v38, 0.0  ;;  %v2245_v55 = vpop.f32.mrb[23].mxu1 }
 0x241   : > { %v6620_v46 = vadd.f32 %v4115_v4, %v2242_v18  ;;  %v4620_v25 = vshrl.u32 %v9819_v31, 4  ;;  %v5067_v3 = vsel %vm9756_vm6, %v5031_v5, 0.0  ;;  %v5101_v13 = vadd.f32 %v5100_v50, %v5066_v36  ;;  %v4134_v4 = vpop.f32.mrb[27].mxu0  ;;  %vm9904_vm6 = vmand %vm4712_vm9, %vm4676_vm0  ;;  %v6365_v56 = vpop.f32.mrb[24].mxu1 }
 0x242   : > { %v4989_v30 = vadd.f32 %v4988_v40, %v4954_v63  ;;  %v9887_v15 = vmul.u32 18, %v4642_v41  ;;  %v6621_v58 = vadd.f32 %v6570_v1, %v6362_v9  ;;  %v6622_v38 = vadd.f32 %v4118_v35, %v2245_v55 }
 0x243   : > { %v4955_v21 = vsel %vm9798_vm4, %v6620_v46, 0.0  ;;  %v5032_v54 = vmul.f32 %v6620_v46, %v6620_v46  ;;  %v5102_v22 = vadd.f32 %v5101_v13, %v5067_v3  ;;  %vm9896_vm15 = vcmp.lt.s32.totalorder %v4816_v6, 16 }
 0x244   : > { %v4990_v2 = vadd.f32 %v4989_v30, %v4955_v21  ;;  %vm4681_vm14 = vcmp.ne.s32.totalorder %v9870_v11, 0  ;;  %vm4717_vm7 = vcmp.lt.s32.totalorder %v9870_v11, 0  ;;  %v5034_v44 = vmul.f32 %v6619_v42, %v6619_v42 }
 0x245   : > { %v5068_v12 = vsel %vm9798_vm4, %v5032_v54, 0.0  ;;  %v5832_v20 = vpack.c.bf16 %v6621_v58, %v6619_v42  ;;  %v4621_v6 = vmul.u32 18, %v4620_v25  ;;  %v4956_v35 = vsel %vm9832_vm3, %v6622_v38, 0.0 }
 0x246   : > { %v5103_v1 = vadd.f32 %v5102_v22, %v5068_v12  ;;  %v5033_v41 = vmul.f32 %v6622_v38, %v6622_v38  ;;  %v5827_v5 = vpack.c.bf16 %v6622_v38, %v6620_v46  ;;  %vm9919_vm8 = vcmp.lt.s32.totalorder %v4817_v59, 16  ;;  %v6577_v59 = vpop.f32.mrb[28].mxu0 }
 0x247   : > { %5874 = vst [vmem:[%s9412_s8 + $0x58] sm:$0xff] %v5832_v20   ;;  %v4991_v45 = vadd.f32 %v4990_v2, %v4956_v35  ;;  %vm9929_vm4 = vcmp.lt.s32.totalorder %v4818_v0, 16  ;;  %v4820_v51 = vsel %vm9904_vm6, %v9867_v29, %v9811_v53  ;;  %v9938_v27 = vadd.s32 18, %v9870_v11  ;;  %v2258_v0 = vpop.f32.mrb[25].mxu1  ;;  %v4147_v36 = vpop.f32.mrb[29].mxu0 }
 0x248   : > { %vm4679_vm10 = vcmp.ne.s32.totalorder %v9878_v14, 0  ;;  %v4957_v28 = vsel %vm9848_vm1, %v6619_v42, 0.0  ;;  %v5035_v49 = vmul.f32 %v6621_v58, %v6621_v58  ;;  %v5069_v26 = vsel %vm9832_vm3, %v5033_v41, 0.0  ;;  %5873 = vst [vmem:[%s9412_s8 + $0x50] sm:$0xff] %v5827_v5   ;;  %v6366_v63 = vpop.f32.mrb[26].mxu1  ;;  %vm9959_vm3 = vmand %vm4717_vm7, %vm4681_vm14 }
 0x249   : > { %v6623_v57 = vadd.f32 %v6573_v8, %v6365_v56  ;;  %v10693_v53 = vsel %vm9764_vm5, %v9744_v7, %v9599_v16  ;;  %v4992_v50 = vadd.f32 %v4991_v45, %v4957_v28  ;;  %v5104_v18 = vadd.f32 %v5103_v1, %v5069_v26  ;;  %v6578_v8 = vpop.f32.mrb[30].mxu0  ;;  %v2261_v46 = vpop.f32.mrb[27].mxu1 }
 0x24a   : > { %vm9951_vm13 = vcmp.lt.s32.totalorder %v10693_v53, 16  ;;  %v6624_v42 = vadd.f32 %v4131_v47, %v2258_v0  ;;  %vm4715_vm0 = vcmp.lt.s32.totalorder %v9878_v14, 0  ;;  %v5070_v16 = vsel %vm9848_vm1, %v5034_v44, 0.0  ;;  %v4150_v30 = vpop.f32.mrb[31].mxu0 }
 0x24b   : > { %v4958_v7 = vsel %vm9862_vm11, %v6621_v58, 0.0  ;;  %v6625_v62 = vadd.f32 %v6574_v32, %v6366_v63  ;;  %v9969_v47 = vsub.s32 %v9747_v52, %v4621_v6  ;;  %v5105_v9 = vadd.f32 %v5104_v18, %v5070_v16  ;;  %vm9990_vm7 = vmand %vm4715_vm0, %vm4679_vm10  ;;  %v6581_v1 = vpop.f32.mrb[32].mxu0 }
 0x24c   : > { %v4959_v25 = vsel %vm9873_vm2, %v6624_v42, 0.0  ;;  %v4993_v3 = vadd.f32 %v4992_v50, %v4958_v7  ;;  %v5036_v13 = vmul.f32 %v6624_v42, %v6624_v42  ;;  %vm9973_vm5 = vcmp.lt.s32.totalorder %v4820_v51, 16  ;;  %v4163_v56 = vpop.f32.mrb[33].mxu0 }
 0x24d   : > { %v5071_v32 = vsel %vm9862_vm11, %v5035_v49, 0.0  ;;  %v5842_v55 = vpack.c.bf16 %v6625_v62, %v6623_v57  ;;  %v4825_v52 = vsel %vm9959_vm3, %v9938_v27, %v9870_v11  ;;  %v4787_v21 = vadd.s32 18, %v9878_v14 }
 0x24e   : > { %v4994_v54 = vadd.f32 %v4993_v3, %v4959_v25  ;;  %v5072_v58 = vsel %vm9873_vm2, %v5036_v13, 0.0  ;;  %v5106_v38 = vadd.f32 %v5105_v9, %v5071_v32  ;;  %v6626_v2 = vadd.f32 %v4134_v4, %v2261_v46 }
 0x24f   : > { %v5038_v22 = vmul.f32 %v6623_v57, %v6623_v57  ;;  %5876 = vst [vmem:[%s9412_s8 + $0x68] sm:$0xff] %v5842_v55   ;;  %v10702_v31 = vsel %vm9739_vm12, %v9665_v37, %v9538_v19  ;;  %v10006_v4 = vsub.s32 %v9579_v10, %v9887_v15  ;;  %vm4680_vm1 = vcmp.ne.s32.totalorder %v9969_v47, 0  ;;  %v6369_v19 = vpop.f32.mrb[28].mxu1 }
 0x250   : > { %vm10000_vm9 = vcmp.lt.s32.totalorder %v10702_v31, 16  ;;  %vm4716_vm11 = vcmp.lt.s32.totalorder %v9969_v47, 0  ;;  %v5107_v44 = vadd.f32 %v5106_v38, %v5072_v58  ;;  %v4960_v43 = vsel %vm9896_vm15, %v6626_v2, 0.0  ;;  %v2274_v35 = vpop.f32.mrb[29].mxu1 }
 0x251   : > { %v5037_v12 = vmul.f32 %v6626_v2, %v6626_v2  ;;  %v5837_v20 = vpack.c.bf16 %v6626_v2, %v6624_v42  ;;  %vm10705_vm12 = vnez %v10656_v34  ;;  %v4995_v15 = vadd.f32 %v4994_v54, %v4960_v43  ;;  %v6370_v51 = vpop.f32.mrb[30].mxu1  ;;  %vm10034_vm6 = vmand %vm4716_vm11, %vm4680_vm1 }
 0x252   : > { %v10706_v37 = vsel %vm10705_vm12, %v9769_v24, %v9650_v60  ;;  %v6627_v6 = vadd.f32 %v6577_v59, %v6369_v19  ;;  %v4823_v41 = vsel %vm9990_vm7, %v4787_v21, %v9878_v14  ;;  %v4788_v5 = vadd.s32 18, %v9969_v47  ;;  %v2277_v59 = vpop.f32.mrb[31].mxu1 }
 0x253   : > { %vm10017_vm2 = vcmp.lt.s32.totalorder %v10706_v37, 16  ;;  %v4961_v34 = vsel %vm9919_vm8, %v6623_v57, 0.0  ;;  %v5039_v45 = vmul.f32 %v6625_v62, %v6625_v62  ;;  %v5073_v60 = vsel %vm9896_vm15, %v5037_v12, 0.0  ;;  %5875 = vst [vmem:[%s9412_s8 + $0x60] sm:$0xff] %v5837_v20   ;;  %v6582_v57 = vpop.f32.mrb[34].mxu0  ;;  %v6373_v32 = vpop.f32.mrb[32].mxu1 }
 0x254   : > { %v6628_v24 = vadd.f32 %v4147_v36, %v2274_v35  ;;  %v5074_v14 = vsel %vm9919_vm8, %v5038_v22, 0.0  ;;  %v4962_v49 = vsel %vm9929_vm4, %v6625_v62, 0.0  ;;  %v4996_v17 = vadd.f32 %v4995_v15, %v4961_v34  ;;  %v4166_v42 = vpop.f32.mrb[35].mxu0  ;;  %v2290_v54 = vpop.f32.mrb[33].mxu1 }
 0x255   : > { %v5108_v26 = vadd.f32 %v5107_v44, %v5073_v60  ;;  %v6629_v50 = vadd.f32 %v6578_v8, %v6370_v51  ;;  %v6630_v18 = vadd.f32 %v4150_v30, %v2277_v59  ;;  %vm10044_vm15 = vcmp.lt.s32.totalorder %v4823_v41, 16  ;;  %v6374_v48 = vpop.f32.mrb[34].mxu1 }
 0x256   : > { %v4963_v0 = vsel %vm9951_vm13, %v6628_v24, 0.0  ;;  %v5040_v53 = vmul.f32 %v6628_v24, %v6628_v24  ;;  %v4997_v63 = vadd.f32 %v4996_v17, %v4962_v49  ;;  %v4824_v16 = vsel %vm10034_vm6, %v4788_v5, %v9969_v47  ;;  %v2293_v20 = vpop.f32.mrb[35].mxu1 }
 0x257   : > { %v5109_v36 = vadd.f32 %v5108_v26, %v5074_v14  ;;  %v5075_v7 = vsel %vm9929_vm4, %v5039_v45, 0.0  ;;  %v5042_v62 = vmul.f32 %v6627_v6, %v6627_v6  ;;  %v5852_v8 = vpack.c.bf16 %v6629_v50, %v6627_v6 }
 0x258   : > { %v5076_v46 = vsel %vm9951_vm13, %v5040_v53, 0.0  ;;  %v4998_v9 = vadd.f32 %v4997_v63, %v4963_v0  ;;  %v4964_v3 = vsel %vm9973_vm5, %v6630_v18, 0.0  ;;  %v5041_v13 = vmul.f32 %v6630_v18, %v6630_v18 }
 0x259   : > { %v5110_v25 = vadd.f32 %v5109_v36, %v5075_v7  ;;  %5878 = vst [vmem:[%s9412_s8 + $0x78] sm:$0xff] %v5852_v8   ;;  %v5847_v30 = vpack.c.bf16 %v6630_v18, %v6628_v24  ;;  %vm4682_vm14 = vcmp.ne.s32.totalorder %v10006_v4, 0  ;;  %vm4718_vm8 = vcmp.lt.s32.totalorder %v10006_v4, 0 }
 0x25a   : > { %v4790_v40 = vadd.s32 18, %v10006_v4  ;;  %v4999_v29 = vadd.f32 %v4998_v9, %v4964_v3  ;;  %v5077_v55 = vsel %vm9973_vm5, %v5041_v13, 0.0  ;;  %v6631_v21 = vadd.f32 %v6581_v1, %v6373_v32  ;;  %vm10078_vm10 = vmand %vm4718_vm8, %vm4682_vm14 }
 0x25b   : > { %v5111_v47 = vadd.f32 %v5110_v25, %v5076_v46  ;;  %v4965_v58 = vsel %vm10000_vm9, %v6627_v6, 0.0  ;;  %v5043_v38 = vmul.f32 %v6629_v50, %v6629_v50  ;;  %5877 = vst [vmem:[%s9412_s8 + $0x70] sm:$0xff] %v5847_v30   ;;  %v6632_v2 = vadd.f32 %v4163_v56, %v2290_v54 }
 0x25c   : > { %vm10066_vm4 = vcmp.lt.s32.totalorder %v4824_v16, 16  ;;  %v5078_v31 = vsel %vm10000_vm9, %v5042_v62, 0.0  ;;  %v4966_v23 = vsel %vm10017_vm2, %v6629_v50, 0.0  ;;  %v5000_v44 = vadd.f32 %v4999_v29, %v4965_v58 }
 0x25d   : > { %v5112_v43 = vadd.f32 %v5111_v47, %v5077_v55  ;;  %v4967_v19 = vsel %vm10044_vm15, %v6632_v2, 0.0  ;;  %v5044_v61 = vmul.f32 %v6632_v2, %v6632_v2  ;;  %v6633_v37 = vadd.f32 %v6582_v57, %v6374_v48 }
 0x25e   : > { %v6634_v15 = vadd.f32 %v4166_v42, %v2293_v20  ;;  %vm10089_vm13 = vcmp.lt.s32.totalorder %v4825_v52, 16  ;;  %v5001_v35 = vadd.f32 %v5000_v44, %v4966_v23  ;;  %v5079_v41 = vsel %vm10017_vm2, %v5043_v38, 0.0 }
 0x25f   : > { %v5113_v6 = vadd.f32 %v5112_v43, %v5078_v31  ;;  %v5080_v5 = vsel %vm10044_vm15, %v5044_v61, 0.0  ;;  %v4826_v34 = vsel %vm10078_vm10, %v4790_v40, %v10006_v4  ;;  %v5862_v33 = vpack.c.bf16 %v6633_v37, %v6631_v21 }
 0x260   : > { %v5002_v45 = vadd.f32 %v5001_v35, %v4967_v19  ;;  %v4968_v11 = vsel %vm10066_vm4, %v6634_v15, 0.0  ;;  %v5045_v27 = vmul.f32 %v6634_v15, %v6634_v15  ;;  %v5046_v52 = vmul.f32 %v6631_v21, %v6631_v21 }
 0x261   : > { %v5114_v60 = vadd.f32 %v5113_v6, %v5079_v41  ;;  %5880 = vst [vmem:[%s9412_s8 + $0x88] sm:$0xff] %v5862_v33   ;;  %v5857_v24 = vpack.c.bf16 %v6634_v15, %v6632_v2  ;;  %vm4862_vm3 = vcmp.lt.s32.totalorder %v4826_v34, 16  ;;  %v4969_v28 = vsel %vm10089_vm13, %v6631_v21, 0.0 }
 0x262   : > { %v5003_v56 = vadd.f32 %v5002_v45, %v4968_v11  ;;  %v5081_v51 = vsel %vm10066_vm4, %v5045_v27, 0.0  ;;  %v5047_v4 = vmul.f32 %v6633_v37, %v6633_v37  ;;  %v5082_v17 = vsel %vm10089_vm13, %v5046_v52, 0.0 }
 0x263   : > { %v5115_v10 = vadd.f32 %v5114_v60, %v5080_v5  ;;  %5879 = vst [vmem:[%s9412_s8 + $0x80] sm:$0xff] %v5857_v24   ;;  %v4970_v26 = vsel %vm4862_vm3, %v6633_v37, 0.0  ;;  %vm5125_vm0 = vcmask 1040384  }
 0x264   : > { %v5004_v14 = vadd.f32 %v5003_v56, %v4969_v28  ;;  %v5083_v0 = vsel %vm4862_vm3, %v5047_v4, 0.0 }
 0x265   : > { %v5116_v49 = vadd.f32 %v5115_v10, %v5081_v51 }
 0x266   : > { %v5005_v57 = vadd.f32 %v5004_v14, %v4970_v26 }
 0x267   : > { %v5117_v59 = vadd.f32 %v5116_v49, %v5082_v17 }
 0x268   : > { %v5006_v53 = vrot.slane %v5005_v57, 4 }
 0x269   : > { %v5118_v50 = vadd.f32 %v5117_v59, %v5083_v0 }
 0x26a   : > { %v5007_v18 = vadd.f32 %v5006_v53, %v5005_v57 }
 0x26b   : > { %v5119_v42 = vrot.slane %v5118_v50, 4 }
 0x26c   : > { %v5008_v36 = vrot.slane %v5007_v18, 2 }
 0x26d   : > { %v5120_v63 = vadd.f32 %v5119_v42, %v5118_v50 }
 0x26e   : > { %v5009_v39 = vadd.f32 %v5008_v36, %v5007_v18 }
 0x26f   : > { %v5121_v16 = vrot.slane %v5120_v63, 2 }
 0x270   : > { %v5010_v7 = vrot.slane %v5009_v39, 1 }
 0x271   : > { %v5122_v62 = vadd.f32 %v5121_v16, %v5120_v63 }
 0x272   : > { %v5011_v8 = vadd.f32 %v5010_v7, %v5009_v39 }
 0x273   : > { %v5123_v46 = vrot.slane %v5122_v62, 1 }
 0x275   : > { %v5124_v9 = vadd.f32 %v5123_v46, %v5122_v62 }
 0x277   : > { %v5126_v25 = vsel %vm5125_vm0, %v5011_v8, %v5124_v9 }
 0x278   : > { %5127 = vst [vmem:[%s181_s15] sm:$0x3] %v5126_v25 }
 0x279 PF: > { %s14_s12 = sadd.s32 1, %s7154_s12  }
 0x27a   : > { %p11_p4 = scmp.ge.s32.totalorder %s14_s12, 4  }
 0x27c   :  { %13 = sbr.rel (!%p11_p4) target bundleno = 1 (0x1), region = 78 }

</bundles_post_ra>
